<compile_context>
chip_gen: v7x
topology: tpu7x:2x2x1
jax: 0.10.0
libtpu: 0.0.40
codegen_flags: <defaults>
</compile_context>

<pallas_src>
import math

import jax
import jax.numpy as jnp
from jax.experimental import pallas as pl
from jax.experimental.pallas import tpu as pltpu


# ----------------------------------------------------------------------------------
# Small helpers (plain JAX glue)
# ----------------------------------------------------------------------------------
def sinusoidal_pos_emb(t, dim):
    half = dim // 2
    scale = math.log(10000.0) / (half - 1)
    freqs = jnp.exp(jnp.arange(half, dtype=jnp.float32) * -scale)
    args = t.astype(jnp.float32)[:, None] * freqs[None, :]
    return jnp.concatenate([jnp.sin(args), jnp.cos(args)], axis=-1)       # (B, dim)


def _group_avg_matrix(C, num_groups):
    gs = C // num_groups
    ids = jnp.arange(C) // gs
    return (ids[:, None] == ids[None, :]).astype(jnp.float32) / gs        # (C, C)


# ----------------------------------------------------------------------------------
# Fused ResnetBlock kernel (one grid step == one batch element)
# ----------------------------------------------------------------------------------
def make_resblock_kernel(H, W, Cin, Cout, has_proj):
    HW = H * W
    taps = [(dy, dx) for dy in (-1, 0, 1) for dx in (-1, 0, 1)]           # k = (dy+1)*3+(dx+1)

    def shift_lanes(v, s):
        # y[:, i] = v[:, i + s] if 0 <= i + s < HW else 0      (s is a static python int)
        c = v.shape[0]
        if s == 0:
            return v
        if s > 0:
            return jnp.concatenate([v[:, s:], jnp.zeros((c, s), v.dtype)], axis=1)
        return jnp.concatenate([jnp.zeros((c, -s), v.dtype), v[:, :HW + s]], axis=1)

    def conv3x3(v, w_ref, col):
        # v: (C_in_blk, HW), w_ref: (9, Cout, C_in_blk)  ->  (Cout, HW)
        acc = jnp.zeros((Cout, HW), jnp.float32)
        for k, (dy, dx) in enumerate(taps):
            xs = shift_lanes(v, dy * W + dx)
            if dx != 0:
                ok = jnp.logical_and(col + dx >= 0, col + dx < W)
                xs = jnp.where(ok, xs, 0.0)
            acc = acc + jnp.dot(w_ref[k], xs, preferred_element_type=jnp.float32)
        return acc

    def group_norm(h, gamma, beta, gmap, eps=1e-5):
        # h: (Cout, HW), gamma/beta: (Cout, 1), gmap: (Cout, Cout) group-averaging matrix.
        # Centered two-pass for numerical robustness.
        g_mean = jnp.mean(jnp.dot(gmap, h, preferred_element_type=jnp.float32),
                          axis=1, keepdims=True)                          # (Cout, 1)
        d = h - g_mean
        g_var = jnp.mean(jnp.dot(gmap, d * d, preferred_element_type=jnp.float32),
                         axis=1, keepdims=True)                           # (Cout, 1)
        inv = jax.lax.rsqrt(g_var + eps)
        return d * inv * gamma + beta

    def silu(v):
        return v * jax.nn.sigmoid(v)                                      # sigmoid -> EUP

    def kernel(*refs):
        if has_proj:
            x_ref, emb_ref, w1_ref, w2_ref, pp_ref, gmap_ref, ws_ref, out_ref = refs
        else:
            x_ref, emb_ref, w1_ref, w2_ref, pp_ref, gmap_ref, out_ref = refs

        col = jax.lax.broadcasted_iota(jnp.int32, (1, HW), 1) % W         # column index per lane
        x = x_ref[...]                                                    # (Cin, HW)
        gmap = gmap_ref[...]
        b1, g1, bt1 = pp_ref[:, 0:1], pp_ref[:, 1:2], pp_ref[:, 2:3]
        b2, g2, bt2 = pp_ref[:, 3:4], pp_ref[:, 4:5], pp_ref[:, 5:6]

        # shortcut — kept on-chip, never written to HBM
        if has_proj:
            ident = jnp.dot(ws_ref[...], x,
                            preferred_element_type=jnp.float32) + pp_ref[:, 6:7]
        else:
            ident = x

        # block1: conv3x3 -> GroupNorm -> SiLU
        h = conv3x3(x, w1_ref, col) + b1
        h = silu(group_norm(h, g1, bt1, gmap))
        # time embedding (same value for every channel at a given pixel) + SiLU
        h = silu(h + emb_ref[...])
        # block2: conv3x3 -> GroupNorm -> SiLU
        h = conv3x3(h, w2_ref, col) + b2
        h = silu(group_norm(h, g2, bt2, gmap))

        out_ref[...] = (h + ident).astype(out_ref.dtype)

    return kernel


# ----------------------------------------------------------------------------------
# Wrappers
# ----------------------------------------------------------------------------------
def resnet_block_pallas(x_flat, emb, p, num_groups, H, W):
    """One fused ResnetBlock. x_flat: (B, Cin, H*W) f32, emb: (B, 1, H*W) f32."""
    B, Cin, HW = x_flat.shape
    Cout = p["w1"].shape[-1]
    has_proj = Cin != Cout

    # conv weights -> (9, Cout, Cin_blk); per-channel params packed into one (Cout, k)
    w1k = jnp.transpose(p["w1"].reshape(9, Cin, Cout), (0, 2, 1)).astype(jnp.float32)
    w2k = jnp.transpose(p["w2"].reshape(9, Cout, Cout), (0, 2, 1)).astype(jnp.float32)
    cols = [p["b1"], p["g1"], p["bt1"], p["b2"], p["g2"], p["bt2"]]
    if has_proj:
        cols.append(p["bs"])
    pp = jnp.stack([c.astype(jnp.float32) for c in cols], axis=1)          # (Cout, 6|7)
    gmap = _group_avg_matrix(Cout, num_groups)

    def per_batch(c):
        return pl.BlockSpec((None, c, HW), lambda b: (b, 0, 0))

    def full(a):
        nd = a.ndim
        return pl.BlockSpec(a.shape, lambda b: (0,) * nd)

    inputs = [x_flat, emb, w1k, w2k, pp, gmap]
    in_specs = [per_batch(Cin), per_batch(1), full(w1k), full(w2k), full(pp), full(gmap)]
    if has_proj:
        wsk = jnp.transpose(p["ws"]).astype(jnp.float32)                   # (Cout, Cin)
        inputs.append(wsk)
        in_specs.append(full(wsk))

    kernel = make_resblock_kernel(H, W, Cin, Cout, has_proj)
    return pl.pallas_call(
        kernel,
        out_shape=jax.ShapeDtypeStruct((B, Cout, HW), jnp.float32),
        grid=(B,),
        in_specs=in_specs,
        out_specs=pl.BlockSpec((None, Cout, HW), lambda b: (b, 0, 0)),
        compiler_params=pltpu.CompilerParams(dimension_semantics=("parallel",)),
    )(*inputs)


def resdual_stack_pallas(x_nchw, t, stack_params, num_groups):
    B, Cin, H, W = x_nchw.shape
    HW = H * W
    x = x_nchw.reshape(B, Cin, HW).astype(jnp.float32)                     # NCHW flat == (C, HW)
    emb = sinusoidal_pos_emb(t, HW)[:, None, :]                            # (B, 1, HW)
    for p in stack_params:
        x = resnet_block_pallas(x, emb, p, num_groups, H, W)
    return x.reshape(B, x.shape[1], H, W)


# ----------------------------------------------------------------------------------
# Pure-JAX reference (validation only)
# ----------------------------------------------------------------------------------
def resdual_stack_reference(x_nchw, t, stack_params, num_groups):
    x = jnp.transpose(x_nchw, (0, 2, 3, 1)).astype(jnp.float32)            # NHWC
    B, H, W, _ = x.shape
    emb = sinusoidal_pos_emb(t, H * W).reshape(B, H, W, 1)

    def conv3x3(y, w, b):
        return jax.lax.conv_general_dilated(
            y, w, window_strides=(1, 1), padding="SAME",
            dimension_numbers=("NHWC", "HWIO", "NHWC")) + b

    def gn(y, gamma, beta, eps=1e-5):
        Bb, Hh, Ww, C = y.shape
        yg = y.reshape(Bb, Hh * Ww, num_groups, C // num_groups)
        mean = yg.mean(axis=(1, 3), keepdims=True)
        var = ((yg - mean) ** 2).mean(axis=(1, 3), keepdims=True)
        yn = (yg - mean) / jnp.sqrt(var + eps)
        return yn.reshape(Bb, Hh, Ww, C) * gamma + beta

    silu = lambda z: z * jax.nn.sigmoid(z)

    for p in stack_params:
        Cin, Cout = x.shape[-1], p["w1"].shape[-1]
        if Cin != Cout:
            ident = jnp.einsum("bhwc,co->bhwo", x, p["ws"]) + p["bs"]
        else:
            ident = x
        h = silu(gn(conv3x3(x, p["w1"], p["b1"]), p["g1"], p["bt1"]))
        h = silu(h + emb)
        h = silu(gn(conv3x3(h, p["w2"], p["b2"]), p["g2"], p["bt2"]))
        x = h + ident
    return jnp.transpose(x, (0, 3, 1, 2))


# ----------------------------------------------------------------------------------
if __name__ == "__main__":
    B, Cin, Cout, H, W = 2, 4, 8, 16, 16
    G = 4                      # ResnetBlock default num_groups
    num_res_blocks = 2

    key = jax.random.PRNGKey(0)
    keys = jax.random.split(key, num_res_blocks * 10 + 2)

    stack_params = []
    block_in = Cin
    ki = 0
    for _ in range(num_res_blocks):
        block_out = Cout
        p = {
            "w1": 0.1 * jax.random.normal(keys[ki + 0], (3, 3, block_in, block_out), jnp.float32),
            "b1": 0.1 * jax.random.normal(keys[ki + 1], (block_out,), jnp.float32),
            "g1": 1.0 + 0.1 * jax.random.normal(keys[ki + 2], (block_out,), jnp.float32),
            "bt1": 0.1 * jax.random.normal(keys[ki + 3], (block_out,), jnp.float32),
            "w2": 0.1 * jax.random.normal(keys[ki + 4], (3, 3, block_out, block_out), jnp.float32),
            "b2": 0.1 * jax.random.normal(keys[ki + 5], (block_out,), jnp.float32),
            "g2": 1.0 + 0.1 * jax.random.normal(keys[ki + 6], (block_out,), jnp.float32),
            "bt2": 0.1 * jax.random.normal(keys[ki + 7], (block_out,), jnp.float32),
        }
        if block_in != block_out:   # 1x1 conv shortcut only when channels change
            p["ws"] = 0.1 * jax.random.normal(keys[ki + 8], (block_in, block_out), jnp.float32)
            p["bs"] = 0.1 * jax.random.normal(keys[ki + 9], (block_out,), jnp.float32)
        stack_params.append(p)
        block_in = block_out
        ki += 10

    x = jax.random.normal(keys[-2], (B, Cin, H, W), jnp.float32)           # NCHW like PyTorch
    t = jnp.array([3.0, 17.0], jnp.float32)                                # timesteps

    fwd = jax.jit(lambda xx, tt, ps: resdual_stack_pallas(xx, tt, ps, G))
    out = jax.block_until_ready(fwd(x, t, stack_params))
    ref = resdual_stack_reference(x, t, stack_params, G)

    assert out.shape == (B, Cout, H, W)
    err = float(jnp.max(jnp.abs(out - ref)))
    assert err < 1e-3, f"max abs error {err}"
    print("KERNEL_OK")
</pallas_src>

<mosaic_0001>
module attributes {stable_mosaic.version = 11 : i64} {
  func.func @kernel(%arg0: i32, %arg1: memref<1x8x256xf32, #tpu.memory_space<vmem>>, %arg2: memref<1x1x256xf32, #tpu.memory_space<vmem>>, %arg3: memref<9x8x8xf32, #tpu.memory_space<vmem>>, %arg4: memref<9x8x8xf32, #tpu.memory_space<vmem>>, %arg5: memref<8x6xf32, #tpu.memory_space<vmem>>, %arg6: memref<8x8xf32, #tpu.memory_space<vmem>>, %arg7: memref<1x8x256xf32, #tpu.memory_space<vmem>>) attributes {dimension_semantics = [#tpu.dimension_semantics<parallel>], iteration_bounds = array<i64: 2>, scalar_prefetch = 0 : i64, scratch_operands = 0 : i64, tpu.core_type = #tpu.core_type<tc>, window_params = [{transform_indices = @transform_0, window_bounds = array<i64: 1, 8, 256>}, {transform_indices = @transform_1, window_bounds = array<i64: 1, 1, 256>}, {pipeline_mode = #tpu.pipeline_mode<synchronous>, transform_indices = @transform_2, window_bounds = array<i64: 9, 8, 8>}, {pipeline_mode = #tpu.pipeline_mode<synchronous>, transform_indices = @transform_3, window_bounds = array<i64: 9, 8, 8>}, {pipeline_mode = #tpu.pipeline_mode<synchronous>, transform_indices = @transform_4, window_bounds = array<i64: 8, 6>}, {pipeline_mode = #tpu.pipeline_mode<synchronous>, transform_indices = @transform_5, window_bounds = array<i64: 8, 8>}, {transform_indices = @transform_6, window_bounds = array<i64: 1, 8, 256>}]} {
    %0 = tpu.iota {dimensions = array<i32: 1>} : vector<1x256xi32>
    %c16_i32 = arith.constant 16 : i32
    %c0_i32 = arith.constant 0 : i32
    %1 = arith.cmpi eq, %c16_i32, %c0_i32 : i32
    %c1_i32 = arith.constant 1 : i32
    %2 = arith.select %1, %c1_i32, %c16_i32 : i32
    %3 = vector.broadcast %2 : i32 to vector<1x256xi32>
    %4 = arith.remsi %0, %3 : vector<1x256xi32>
    %c0_i32_0 = arith.constant 0 : i32
    %5 = vector.broadcast %c0_i32_0 : i32 to vector<1x256xi32>
    %6 = arith.cmpi ne, %4, %5 : vector<1x256xi32>
    %c0_i32_1 = arith.constant 0 : i32
    %7 = vector.broadcast %c0_i32_1 : i32 to vector<1x256xi32>
    %8 = arith.cmpi slt, %4, %7 : vector<1x256xi32>
    %c0_i32_2 = arith.constant 0 : i32
    %9 = arith.cmpi slt, %2, %c0_i32_2 : i32
    %10 = vector.broadcast %9 : i1 to vector<1x256xi1>
    %11 = vector.broadcast %10 : vector<1x256xi1> to vector<1x256xi1>
    %12 = arith.xori %8, %11 : vector<1x256xi1>
    %13 = arith.andi %12, %6 : vector<1x256xi1>
    %14 = vector.broadcast %2 : i32 to vector<1x256xi32>
    %15 = arith.addi %4, %14 : vector<1x256xi32>
    %16 = arith.select %13, %15, %4 : vector<1x256xi1>, vector<1x256xi32>
    %c0 = arith.constant 0 : index
    %c0_3 = arith.constant 0 : index
    %c0_4 = arith.constant 0 : index
    %17 = vector.load %arg1[%c0, %c0_3, %c0_4] : memref<1x8x256xf32, #tpu.memory_space<vmem>>, vector<1x8x256xf32>
    %18 = vector.shape_cast %17 : vector<1x8x256xf32> to vector<8x256xf32>
    %c0_5 = arith.constant 0 : index
    %c0_6 = arith.constant 0 : index
    %19 = vector.load %arg6[%c0_5, %c0_6] : memref<8x8xf32, #tpu.memory_space<vmem>>, vector<8x8xf32>
    %c0_7 = arith.constant 0 : index
    %c0_8 = arith.constant 0 : index
    %20 = vector.load %arg5[%c0_7, %c0_8] : memref<8x6xf32, #tpu.memory_space<vmem>>, vector<8x1xf32>
    %c0_9 = arith.constant 0 : index
    %c1 = arith.constant 1 : index
    %21 = vector.load %arg5[%c0_9, %c1] : memref<8x6xf32, #tpu.memory_space<vmem>>, vector<8x1xf32>
    %c0_10 = arith.constant 0 : index
    %c2 = arith.constant 2 : index
    %22 = vector.load %arg5[%c0_10, %c2] : memref<8x6xf32, #tpu.memory_space<vmem>>, vector<8x1xf32>
    %c0_11 = arith.constant 0 : index
    %c3 = arith.constant 3 : index
    %23 = vector.load %arg5[%c0_11, %c3] : memref<8x6xf32, #tpu.memory_space<vmem>>, vector<8x1xf32>
    %c0_12 = arith.constant 0 : index
    %c4 = arith.constant 4 : index
    %24 = vector.load %arg5[%c0_12, %c4] : memref<8x6xf32, #tpu.memory_space<vmem>>, vector<8x1xf32>
    %c0_13 = arith.constant 0 : index
    %c5 = arith.constant 5 : index
    %25 = vector.load %arg5[%c0_13, %c5] : memref<8x6xf32, #tpu.memory_space<vmem>>, vector<8x1xf32>
    %cst = arith.constant 0.000000e+00 : f32
    %26 = vector.broadcast %cst : f32 to vector<8x256xf32>
    %cst_14 = arith.constant 0.000000e+00 : f32
    %27 = vector.broadcast %cst_14 : f32 to vector<8x17xf32>
    %28 = vector.extract_strided_slice %18 {offsets = [0, 0], sizes = [8, 239], strides = [1, 1]} : vector<8x256xf32> to vector<8x239xf32>
    %29 = tpu.concatenate %27, %28 in 1 : vector<8x17xf32>, vector<8x239xf32> -> vector<8x256xf32>
    %c-1_i32 = arith.constant -1 : i32
    %30 = vector.broadcast %c-1_i32 : i32 to vector<1x256xi32>
    %31 = arith.addi %16, %30 : vector<1x256xi32>
    %c0_i32_15 = arith.constant 0 : i32
    %32 = vector.broadcast %c0_i32_15 : i32 to vector<1x256xi32>
    %33 = arith.cmpi sge, %31, %32 : vector<1x256xi32>
    %c-1_i32_16 = arith.constant -1 : i32
    %34 = vector.broadcast %c-1_i32_16 : i32 to vector<1x256xi32>
    %35 = arith.addi %16, %34 : vector<1x256xi32>
    %c16_i32_17 = arith.constant 16 : i32
    %36 = vector.broadcast %c16_i32_17 : i32 to vector<1x256xi32>
    %37 = arith.cmpi slt, %35, %36 : vector<1x256xi32>
    %38 = arith.andi %33, %37 : vector<1x256xi1>
    %cst_18 = arith.constant 0.000000e+00 : f32
    %39 = vector.shape_cast %38 : vector<1x256xi1> to vector<1x256xi1>
    %40 = vector.broadcast %39 : vector<1x256xi1> to vector<8x256xi1>
    %41 = vector.broadcast %cst_18 : f32 to vector<8x256xf32>
    %42 = arith.select %40, %29, %41 : vector<8x256xi1>, vector<8x256xf32>
    %c0_19 = arith.constant 0 : index
    %c0_20 = arith.constant 0 : index
    %c0_21 = arith.constant 0 : index
    %43 = vector.load %arg3[%c0_19, %c0_20, %c0_21] : memref<9x8x8xf32, #tpu.memory_space<vmem>>, vector<1x8x8xf32>
    %44 = vector.shape_cast %43 : vector<1x8x8xf32> to vector<8x8xf32>
    %cst_22 = arith.constant dense<0.000000e+00> : vector<8x256xf32>
    %45 = tpu.matmul %44, %42, %cst_22 {dimension_numbers = #tpu.dot_dimension_numbers<[1], [0], [0], [1], [0, 0, 1, 1], [], []>} : vector<8x8xf32>, vector<8x256xf32>, vector<8x256xf32> -> vector<8x256xf32>
    %46 = arith.addf %26, %45 : vector<8x256xf32>
    %cst_23 = arith.constant 0.000000e+00 : f32
    %47 = vector.broadcast %cst_23 : f32 to vector<8x16xf32>
    %48 = vector.extract_strided_slice %18 {offsets = [0, 0], sizes = [8, 240], strides = [1, 1]} : vector<8x256xf32> to vector<8x240xf32>
    %49 = tpu.concatenate %47, %48 in 1 : vector<8x16xf32>, vector<8x240xf32> -> vector<8x256xf32>
    %c1_24 = arith.constant 1 : index
    %c0_25 = arith.constant 0 : index
    %c0_26 = arith.constant 0 : index
    %50 = vector.load %arg3[%c1_24, %c0_25, %c0_26] : memref<9x8x8xf32, #tpu.memory_space<vmem>>, vector<1x8x8xf32>
    %51 = vector.shape_cast %50 : vector<1x8x8xf32> to vector<8x8xf32>
    %cst_27 = arith.constant dense<0.000000e+00> : vector<8x256xf32>
    %52 = tpu.matmul %51, %49, %cst_27 {dimension_numbers = #tpu.dot_dimension_numbers<[1], [0], [0], [1], [0, 0, 1, 1], [], []>} : vector<8x8xf32>, vector<8x256xf32>, vector<8x256xf32> -> vector<8x256xf32>
    %53 = arith.addf %46, %52 : vector<8x256xf32>
    %cst_28 = arith.constant 0.000000e+00 : f32
    %54 = vector.broadcast %cst_28 : f32 to vector<8x15xf32>
    %55 = vector.extract_strided_slice %18 {offsets = [0, 0], sizes = [8, 241], strides = [1, 1]} : vector<8x256xf32> to vector<8x241xf32>
    %56 = tpu.concatenate %54, %55 in 1 : vector<8x15xf32>, vector<8x241xf32> -> vector<8x256xf32>
    %c1_i32_29 = arith.constant 1 : i32
    %57 = vector.broadcast %c1_i32_29 : i32 to vector<1x256xi32>
    %58 = arith.addi %16, %57 : vector<1x256xi32>
    %c0_i32_30 = arith.constant 0 : i32
    %59 = vector.broadcast %c0_i32_30 : i32 to vector<1x256xi32>
    %60 = arith.cmpi sge, %58, %59 : vector<1x256xi32>
    %c1_i32_31 = arith.constant 1 : i32
    %61 = vector.broadcast %c1_i32_31 : i32 to vector<1x256xi32>
    %62 = arith.addi %16, %61 : vector<1x256xi32>
    %c16_i32_32 = arith.constant 16 : i32
    %63 = vector.broadcast %c16_i32_32 : i32 to vector<1x256xi32>
    %64 = arith.cmpi slt, %62, %63 : vector<1x256xi32>
    %65 = arith.andi %60, %64 : vector<1x256xi1>
    %cst_33 = arith.constant 0.000000e+00 : f32
    %66 = vector.shape_cast %65 : vector<1x256xi1> to vector<1x256xi1>
    %67 = vector.broadcast %66 : vector<1x256xi1> to vector<8x256xi1>
    %68 = vector.broadcast %cst_33 : f32 to vector<8x256xf32>
    %69 = arith.select %67, %56, %68 : vector<8x256xi1>, vector<8x256xf32>
    %c2_34 = arith.constant 2 : index
    %c0_35 = arith.constant 0 : index
    %c0_36 = arith.constant 0 : index
    %70 = vector.load %arg3[%c2_34, %c0_35, %c0_36] : memref<9x8x8xf32, #tpu.memory_space<vmem>>, vector<1x8x8xf32>
    %71 = vector.shape_cast %70 : vector<1x8x8xf32> to vector<8x8xf32>
    %cst_37 = arith.constant dense<0.000000e+00> : vector<8x256xf32>
    %72 = tpu.matmul %71, %69, %cst_37 {dimension_numbers = #tpu.dot_dimension_numbers<[1], [0], [0], [1], [0, 0, 1, 1], [], []>} : vector<8x8xf32>, vector<8x256xf32>, vector<8x256xf32> -> vector<8x256xf32>
    %73 = arith.addf %53, %72 : vector<8x256xf32>
    %cst_38 = arith.constant 0.000000e+00 : f32
    %74 = vector.broadcast %cst_38 : f32 to vector<8x1xf32>
    %75 = vector.extract_strided_slice %18 {offsets = [0, 0], sizes = [8, 255], strides = [1, 1]} : vector<8x256xf32> to vector<8x255xf32>
    %76 = tpu.concatenate %74, %75 in 1 : vector<8x1xf32>, vector<8x255xf32> -> vector<8x256xf32>
    %c-1_i32_39 = arith.constant -1 : i32
    %77 = vector.broadcast %c-1_i32_39 : i32 to vector<1x256xi32>
    %78 = arith.addi %16, %77 : vector<1x256xi32>
    %c0_i32_40 = arith.constant 0 : i32
    %79 = vector.broadcast %c0_i32_40 : i32 to vector<1x256xi32>
    %80 = arith.cmpi sge, %78, %79 : vector<1x256xi32>
    %c-1_i32_41 = arith.constant -1 : i32
    %81 = vector.broadcast %c-1_i32_41 : i32 to vector<1x256xi32>
    %82 = arith.addi %16, %81 : vector<1x256xi32>
    %c16_i32_42 = arith.constant 16 : i32
    %83 = vector.broadcast %c16_i32_42 : i32 to vector<1x256xi32>
    %84 = arith.cmpi slt, %82, %83 : vector<1x256xi32>
    %85 = arith.andi %80, %84 : vector<1x256xi1>
    %cst_43 = arith.constant 0.000000e+00 : f32
    %86 = vector.shape_cast %85 : vector<1x256xi1> to vector<1x256xi1>
    %87 = vector.broadcast %86 : vector<1x256xi1> to vector<8x256xi1>
    %88 = vector.broadcast %cst_43 : f32 to vector<8x256xf32>
    %89 = arith.select %87, %76, %88 : vector<8x256xi1>, vector<8x256xf32>
    %c3_44 = arith.constant 3 : index
    %c0_45 = arith.constant 0 : index
    %c0_46 = arith.constant 0 : index
    %90 = vector.load %arg3[%c3_44, %c0_45, %c0_46] : memref<9x8x8xf32, #tpu.memory_space<vmem>>, vector<1x8x8xf32>
    %91 = vector.shape_cast %90 : vector<1x8x8xf32> to vector<8x8xf32>
    %cst_47 = arith.constant dense<0.000000e+00> : vector<8x256xf32>
    %92 = tpu.matmul %91, %89, %cst_47 {dimension_numbers = #tpu.dot_dimension_numbers<[1], [0], [0], [1], [0, 0, 1, 1], [], []>} : vector<8x8xf32>, vector<8x256xf32>, vector<8x256xf32> -> vector<8x256xf32>
    %93 = arith.addf %73, %92 : vector<8x256xf32>
    %c4_48 = arith.constant 4 : index
    %c0_49 = arith.constant 0 : index
    %c0_50 = arith.constant 0 : index
    %94 = vector.load %arg3[%c4_48, %c0_49, %c0_50] : memref<9x8x8xf32, #tpu.memory_space<vmem>>, vector<1x8x8xf32>
    %95 = vector.shape_cast %94 : vector<1x8x8xf32> to vector<8x8xf32>
    %cst_51 = arith.constant dense<0.000000e+00> : vector<8x256xf32>
    %96 = tpu.matmul %95, %18, %cst_51 {dimension_numbers = #tpu.dot_dimension_numbers<[1], [0], [0], [1], [0, 0, 1, 1], [], []>} : vector<8x8xf32>, vector<8x256xf32>, vector<8x256xf32> -> vector<8x256xf32>
    %97 = arith.addf %93, %96 : vector<8x256xf32>
    %98 = vector.extract_strided_slice %18 {offsets = [0, 1], sizes = [8, 255], strides = [1, 1]} : vector<8x256xf32> to vector<8x255xf32>
    %cst_52 = arith.constant 0.000000e+00 : f32
    %99 = vector.broadcast %cst_52 : f32 to vector<8x1xf32>
    %100 = tpu.concatenate %98, %99 in 1 : vector<8x255xf32>, vector<8x1xf32> -> vector<8x256xf32>
    %c1_i32_53 = arith.constant 1 : i32
    %101 = vector.broadcast %c1_i32_53 : i32 to vector<1x256xi32>
    %102 = arith.addi %16, %101 : vector<1x256xi32>
    %c0_i32_54 = arith.constant 0 : i32
    %103 = vector.broadcast %c0_i32_54 : i32 to vector<1x256xi32>
    %104 = arith.cmpi sge, %102, %103 : vector<1x256xi32>
    %c1_i32_55 = arith.constant 1 : i32
    %105 = vector.broadcast %c1_i32_55 : i32 to vector<1x256xi32>
    %106 = arith.addi %16, %105 : vector<1x256xi32>
    %c16_i32_56 = arith.constant 16 : i32
    %107 = vector.broadcast %c16_i32_56 : i32 to vector<1x256xi32>
    %108 = arith.cmpi slt, %106, %107 : vector<1x256xi32>
    %109 = arith.andi %104, %108 : vector<1x256xi1>
    %cst_57 = arith.constant 0.000000e+00 : f32
    %110 = vector.shape_cast %109 : vector<1x256xi1> to vector<1x256xi1>
    %111 = vector.broadcast %110 : vector<1x256xi1> to vector<8x256xi1>
    %112 = vector.broadcast %cst_57 : f32 to vector<8x256xf32>
    %113 = arith.select %111, %100, %112 : vector<8x256xi1>, vector<8x256xf32>
    %c5_58 = arith.constant 5 : index
    %c0_59 = arith.constant 0 : index
    %c0_60 = arith.constant 0 : index
    %114 = vector.load %arg3[%c5_58, %c0_59, %c0_60] : memref<9x8x8xf32, #tpu.memory_space<vmem>>, vector<1x8x8xf32>
    %115 = vector.shape_cast %114 : vector<1x8x8xf32> to vector<8x8xf32>
    %cst_61 = arith.constant dense<0.000000e+00> : vector<8x256xf32>
    %116 = tpu.matmul %115, %113, %cst_61 {dimension_numbers = #tpu.dot_dimension_numbers<[1], [0], [0], [1], [0, 0, 1, 1], [], []>} : vector<8x8xf32>, vector<8x256xf32>, vector<8x256xf32> -> vector<8x256xf32>
    %117 = arith.addf %97, %116 : vector<8x256xf32>
    %118 = vector.extract_strided_slice %18 {offsets = [0, 15], sizes = [8, 241], strides = [1, 1]} : vector<8x256xf32> to vector<8x241xf32>
    %cst_62 = arith.constant 0.000000e+00 : f32
    %119 = vector.broadcast %cst_62 : f32 to vector<8x15xf32>
    %120 = tpu.concatenate %118, %119 in 1 : vector<8x241xf32>, vector<8x15xf32> -> vector<8x256xf32>
    %c-1_i32_63 = arith.constant -1 : i32
    %121 = vector.broadcast %c-1_i32_63 : i32 to vector<1x256xi32>
    %122 = arith.addi %16, %121 : vector<1x256xi32>
    %c0_i32_64 = arith.constant 0 : i32
    %123 = vector.broadcast %c0_i32_64 : i32 to vector<1x256xi32>
    %124 = arith.cmpi sge, %122, %123 : vector<1x256xi32>
    %c-1_i32_65 = arith.constant -1 : i32
    %125 = vector.broadcast %c-1_i32_65 : i32 to vector<1x256xi32>
    %126 = arith.addi %16, %125 : vector<1x256xi32>
    %c16_i32_66 = arith.constant 16 : i32
    %127 = vector.broadcast %c16_i32_66 : i32 to vector<1x256xi32>
    %128 = arith.cmpi slt, %126, %127 : vector<1x256xi32>
    %129 = arith.andi %124, %128 : vector<1x256xi1>
    %cst_67 = arith.constant 0.000000e+00 : f32
    %130 = vector.shape_cast %129 : vector<1x256xi1> to vector<1x256xi1>
    %131 = vector.broadcast %130 : vector<1x256xi1> to vector<8x256xi1>
    %132 = vector.broadcast %cst_67 : f32 to vector<8x256xf32>
    %133 = arith.select %131, %120, %132 : vector<8x256xi1>, vector<8x256xf32>
    %c6 = arith.constant 6 : index
    %c0_68 = arith.constant 0 : index
    %c0_69 = arith.constant 0 : index
    %134 = vector.load %arg3[%c6, %c0_68, %c0_69] : memref<9x8x8xf32, #tpu.memory_space<vmem>>, vector<1x8x8xf32>
    %135 = vector.shape_cast %134 : vector<1x8x8xf32> to vector<8x8xf32>
    %cst_70 = arith.constant dense<0.000000e+00> : vector<8x256xf32>
    %136 = tpu.matmul %135, %133, %cst_70 {dimension_numbers = #tpu.dot_dimension_numbers<[1], [0], [0], [1], [0, 0, 1, 1], [], []>} : vector<8x8xf32>, vector<8x256xf32>, vector<8x256xf32> -> vector<8x256xf32>
    %137 = arith.addf %117, %136 : vector<8x256xf32>
    %138 = vector.extract_strided_slice %18 {offsets = [0, 16], sizes = [8, 240], strides = [1, 1]} : vector<8x256xf32> to vector<8x240xf32>
    %cst_71 = arith.constant 0.000000e+00 : f32
    %139 = vector.broadcast %cst_71 : f32 to vector<8x16xf32>
    %140 = tpu.concatenate %138, %139 in 1 : vector<8x240xf32>, vector<8x16xf32> -> vector<8x256xf32>
    %c7 = arith.constant 7 : index
    %c0_72 = arith.constant 0 : index
    %c0_73 = arith.constant 0 : index
    %141 = vector.load %arg3[%c7, %c0_72, %c0_73] : memref<9x8x8xf32, #tpu.memory_space<vmem>>, vector<1x8x8xf32>
    %142 = vector.shape_cast %141 : vector<1x8x8xf32> to vector<8x8xf32>
    %cst_74 = arith.constant dense<0.000000e+00> : vector<8x256xf32>
    %143 = tpu.matmul %142, %140, %cst_74 {dimension_numbers = #tpu.dot_dimension_numbers<[1], [0], [0], [1], [0, 0, 1, 1], [], []>} : vector<8x8xf32>, vector<8x256xf32>, vector<8x256xf32> -> vector<8x256xf32>
    %144 = arith.addf %137, %143 : vector<8x256xf32>
    %145 = vector.extract_strided_slice %18 {offsets = [0, 17], sizes = [8, 239], strides = [1, 1]} : vector<8x256xf32> to vector<8x239xf32>
    %cst_75 = arith.constant 0.000000e+00 : f32
    %146 = vector.broadcast %cst_75 : f32 to vector<8x17xf32>
    %147 = tpu.concatenate %145, %146 in 1 : vector<8x239xf32>, vector<8x17xf32> -> vector<8x256xf32>
    %c1_i32_76 = arith.constant 1 : i32
    %148 = vector.broadcast %c1_i32_76 : i32 to vector<1x256xi32>
    %149 = arith.addi %16, %148 : vector<1x256xi32>
    %c0_i32_77 = arith.constant 0 : i32
    %150 = vector.broadcast %c0_i32_77 : i32 to vector<1x256xi32>
    %151 = arith.cmpi sge, %149, %150 : vector<1x256xi32>
    %c1_i32_78 = arith.constant 1 : i32
    %152 = vector.broadcast %c1_i32_78 : i32 to vector<1x256xi32>
    %153 = arith.addi %16, %152 : vector<1x256xi32>
    %c16_i32_79 = arith.constant 16 : i32
    %154 = vector.broadcast %c16_i32_79 : i32 to vector<1x256xi32>
    %155 = arith.cmpi slt, %153, %154 : vector<1x256xi32>
    %156 = arith.andi %151, %155 : vector<1x256xi1>
    %cst_80 = arith.constant 0.000000e+00 : f32
    %157 = vector.shape_cast %156 : vector<1x256xi1> to vector<1x256xi1>
    %158 = vector.broadcast %157 : vector<1x256xi1> to vector<8x256xi1>
    %159 = vector.broadcast %cst_80 : f32 to vector<8x256xf32>
    %160 = arith.select %158, %147, %159 : vector<8x256xi1>, vector<8x256xf32>
    %c8 = arith.constant 8 : index
    %c0_81 = arith.constant 0 : index
    %c0_82 = arith.constant 0 : index
    %161 = vector.load %arg3[%c8, %c0_81, %c0_82] : memref<9x8x8xf32, #tpu.memory_space<vmem>>, vector<1x8x8xf32>
    %162 = vector.shape_cast %161 : vector<1x8x8xf32> to vector<8x8xf32>
    %cst_83 = arith.constant dense<0.000000e+00> : vector<8x256xf32>
    %163 = tpu.matmul %162, %160, %cst_83 {dimension_numbers = #tpu.dot_dimension_numbers<[1], [0], [0], [1], [0, 0, 1, 1], [], []>} : vector<8x8xf32>, vector<8x256xf32>, vector<8x256xf32> -> vector<8x256xf32>
    %164 = arith.addf %144, %163 : vector<8x256xf32>
    %165 = vector.broadcast %20 : vector<8x1xf32> to vector<8x256xf32>
    %166 = arith.addf %164, %165 : vector<8x256xf32>
    %cst_84 = arith.constant dense<0.000000e+00> : vector<8x256xf32>
    %167 = tpu.matmul %19, %166, %cst_84 {dimension_numbers = #tpu.dot_dimension_numbers<[1], [0], [0], [1], [0, 0, 1, 1], [], []>} : vector<8x8xf32>, vector<8x256xf32>, vector<8x256xf32> -> vector<8x256xf32>
    %cst_85 = arith.constant dense<0.000000e+00> : vector<8xf32>
    %168 = vector.multi_reduction <add>, %167, %cst_85 [1] : vector<8x256xf32> to vector<8xf32>
    %169 = vector.shape_cast %168 : vector<8xf32> to vector<8x1xf32>
    %cst_86 = arith.constant 2.560000e+02 : f32
    %170 = vector.broadcast %cst_86 : f32 to vector<8x1xf32>
    %171 = arith.divf %169, %170 : vector<8x1xf32>
    %172 = vector.broadcast %171 : vector<8x1xf32> to vector<8x256xf32>
    %173 = arith.subf %166, %172 : vector<8x256xf32>
    %174 = arith.mulf %173, %173 : vector<8x256xf32>
    %cst_87 = arith.constant dense<0.000000e+00> : vector<8x256xf32>
    %175 = tpu.matmul %19, %174, %cst_87 {dimension_numbers = #tpu.dot_dimension_numbers<[1], [0], [0], [1], [0, 0, 1, 1], [], []>} : vector<8x8xf32>, vector<8x256xf32>, vector<8x256xf32> -> vector<8x256xf32>
    %cst_88 = arith.constant dense<0.000000e+00> : vector<8xf32>
    %176 = vector.multi_reduction <add>, %175, %cst_88 [1] : vector<8x256xf32> to vector<8xf32>
    %177 = vector.shape_cast %176 : vector<8xf32> to vector<8x1xf32>
    %cst_89 = arith.constant 2.560000e+02 : f32
    %178 = vector.broadcast %cst_89 : f32 to vector<8x1xf32>
    %179 = arith.divf %177, %178 : vector<8x1xf32>
    %cst_90 = arith.constant 9.99999974E-6 : f32
    %180 = vector.broadcast %cst_90 : f32 to vector<8x1xf32>
    %181 = arith.addf %179, %180 : vector<8x1xf32>
    %182 = math.rsqrt %181 : vector<8x1xf32>
    %183 = vector.broadcast %182 : vector<8x1xf32> to vector<8x256xf32>
    %184 = arith.mulf %173, %183 : vector<8x256xf32>
    %185 = vector.broadcast %21 : vector<8x1xf32> to vector<8x256xf32>
    %186 = arith.mulf %184, %185 : vector<8x256xf32>
    %187 = vector.broadcast %22 : vector<8x1xf32> to vector<8x256xf32>
    %188 = arith.addf %186, %187 : vector<8x256xf32>
    %189 = arith.negf %188 : vector<8x256xf32>
    %190 = math.exp %189 : vector<8x256xf32>
    %cst_91 = arith.constant 1.000000e+00 : f32
    %191 = vector.broadcast %cst_91 : f32 to vector<8x256xf32>
    %192 = arith.addf %191, %190 : vector<8x256xf32>
    %193 = arith.divf %191, %192 : vector<8x256xf32>
    %194 = arith.mulf %188, %193 : vector<8x256xf32>
    %c0_92 = arith.constant 0 : index
    %c0_93 = arith.constant 0 : index
    %c0_94 = arith.constant 0 : index
    %195 = vector.load %arg2[%c0_92, %c0_93, %c0_94] : memref<1x1x256xf32, #tpu.memory_space<vmem>>, vector<1x1x256xf32>
    %196 = vector.shape_cast %195 : vector<1x1x256xf32> to vector<1x256xf32>
    %197 = vector.broadcast %196 : vector<1x256xf32> to vector<8x256xf32>
    %198 = arith.addf %194, %197 : vector<8x256xf32>
    %199 = arith.negf %198 : vector<8x256xf32>
    %200 = math.exp %199 : vector<8x256xf32>
    %cst_95 = arith.constant 1.000000e+00 : f32
    %201 = vector.broadcast %cst_95 : f32 to vector<8x256xf32>
    %202 = arith.addf %201, %200 : vector<8x256xf32>
    %203 = arith.divf %201, %202 : vector<8x256xf32>
    %204 = arith.mulf %198, %203 : vector<8x256xf32>
    %cst_96 = arith.constant 0.000000e+00 : f32
    %205 = vector.broadcast %cst_96 : f32 to vector<8x256xf32>
    %cst_97 = arith.constant 0.000000e+00 : f32
    %206 = vector.broadcast %cst_97 : f32 to vector<8x17xf32>
    %207 = vector.extract_strided_slice %204 {offsets = [0, 0], sizes = [8, 239], strides = [1, 1]} : vector<8x256xf32> to vector<8x239xf32>
    %208 = tpu.concatenate %206, %207 in 1 : vector<8x17xf32>, vector<8x239xf32> -> vector<8x256xf32>
    %c-1_i32_98 = arith.constant -1 : i32
    %209 = vector.broadcast %c-1_i32_98 : i32 to vector<1x256xi32>
    %210 = arith.addi %16, %209 : vector<1x256xi32>
    %c0_i32_99 = arith.constant 0 : i32
    %211 = vector.broadcast %c0_i32_99 : i32 to vector<1x256xi32>
    %212 = arith.cmpi sge, %210, %211 : vector<1x256xi32>
    %c-1_i32_100 = arith.constant -1 : i32
    %213 = vector.broadcast %c-1_i32_100 : i32 to vector<1x256xi32>
    %214 = arith.addi %16, %213 : vector<1x256xi32>
    %c16_i32_101 = arith.constant 16 : i32
    %215 = vector.broadcast %c16_i32_101 : i32 to vector<1x256xi32>
    %216 = arith.cmpi slt, %214, %215 : vector<1x256xi32>
    %217 = arith.andi %212, %216 : vector<1x256xi1>
    %cst_102 = arith.constant 0.000000e+00 : f32
    %218 = vector.shape_cast %217 : vector<1x256xi1> to vector<1x256xi1>
    %219 = vector.broadcast %218 : vector<1x256xi1> to vector<8x256xi1>
    %220 = vector.broadcast %cst_102 : f32 to vector<8x256xf32>
    %221 = arith.select %219, %208, %220 : vector<8x256xi1>, vector<8x256xf32>
    %c0_103 = arith.constant 0 : index
    %c0_104 = arith.constant 0 : index
    %c0_105 = arith.constant 0 : index
    %222 = vector.load %arg4[%c0_103, %c0_104, %c0_105] : memref<9x8x8xf32, #tpu.memory_space<vmem>>, vector<1x8x8xf32>
    %223 = vector.shape_cast %222 : vector<1x8x8xf32> to vector<8x8xf32>
    %cst_106 = arith.constant dense<0.000000e+00> : vector<8x256xf32>
    %224 = tpu.matmul %223, %221, %cst_106 {dimension_numbers = #tpu.dot_dimension_numbers<[1], [0], [0], [1], [0, 0, 1, 1], [], []>} : vector<8x8xf32>, vector<8x256xf32>, vector<8x256xf32> -> vector<8x256xf32>
    %225 = arith.addf %205, %224 : vector<8x256xf32>
    %cst_107 = arith.constant 0.000000e+00 : f32
    %226 = vector.broadcast %cst_107 : f32 to vector<8x16xf32>
    %227 = vector.extract_strided_slice %204 {offsets = [0, 0], sizes = [8, 240], strides = [1, 1]} : vector<8x256xf32> to vector<8x240xf32>
    %228 = tpu.concatenate %226, %227 in 1 : vector<8x16xf32>, vector<8x240xf32> -> vector<8x256xf32>
    %c1_108 = arith.constant 1 : index
    %c0_109 = arith.constant 0 : index
    %c0_110 = arith.constant 0 : index
    %229 = vector.load %arg4[%c1_108, %c0_109, %c0_110] : memref<9x8x8xf32, #tpu.memory_space<vmem>>, vector<1x8x8xf32>
    %230 = vector.shape_cast %229 : vector<1x8x8xf32> to vector<8x8xf32>
    %cst_111 = arith.constant dense<0.000000e+00> : vector<8x256xf32>
    %231 = tpu.matmul %230, %228, %cst_111 {dimension_numbers = #tpu.dot_dimension_numbers<[1], [0], [0], [1], [0, 0, 1, 1], [], []>} : vector<8x8xf32>, vector<8x256xf32>, vector<8x256xf32> -> vector<8x256xf32>
    %232 = arith.addf %225, %231 : vector<8x256xf32>
    %cst_112 = arith.constant 0.000000e+00 : f32
    %233 = vector.broadcast %cst_112 : f32 to vector<8x15xf32>
    %234 = vector.extract_strided_slice %204 {offsets = [0, 0], sizes = [8, 241], strides = [1, 1]} : vector<8x256xf32> to vector<8x241xf32>
    %235 = tpu.concatenate %233, %234 in 1 : vector<8x15xf32>, vector<8x241xf32> -> vector<8x256xf32>
    %c1_i32_113 = arith.constant 1 : i32
    %236 = vector.broadcast %c1_i32_113 : i32 to vector<1x256xi32>
    %237 = arith.addi %16, %236 : vector<1x256xi32>
    %c0_i32_114 = arith.constant 0 : i32
    %238 = vector.broadcast %c0_i32_114 : i32 to vector<1x256xi32>
    %239 = arith.cmpi sge, %237, %238 : vector<1x256xi32>
    %c1_i32_115 = arith.constant 1 : i32
    %240 = vector.broadcast %c1_i32_115 : i32 to vector<1x256xi32>
    %241 = arith.addi %16, %240 : vector<1x256xi32>
    %c16_i32_116 = arith.constant 16 : i32
    %242 = vector.broadcast %c16_i32_116 : i32 to vector<1x256xi32>
    %243 = arith.cmpi slt, %241, %242 : vector<1x256xi32>
    %244 = arith.andi %239, %243 : vector<1x256xi1>
    %cst_117 = arith.constant 0.000000e+00 : f32
    %245 = vector.shape_cast %244 : vector<1x256xi1> to vector<1x256xi1>
    %246 = vector.broadcast %245 : vector<1x256xi1> to vector<8x256xi1>
    %247 = vector.broadcast %cst_117 : f32 to vector<8x256xf32>
    %248 = arith.select %246, %235, %247 : vector<8x256xi1>, vector<8x256xf32>
    %c2_118 = arith.constant 2 : index
    %c0_119 = arith.constant 0 : index
    %c0_120 = arith.constant 0 : index
    %249 = vector.load %arg4[%c2_118, %c0_119, %c0_120] : memref<9x8x8xf32, #tpu.memory_space<vmem>>, vector<1x8x8xf32>
    %250 = vector.shape_cast %249 : vector<1x8x8xf32> to vector<8x8xf32>
    %cst_121 = arith.constant dense<0.000000e+00> : vector<8x256xf32>
    %251 = tpu.matmul %250, %248, %cst_121 {dimension_numbers = #tpu.dot_dimension_numbers<[1], [0], [0], [1], [0, 0, 1, 1], [], []>} : vector<8x8xf32>, vector<8x256xf32>, vector<8x256xf32> -> vector<8x256xf32>
    %252 = arith.addf %232, %251 : vector<8x256xf32>
    %cst_122 = arith.constant 0.000000e+00 : f32
    %253 = vector.broadcast %cst_122 : f32 to vector<8x1xf32>
    %254 = vector.extract_strided_slice %204 {offsets = [0, 0], sizes = [8, 255], strides = [1, 1]} : vector<8x256xf32> to vector<8x255xf32>
    %255 = tpu.concatenate %253, %254 in 1 : vector<8x1xf32>, vector<8x255xf32> -> vector<8x256xf32>
    %c-1_i32_123 = arith.constant -1 : i32
    %256 = vector.broadcast %c-1_i32_123 : i32 to vector<1x256xi32>
    %257 = arith.addi %16, %256 : vector<1x256xi32>
    %c0_i32_124 = arith.constant 0 : i32
    %258 = vector.broadcast %c0_i32_124 : i32 to vector<1x256xi32>
    %259 = arith.cmpi sge, %257, %258 : vector<1x256xi32>
    %c-1_i32_125 = arith.constant -1 : i32
    %260 = vector.broadcast %c-1_i32_125 : i32 to vector<1x256xi32>
    %261 = arith.addi %16, %260 : vector<1x256xi32>
    %c16_i32_126 = arith.constant 16 : i32
    %262 = vector.broadcast %c16_i32_126 : i32 to vector<1x256xi32>
    %263 = arith.cmpi slt, %261, %262 : vector<1x256xi32>
    %264 = arith.andi %259, %263 : vector<1x256xi1>
    %cst_127 = arith.constant 0.000000e+00 : f32
    %265 = vector.shape_cast %264 : vector<1x256xi1> to vector<1x256xi1>
    %266 = vector.broadcast %265 : vector<1x256xi1> to vector<8x256xi1>
    %267 = vector.broadcast %cst_127 : f32 to vector<8x256xf32>
    %268 = arith.select %266, %255, %267 : vector<8x256xi1>, vector<8x256xf32>
    %c3_128 = arith.constant 3 : index
    %c0_129 = arith.constant 0 : index
    %c0_130 = arith.constant 0 : index
    %269 = vector.load %arg4[%c3_128, %c0_129, %c0_130] : memref<9x8x8xf32, #tpu.memory_space<vmem>>, vector<1x8x8xf32>
    %270 = vector.shape_cast %269 : vector<1x8x8xf32> to vector<8x8xf32>
    %cst_131 = arith.constant dense<0.000000e+00> : vector<8x256xf32>
    %271 = tpu.matmul %270, %268, %cst_131 {dimension_numbers = #tpu.dot_dimension_numbers<[1], [0], [0], [1], [0, 0, 1, 1], [], []>} : vector<8x8xf32>, vector<8x256xf32>, vector<8x256xf32> -> vector<8x256xf32>
    %272 = arith.addf %252, %271 : vector<8x256xf32>
    %c4_132 = arith.constant 4 : index
    %c0_133 = arith.constant 0 : index
    %c0_134 = arith.constant 0 : index
    %273 = vector.load %arg4[%c4_132, %c0_133, %c0_134] : memref<9x8x8xf32, #tpu.memory_space<vmem>>, vector<1x8x8xf32>
    %274 = vector.shape_cast %273 : vector<1x8x8xf32> to vector<8x8xf32>
    %cst_135 = arith.constant dense<0.000000e+00> : vector<8x256xf32>
    %275 = tpu.matmul %274, %204, %cst_135 {dimension_numbers = #tpu.dot_dimension_numbers<[1], [0], [0], [1], [0, 0, 1, 1], [], []>} : vector<8x8xf32>, vector<8x256xf32>, vector<8x256xf32> -> vector<8x256xf32>
    %276 = arith.addf %272, %275 : vector<8x256xf32>
    %277 = vector.extract_strided_slice %204 {offsets = [0, 1], sizes = [8, 255], strides = [1, 1]} : vector<8x256xf32> to vector<8x255xf32>
    %cst_136 = arith.constant 0.000000e+00 : f32
    %278 = vector.broadcast %cst_136 : f32 to vector<8x1xf32>
    %279 = tpu.concatenate %277, %278 in 1 : vector<8x255xf32>, vector<8x1xf32> -> vector<8x256xf32>
    %c1_i32_137 = arith.constant 1 : i32
    %280 = vector.broadcast %c1_i32_137 : i32 to vector<1x256xi32>
    %281 = arith.addi %16, %280 : vector<1x256xi32>
    %c0_i32_138 = arith.constant 0 : i32
    %282 = vector.broadcast %c0_i32_138 : i32 to vector<1x256xi32>
    %283 = arith.cmpi sge, %281, %282 : vector<1x256xi32>
    %c1_i32_139 = arith.constant 1 : i32
    %284 = vector.broadcast %c1_i32_139 : i32 to vector<1x256xi32>
    %285 = arith.addi %16, %284 : vector<1x256xi32>
    %c16_i32_140 = arith.constant 16 : i32
    %286 = vector.broadcast %c16_i32_140 : i32 to vector<1x256xi32>
    %287 = arith.cmpi slt, %285, %286 : vector<1x256xi32>
    %288 = arith.andi %283, %287 : vector<1x256xi1>
    %cst_141 = arith.constant 0.000000e+00 : f32
    %289 = vector.shape_cast %288 : vector<1x256xi1> to vector<1x256xi1>
    %290 = vector.broadcast %289 : vector<1x256xi1> to vector<8x256xi1>
    %291 = vector.broadcast %cst_141 : f32 to vector<8x256xf32>
    %292 = arith.select %290, %279, %291 : vector<8x256xi1>, vector<8x256xf32>
    %c5_142 = arith.constant 5 : index
    %c0_143 = arith.constant 0 : index
    %c0_144 = arith.constant 0 : index
    %293 = vector.load %arg4[%c5_142, %c0_143, %c0_144] : memref<9x8x8xf32, #tpu.memory_space<vmem>>, vector<1x8x8xf32>
    %294 = vector.shape_cast %293 : vector<1x8x8xf32> to vector<8x8xf32>
    %cst_145 = arith.constant dense<0.000000e+00> : vector<8x256xf32>
    %295 = tpu.matmul %294, %292, %cst_145 {dimension_numbers = #tpu.dot_dimension_numbers<[1], [0], [0], [1], [0, 0, 1, 1], [], []>} : vector<8x8xf32>, vector<8x256xf32>, vector<8x256xf32> -> vector<8x256xf32>
    %296 = arith.addf %276, %295 : vector<8x256xf32>
    %297 = vector.extract_strided_slice %204 {offsets = [0, 15], sizes = [8, 241], strides = [1, 1]} : vector<8x256xf32> to vector<8x241xf32>
    %cst_146 = arith.constant 0.000000e+00 : f32
    %298 = vector.broadcast %cst_146 : f32 to vector<8x15xf32>
    %299 = tpu.concatenate %297, %298 in 1 : vector<8x241xf32>, vector<8x15xf32> -> vector<8x256xf32>
    %c-1_i32_147 = arith.constant -1 : i32
    %300 = vector.broadcast %c-1_i32_147 : i32 to vector<1x256xi32>
    %301 = arith.addi %16, %300 : vector<1x256xi32>
    %c0_i32_148 = arith.constant 0 : i32
    %302 = vector.broadcast %c0_i32_148 : i32 to vector<1x256xi32>
    %303 = arith.cmpi sge, %301, %302 : vector<1x256xi32>
    %c-1_i32_149 = arith.constant -1 : i32
    %304 = vector.broadcast %c-1_i32_149 : i32 to vector<1x256xi32>
    %305 = arith.addi %16, %304 : vector<1x256xi32>
    %c16_i32_150 = arith.constant 16 : i32
    %306 = vector.broadcast %c16_i32_150 : i32 to vector<1x256xi32>
    %307 = arith.cmpi slt, %305, %306 : vector<1x256xi32>
    %308 = arith.andi %303, %307 : vector<1x256xi1>
    %cst_151 = arith.constant 0.000000e+00 : f32
    %309 = vector.shape_cast %308 : vector<1x256xi1> to vector<1x256xi1>
    %310 = vector.broadcast %309 : vector<1x256xi1> to vector<8x256xi1>
    %311 = vector.broadcast %cst_151 : f32 to vector<8x256xf32>
    %312 = arith.select %310, %299, %311 : vector<8x256xi1>, vector<8x256xf32>
    %c6_152 = arith.constant 6 : index
    %c0_153 = arith.constant 0 : index
    %c0_154 = arith.constant 0 : index
    %313 = vector.load %arg4[%c6_152, %c0_153, %c0_154] : memref<9x8x8xf32, #tpu.memory_space<vmem>>, vector<1x8x8xf32>
    %314 = vector.shape_cast %313 : vector<1x8x8xf32> to vector<8x8xf32>
    %cst_155 = arith.constant dense<0.000000e+00> : vector<8x256xf32>
    %315 = tpu.matmul %314, %312, %cst_155 {dimension_numbers = #tpu.dot_dimension_numbers<[1], [0], [0], [1], [0, 0, 1, 1], [], []>} : vector<8x8xf32>, vector<8x256xf32>, vector<8x256xf32> -> vector<8x256xf32>
    %316 = arith.addf %296, %315 : vector<8x256xf32>
    %317 = vector.extract_strided_slice %204 {offsets = [0, 16], sizes = [8, 240], strides = [1, 1]} : vector<8x256xf32> to vector<8x240xf32>
    %cst_156 = arith.constant 0.000000e+00 : f32
    %318 = vector.broadcast %cst_156 : f32 to vector<8x16xf32>
    %319 = tpu.concatenate %317, %318 in 1 : vector<8x240xf32>, vector<8x16xf32> -> vector<8x256xf32>
    %c7_157 = arith.constant 7 : index
    %c0_158 = arith.constant 0 : index
    %c0_159 = arith.constant 0 : index
    %320 = vector.load %arg4[%c7_157, %c0_158, %c0_159] : memref<9x8x8xf32, #tpu.memory_space<vmem>>, vector<1x8x8xf32>
    %321 = vector.shape_cast %320 : vector<1x8x8xf32> to vector<8x8xf32>
    %cst_160 = arith.constant dense<0.000000e+00> : vector<8x256xf32>
    %322 = tpu.matmul %321, %319, %cst_160 {dimension_numbers = #tpu.dot_dimension_numbers<[1], [0], [0], [1], [0, 0, 1, 1], [], []>} : vector<8x8xf32>, vector<8x256xf32>, vector<8x256xf32> -> vector<8x256xf32>
    %323 = arith.addf %316, %322 : vector<8x256xf32>
    %324 = vector.extract_strided_slice %204 {offsets = [0, 17], sizes = [8, 239], strides = [1, 1]} : vector<8x256xf32> to vector<8x239xf32>
    %cst_161 = arith.constant 0.000000e+00 : f32
    %325 = vector.broadcast %cst_161 : f32 to vector<8x17xf32>
    %326 = tpu.concatenate %324, %325 in 1 : vector<8x239xf32>, vector<8x17xf32> -> vector<8x256xf32>
    %c1_i32_162 = arith.constant 1 : i32
    %327 = vector.broadcast %c1_i32_162 : i32 to vector<1x256xi32>
    %328 = arith.addi %16, %327 : vector<1x256xi32>
    %c0_i32_163 = arith.constant 0 : i32
    %329 = vector.broadcast %c0_i32_163 : i32 to vector<1x256xi32>
    %330 = arith.cmpi sge, %328, %329 : vector<1x256xi32>
    %c1_i32_164 = arith.constant 1 : i32
    %331 = vector.broadcast %c1_i32_164 : i32 to vector<1x256xi32>
    %332 = arith.addi %16, %331 : vector<1x256xi32>
    %c16_i32_165 = arith.constant 16 : i32
    %333 = vector.broadcast %c16_i32_165 : i32 to vector<1x256xi32>
    %334 = arith.cmpi slt, %332, %333 : vector<1x256xi32>
    %335 = arith.andi %330, %334 : vector<1x256xi1>
    %cst_166 = arith.constant 0.000000e+00 : f32
    %336 = vector.shape_cast %335 : vector<1x256xi1> to vector<1x256xi1>
    %337 = vector.broadcast %336 : vector<1x256xi1> to vector<8x256xi1>
    %338 = vector.broadcast %cst_166 : f32 to vector<8x256xf32>
    %339 = arith.select %337, %326, %338 : vector<8x256xi1>, vector<8x256xf32>
    %c8_167 = arith.constant 8 : index
    %c0_168 = arith.constant 0 : index
    %c0_169 = arith.constant 0 : index
    %340 = vector.load %arg4[%c8_167, %c0_168, %c0_169] : memref<9x8x8xf32, #tpu.memory_space<vmem>>, vector<1x8x8xf32>
    %341 = vector.shape_cast %340 : vector<1x8x8xf32> to vector<8x8xf32>
    %cst_170 = arith.constant dense<0.000000e+00> : vector<8x256xf32>
    %342 = tpu.matmul %341, %339, %cst_170 {dimension_numbers = #tpu.dot_dimension_numbers<[1], [0], [0], [1], [0, 0, 1, 1], [], []>} : vector<8x8xf32>, vector<8x256xf32>, vector<8x256xf32> -> vector<8x256xf32>
    %343 = arith.addf %323, %342 : vector<8x256xf32>
    %344 = vector.broadcast %23 : vector<8x1xf32> to vector<8x256xf32>
    %345 = arith.addf %343, %344 : vector<8x256xf32>
    %cst_171 = arith.constant dense<0.000000e+00> : vector<8x256xf32>
    %346 = tpu.matmul %19, %345, %cst_171 {dimension_numbers = #tpu.dot_dimension_numbers<[1], [0], [0], [1], [0, 0, 1, 1], [], []>} : vector<8x8xf32>, vector<8x256xf32>, vector<8x256xf32> -> vector<8x256xf32>
    %cst_172 = arith.constant dense<0.000000e+00> : vector<8xf32>
    %347 = vector.multi_reduction <add>, %346, %cst_172 [1] : vector<8x256xf32> to vector<8xf32>
    %348 = vector.shape_cast %347 : vector<8xf32> to vector<8x1xf32>
    %cst_173 = arith.constant 2.560000e+02 : f32
    %349 = vector.broadcast %cst_173 : f32 to vector<8x1xf32>
    %350 = arith.divf %348, %349 : vector<8x1xf32>
    %351 = vector.broadcast %350 : vector<8x1xf32> to vector<8x256xf32>
    %352 = arith.subf %345, %351 : vector<8x256xf32>
    %353 = arith.mulf %352, %352 : vector<8x256xf32>
    %cst_174 = arith.constant dense<0.000000e+00> : vector<8x256xf32>
    %354 = tpu.matmul %19, %353, %cst_174 {dimension_numbers = #tpu.dot_dimension_numbers<[1], [0], [0], [1], [0, 0, 1, 1], [], []>} : vector<8x8xf32>, vector<8x256xf32>, vector<8x256xf32> -> vector<8x256xf32>
    %cst_175 = arith.constant dense<0.000000e+00> : vector<8xf32>
    %355 = vector.multi_reduction <add>, %354, %cst_175 [1] : vector<8x256xf32> to vector<8xf32>
    %356 = vector.shape_cast %355 : vector<8xf32> to vector<8x1xf32>
    %cst_176 = arith.constant 2.560000e+02 : f32
    %357 = vector.broadcast %cst_176 : f32 to vector<8x1xf32>
    %358 = arith.divf %356, %357 : vector<8x1xf32>
    %cst_177 = arith.constant 9.99999974E-6 : f32
    %359 = vector.broadcast %cst_177 : f32 to vector<8x1xf32>
    %360 = arith.addf %358, %359 : vector<8x1xf32>
    %361 = math.rsqrt %360 : vector<8x1xf32>
    %362 = vector.broadcast %361 : vector<8x1xf32> to vector<8x256xf32>
    %363 = arith.mulf %352, %362 : vector<8x256xf32>
    %364 = vector.broadcast %24 : vector<8x1xf32> to vector<8x256xf32>
    %365 = arith.mulf %363, %364 : vector<8x256xf32>
    %366 = vector.broadcast %25 : vector<8x1xf32> to vector<8x256xf32>
    %367 = arith.addf %365, %366 : vector<8x256xf32>
    %368 = arith.negf %367 : vector<8x256xf32>
    %369 = math.exp %368 : vector<8x256xf32>
    %cst_178 = arith.constant 1.000000e+00 : f32
    %370 = vector.broadcast %cst_178 : f32 to vector<8x256xf32>
    %371 = arith.addf %370, %369 : vector<8x256xf32>
    %372 = arith.divf %370, %371 : vector<8x256xf32>
    %373 = arith.mulf %367, %372 : vector<8x256xf32>
    %374 = arith.addf %373, %18 : vector<8x256xf32>
    %c0_179 = arith.constant 0 : index
    %c0_180 = arith.constant 0 : index
    %c0_181 = arith.constant 0 : index
    %375 = vector.load %arg7[%c0_179, %c0_180, %c0_181] : memref<1x8x256xf32, #tpu.memory_space<vmem>>, vector<1x8x256xf32>
    %376 = vector.shape_cast %375 : vector<1x8x256xf32> to vector<8x256xf32>
    %377 = vector.shape_cast %374 : vector<8x256xf32> to vector<1x8x256xf32>
    tpu.vector_store %arg7[%c0_179, %c0_180, %c0_181], %377 {strides = array<i32>} : memref<1x8x256xf32, #tpu.memory_space<vmem>>, vector<1x8x256xf32>,
    return
  }
  func.func @transform_0(%arg0: i32) -> (i32, i32, i32) {
    %c0_i32 = arith.constant 0 : i32
    %c0_i32_0 = arith.constant 0 : i32
    %c0_i32_1 = arith.constant 0 : i32
    return %arg0, %c0_i32, %c0_i32_0 : i32, i32, i32
  }
  func.func @transform_1(%arg0: i32) -> (i32, i32, i32) {
    %c0_i32 = arith.constant 0 : i32
    %c0_i32_0 = arith.constant 0 : i32
    %c0_i32_1 = arith.constant 0 : i32
    return %arg0, %c0_i32, %c0_i32_0 : i32, i32, i32
  }
  func.func @transform_2(%arg0: i32) -> (i32, i32, i32) {
    %c0_i32 = arith.constant 0 : i32
    %c0_i32_0 = arith.constant 0 : i32
    %c0_i32_1 = arith.constant 0 : i32
    %c0_i32_2 = arith.constant 0 : i32
    return %c0_i32, %c0_i32_0, %c0_i32_1 : i32, i32, i32
  }
  func.func @transform_3(%arg0: i32) -> (i32, i32, i32) {
    %c0_i32 = arith.constant 0 : i32
    %c0_i32_0 = arith.constant 0 : i32
    %c0_i32_1 = arith.constant 0 : i32
    %c0_i32_2 = arith.constant 0 : i32
    return %c0_i32, %c0_i32_0, %c0_i32_1 : i32, i32, i32
  }
  func.func @transform_4(%arg0: i32) -> (i32, i32) {
    %c0_i32 = arith.constant 0 : i32
    %c0_i32_0 = arith.constant 0 : i32
    %c0_i32_1 = arith.constant 0 : i32
    return %c0_i32, %c0_i32_0 : i32, i32
  }
  func.func @transform_5(%arg0: i32) -> (i32, i32) {
    %c0_i32 = arith.constant 0 : i32
    %c0_i32_0 = arith.constant 0 : i32
    %c0_i32_1 = arith.constant 0 : i32
    return %c0_i32, %c0_i32_0 : i32, i32
  }
  func.func @transform_6(%arg0: i32) -> (i32, i32, i32) {
    %c0_i32 = arith.constant 0 : i32
    %c0_i32_0 = arith.constant 0 : i32
    %c0_i32_1 = arith.constant 0 : i32
    return %arg0, %c0_i32, %c0_i32_0 : i32, i32, i32
  }
}

module attributes {stable_mosaic.version = 11 : i64} {
  func.func @kernel(%arg0: i32, %arg1: memref<1x4x256xf32, #tpu.memory_space<vmem>>, %arg2: memref<1x1x256xf32, #tpu.memory_space<vmem>>, %arg3: memref<9x8x4xf32, #tpu.memory_space<vmem>>, %arg4: memref<9x8x8xf32, #tpu.memory_space<vmem>>, %arg5: memref<8x7xf32, #tpu.memory_space<vmem>>, %arg6: memref<8x8xf32, #tpu.memory_space<vmem>>, %arg7: memref<8x4xf32, #tpu.memory_space<vmem>>, %arg8: memref<1x8x256xf32, #tpu.memory_space<vmem>>) attributes {dimension_semantics = [#tpu.dimension_semantics<parallel>], iteration_bounds = array<i64: 2>, scalar_prefetch = 0 : i64, scratch_operands = 0 : i64, tpu.core_type = #tpu.core_type<tc>, window_params = [{transform_indices = @transform_0, window_bounds = array<i64: 1, 4, 256>}, {transform_indices = @transform_1, window_bounds = array<i64: 1, 1, 256>}, {pipeline_mode = #tpu.pipeline_mode<synchronous>, transform_indices = @transform_2, window_bounds = array<i64: 9, 8, 4>}, {pipeline_mode = #tpu.pipeline_mode<synchronous>, transform_indices = @transform_3, window_bounds = array<i64: 9, 8, 8>}, {pipeline_mode = #tpu.pipeline_mode<synchronous>, transform_indices = @transform_4, window_bounds = array<i64: 8, 7>}, {pipeline_mode = #tpu.pipeline_mode<synchronous>, transform_indices = @transform_5, window_bounds = array<i64: 8, 8>}, {pipeline_mode = #tpu.pipeline_mode<synchronous>, transform_indices = @transform_6, window_bounds = array<i64: 8, 4>}, {transform_indices = @transform_7, window_bounds = array<i64: 1, 8, 256>}]} {
    %0 = tpu.iota {dimensions = array<i32: 1>} : vector<1x256xi32>
    %c16_i32 = arith.constant 16 : i32
    %c0_i32 = arith.constant 0 : i32
    %1 = arith.cmpi eq, %c16_i32, %c0_i32 : i32
    %c1_i32 = arith.constant 1 : i32
    %2 = arith.select %1, %c1_i32, %c16_i32 : i32
    %3 = vector.broadcast %2 : i32 to vector<1x256xi32>
    %4 = arith.remsi %0, %3 : vector<1x256xi32>
    %c0_i32_0 = arith.constant 0 : i32
    %5 = vector.broadcast %c0_i32_0 : i32 to vector<1x256xi32>
    %6 = arith.cmpi ne, %4, %5 : vector<1x256xi32>
    %c0_i32_1 = arith.constant 0 : i32
    %7 = vector.broadcast %c0_i32_1 : i32 to vector<1x256xi32>
    %8 = arith.cmpi slt, %4, %7 : vector<1x256xi32>
    %c0_i32_2 = arith.constant 0 : i32
    %9 = arith.cmpi slt, %2, %c0_i32_2 : i32
    %10 = vector.broadcast %9 : i1 to vector<1x256xi1>
    %11 = vector.broadcast %10 : vector<1x256xi1> to vector<1x256xi1>
    %12 = arith.xori %8, %11 : vector<1x256xi1>
    %13 = arith.andi %12, %6 : vector<1x256xi1>
    %14 = vector.broadcast %2 : i32 to vector<1x256xi32>
    %15 = arith.addi %4, %14 : vector<1x256xi32>
    %16 = arith.select %13, %15, %4 : vector<1x256xi1>, vector<1x256xi32>
    %c0 = arith.constant 0 : index
    %c0_3 = arith.constant 0 : index
    %c0_4 = arith.constant 0 : index
    %17 = vector.load %arg1[%c0, %c0_3, %c0_4] : memref<1x4x256xf32, #tpu.memory_space<vmem>>, vector<1x4x256xf32>
    %18 = vector.shape_cast %17 : vector<1x4x256xf32> to vector<4x256xf32>
    %c0_5 = arith.constant 0 : index
    %c0_6 = arith.constant 0 : index
    %19 = vector.load %arg6[%c0_5, %c0_6] : memref<8x8xf32, #tpu.memory_space<vmem>>, vector<8x8xf32>
    %c0_7 = arith.constant 0 : index
    %c0_8 = arith.constant 0 : index
    %20 = vector.load %arg5[%c0_7, %c0_8] : memref<8x7xf32, #tpu.memory_space<vmem>>, vector<8x1xf32>
    %c0_9 = arith.constant 0 : index
    %c1 = arith.constant 1 : index
    %21 = vector.load %arg5[%c0_9, %c1] : memref<8x7xf32, #tpu.memory_space<vmem>>, vector<8x1xf32>
    %c0_10 = arith.constant 0 : index
    %c2 = arith.constant 2 : index
    %22 = vector.load %arg5[%c0_10, %c2] : memref<8x7xf32, #tpu.memory_space<vmem>>, vector<8x1xf32>
    %c0_11 = arith.constant 0 : index
    %c3 = arith.constant 3 : index
    %23 = vector.load %arg5[%c0_11, %c3] : memref<8x7xf32, #tpu.memory_space<vmem>>, vector<8x1xf32>
    %c0_12 = arith.constant 0 : index
    %c4 = arith.constant 4 : index
    %24 = vector.load %arg5[%c0_12, %c4] : memref<8x7xf32, #tpu.memory_space<vmem>>, vector<8x1xf32>
    %c0_13 = arith.constant 0 : index
    %c5 = arith.constant 5 : index
    %25 = vector.load %arg5[%c0_13, %c5] : memref<8x7xf32, #tpu.memory_space<vmem>>, vector<8x1xf32>
    %c0_14 = arith.constant 0 : index
    %c0_15 = arith.constant 0 : index
    %26 = vector.load %arg7[%c0_14, %c0_15] : memref<8x4xf32, #tpu.memory_space<vmem>>, vector<8x4xf32>
    %cst = arith.constant dense<0.000000e+00> : vector<8x256xf32>
    %27 = tpu.matmul %26, %18, %cst {dimension_numbers = #tpu.dot_dimension_numbers<[1], [0], [0], [1], [0, 0, 1, 1], [], []>} : vector<8x4xf32>, vector<4x256xf32>, vector<8x256xf32> -> vector<8x256xf32>
    %c0_16 = arith.constant 0 : index
    %c6 = arith.constant 6 : index
    %28 = vector.load %arg5[%c0_16, %c6] : memref<8x7xf32, #tpu.memory_space<vmem>>, vector<8x1xf32>
    %29 = vector.broadcast %28 : vector<8x1xf32> to vector<8x256xf32>
    %30 = arith.addf %27, %29 : vector<8x256xf32>
    %cst_17 = arith.constant 0.000000e+00 : f32
    %31 = vector.broadcast %cst_17 : f32 to vector<8x256xf32>
    %cst_18 = arith.constant 0.000000e+00 : f32
    %32 = vector.broadcast %cst_18 : f32 to vector<4x17xf32>
    %33 = vector.extract_strided_slice %18 {offsets = [0, 0], sizes = [4, 239], strides = [1, 1]} : vector<4x256xf32> to vector<4x239xf32>
    %34 = tpu.concatenate %32, %33 in 1 : vector<4x17xf32>, vector<4x239xf32> -> vector<4x256xf32>
    %c-1_i32 = arith.constant -1 : i32
    %35 = vector.broadcast %c-1_i32 : i32 to vector<1x256xi32>
    %36 = arith.addi %16, %35 : vector<1x256xi32>
    %c0_i32_19 = arith.constant 0 : i32
    %37 = vector.broadcast %c0_i32_19 : i32 to vector<1x256xi32>
    %38 = arith.cmpi sge, %36, %37 : vector<1x256xi32>
    %c-1_i32_20 = arith.constant -1 : i32
    %39 = vector.broadcast %c-1_i32_20 : i32 to vector<1x256xi32>
    %40 = arith.addi %16, %39 : vector<1x256xi32>
    %c16_i32_21 = arith.constant 16 : i32
    %41 = vector.broadcast %c16_i32_21 : i32 to vector<1x256xi32>
    %42 = arith.cmpi slt, %40, %41 : vector<1x256xi32>
    %43 = arith.andi %38, %42 : vector<1x256xi1>
    %cst_22 = arith.constant 0.000000e+00 : f32
    %44 = vector.shape_cast %43 : vector<1x256xi1> to vector<1x256xi1>
    %45 = vector.broadcast %44 : vector<1x256xi1> to vector<4x256xi1>
    %46 = vector.broadcast %cst_22 : f32 to vector<4x256xf32>
    %47 = arith.select %45, %34, %46 : vector<4x256xi1>, vector<4x256xf32>
    %c0_23 = arith.constant 0 : index
    %c0_24 = arith.constant 0 : index
    %c0_25 = arith.constant 0 : index
    %48 = vector.load %arg3[%c0_23, %c0_24, %c0_25] : memref<9x8x4xf32, #tpu.memory_space<vmem>>, vector<1x8x4xf32>
    %49 = vector.shape_cast %48 : vector<1x8x4xf32> to vector<8x4xf32>
    %cst_26 = arith.constant dense<0.000000e+00> : vector<8x256xf32>
    %50 = tpu.matmul %49, %47, %cst_26 {dimension_numbers = #tpu.dot_dimension_numbers<[1], [0], [0], [1], [0, 0, 1, 1], [], []>} : vector<8x4xf32>, vector<4x256xf32>, vector<8x256xf32> -> vector<8x256xf32>
    %51 = arith.addf %31, %50 : vector<8x256xf32>
    %cst_27 = arith.constant 0.000000e+00 : f32
    %52 = vector.broadcast %cst_27 : f32 to vector<4x16xf32>
    %53 = vector.extract_strided_slice %18 {offsets = [0, 0], sizes = [4, 240], strides = [1, 1]} : vector<4x256xf32> to vector<4x240xf32>
    %54 = tpu.concatenate %52, %53 in 1 : vector<4x16xf32>, vector<4x240xf32> -> vector<4x256xf32>
    %c1_28 = arith.constant 1 : index
    %c0_29 = arith.constant 0 : index
    %c0_30 = arith.constant 0 : index
    %55 = vector.load %arg3[%c1_28, %c0_29, %c0_30] : memref<9x8x4xf32, #tpu.memory_space<vmem>>, vector<1x8x4xf32>
    %56 = vector.shape_cast %55 : vector<1x8x4xf32> to vector<8x4xf32>
    %cst_31 = arith.constant dense<0.000000e+00> : vector<8x256xf32>
    %57 = tpu.matmul %56, %54, %cst_31 {dimension_numbers = #tpu.dot_dimension_numbers<[1], [0], [0], [1], [0, 0, 1, 1], [], []>} : vector<8x4xf32>, vector<4x256xf32>, vector<8x256xf32> -> vector<8x256xf32>
    %58 = arith.addf %51, %57 : vector<8x256xf32>
    %cst_32 = arith.constant 0.000000e+00 : f32
    %59 = vector.broadcast %cst_32 : f32 to vector<4x15xf32>
    %60 = vector.extract_strided_slice %18 {offsets = [0, 0], sizes = [4, 241], strides = [1, 1]} : vector<4x256xf32> to vector<4x241xf32>
    %61 = tpu.concatenate %59, %60 in 1 : vector<4x15xf32>, vector<4x241xf32> -> vector<4x256xf32>
    %c1_i32_33 = arith.constant 1 : i32
    %62 = vector.broadcast %c1_i32_33 : i32 to vector<1x256xi32>
    %63 = arith.addi %16, %62 : vector<1x256xi32>
    %c0_i32_34 = arith.constant 0 : i32
    %64 = vector.broadcast %c0_i32_34 : i32 to vector<1x256xi32>
    %65 = arith.cmpi sge, %63, %64 : vector<1x256xi32>
    %c1_i32_35 = arith.constant 1 : i32
    %66 = vector.broadcast %c1_i32_35 : i32 to vector<1x256xi32>
    %67 = arith.addi %16, %66 : vector<1x256xi32>
    %c16_i32_36 = arith.constant 16 : i32
    %68 = vector.broadcast %c16_i32_36 : i32 to vector<1x256xi32>
    %69 = arith.cmpi slt, %67, %68 : vector<1x256xi32>
    %70 = arith.andi %65, %69 : vector<1x256xi1>
    %cst_37 = arith.constant 0.000000e+00 : f32
    %71 = vector.shape_cast %70 : vector<1x256xi1> to vector<1x256xi1>
    %72 = vector.broadcast %71 : vector<1x256xi1> to vector<4x256xi1>
    %73 = vector.broadcast %cst_37 : f32 to vector<4x256xf32>
    %74 = arith.select %72, %61, %73 : vector<4x256xi1>, vector<4x256xf32>
    %c2_38 = arith.constant 2 : index
    %c0_39 = arith.constant 0 : index
    %c0_40 = arith.constant 0 : index
    %75 = vector.load %arg3[%c2_38, %c0_39, %c0_40] : memref<9x8x4xf32, #tpu.memory_space<vmem>>, vector<1x8x4xf32>
    %76 = vector.shape_cast %75 : vector<1x8x4xf32> to vector<8x4xf32>
    %cst_41 = arith.constant dense<0.000000e+00> : vector<8x256xf32>
    %77 = tpu.matmul %76, %74, %cst_41 {dimension_numbers = #tpu.dot_dimension_numbers<[1], [0], [0], [1], [0, 0, 1, 1], [], []>} : vector<8x4xf32>, vector<4x256xf32>, vector<8x256xf32> -> vector<8x256xf32>
    %78 = arith.addf %58, %77 : vector<8x256xf32>
    %cst_42 = arith.constant 0.000000e+00 : f32
    %79 = vector.broadcast %cst_42 : f32 to vector<4x1xf32>
    %80 = vector.extract_strided_slice %18 {offsets = [0, 0], sizes = [4, 255], strides = [1, 1]} : vector<4x256xf32> to vector<4x255xf32>
    %81 = tpu.concatenate %79, %80 in 1 : vector<4x1xf32>, vector<4x255xf32> -> vector<4x256xf32>
    %c-1_i32_43 = arith.constant -1 : i32
    %82 = vector.broadcast %c-1_i32_43 : i32 to vector<1x256xi32>
    %83 = arith.addi %16, %82 : vector<1x256xi32>
    %c0_i32_44 = arith.constant 0 : i32
    %84 = vector.broadcast %c0_i32_44 : i32 to vector<1x256xi32>
    %85 = arith.cmpi sge, %83, %84 : vector<1x256xi32>
    %c-1_i32_45 = arith.constant -1 : i32
    %86 = vector.broadcast %c-1_i32_45 : i32 to vector<1x256xi32>
    %87 = arith.addi %16, %86 : vector<1x256xi32>
    %c16_i32_46 = arith.constant 16 : i32
    %88 = vector.broadcast %c16_i32_46 : i32 to vector<1x256xi32>
    %89 = arith.cmpi slt, %87, %88 : vector<1x256xi32>
    %90 = arith.andi %85, %89 : vector<1x256xi1>
    %cst_47 = arith.constant 0.000000e+00 : f32
    %91 = vector.shape_cast %90 : vector<1x256xi1> to vector<1x256xi1>
    %92 = vector.broadcast %91 : vector<1x256xi1> to vector<4x256xi1>
    %93 = vector.broadcast %cst_47 : f32 to vector<4x256xf32>
    %94 = arith.select %92, %81, %93 : vector<4x256xi1>, vector<4x256xf32>
    %c3_48 = arith.constant 3 : index
    %c0_49 = arith.constant 0 : index
    %c0_50 = arith.constant 0 : index
    %95 = vector.load %arg3[%c3_48, %c0_49, %c0_50] : memref<9x8x4xf32, #tpu.memory_space<vmem>>, vector<1x8x4xf32>
    %96 = vector.shape_cast %95 : vector<1x8x4xf32> to vector<8x4xf32>
    %cst_51 = arith.constant dense<0.000000e+00> : vector<8x256xf32>
    %97 = tpu.matmul %96, %94, %cst_51 {dimension_numbers = #tpu.dot_dimension_numbers<[1], [0], [0], [1], [0, 0, 1, 1], [], []>} : vector<8x4xf32>, vector<4x256xf32>, vector<8x256xf32> -> vector<8x256xf32>
    %98 = arith.addf %78, %97 : vector<8x256xf32>
    %c4_52 = arith.constant 4 : index
    %c0_53 = arith.constant 0 : index
    %c0_54 = arith.constant 0 : index
    %99 = vector.load %arg3[%c4_52, %c0_53, %c0_54] : memref<9x8x4xf32, #tpu.memory_space<vmem>>, vector<1x8x4xf32>
    %100 = vector.shape_cast %99 : vector<1x8x4xf32> to vector<8x4xf32>
    %cst_55 = arith.constant dense<0.000000e+00> : vector<8x256xf32>
    %101 = tpu.matmul %100, %18, %cst_55 {dimension_numbers = #tpu.dot_dimension_numbers<[1], [0], [0], [1], [0, 0, 1, 1], [], []>} : vector<8x4xf32>, vector<4x256xf32>, vector<8x256xf32> -> vector<8x256xf32>
    %102 = arith.addf %98, %101 : vector<8x256xf32>
    %103 = vector.extract_strided_slice %18 {offsets = [0, 1], sizes = [4, 255], strides = [1, 1]} : vector<4x256xf32> to vector<4x255xf32>
    %cst_56 = arith.constant 0.000000e+00 : f32
    %104 = vector.broadcast %cst_56 : f32 to vector<4x1xf32>
    %105 = tpu.concatenate %103, %104 in 1 : vector<4x255xf32>, vector<4x1xf32> -> vector<4x256xf32>
    %c1_i32_57 = arith.constant 1 : i32
    %106 = vector.broadcast %c1_i32_57 : i32 to vector<1x256xi32>
    %107 = arith.addi %16, %106 : vector<1x256xi32>
    %c0_i32_58 = arith.constant 0 : i32
    %108 = vector.broadcast %c0_i32_58 : i32 to vector<1x256xi32>
    %109 = arith.cmpi sge, %107, %108 : vector<1x256xi32>
    %c1_i32_59 = arith.constant 1 : i32
    %110 = vector.broadcast %c1_i32_59 : i32 to vector<1x256xi32>
    %111 = arith.addi %16, %110 : vector<1x256xi32>
    %c16_i32_60 = arith.constant 16 : i32
    %112 = vector.broadcast %c16_i32_60 : i32 to vector<1x256xi32>
    %113 = arith.cmpi slt, %111, %112 : vector<1x256xi32>
    %114 = arith.andi %109, %113 : vector<1x256xi1>
    %cst_61 = arith.constant 0.000000e+00 : f32
    %115 = vector.shape_cast %114 : vector<1x256xi1> to vector<1x256xi1>
    %116 = vector.broadcast %115 : vector<1x256xi1> to vector<4x256xi1>
    %117 = vector.broadcast %cst_61 : f32 to vector<4x256xf32>
    %118 = arith.select %116, %105, %117 : vector<4x256xi1>, vector<4x256xf32>
    %c5_62 = arith.constant 5 : index
    %c0_63 = arith.constant 0 : index
    %c0_64 = arith.constant 0 : index
    %119 = vector.load %arg3[%c5_62, %c0_63, %c0_64] : memref<9x8x4xf32, #tpu.memory_space<vmem>>, vector<1x8x4xf32>
    %120 = vector.shape_cast %119 : vector<1x8x4xf32> to vector<8x4xf32>
    %cst_65 = arith.constant dense<0.000000e+00> : vector<8x256xf32>
    %121 = tpu.matmul %120, %118, %cst_65 {dimension_numbers = #tpu.dot_dimension_numbers<[1], [0], [0], [1], [0, 0, 1, 1], [], []>} : vector<8x4xf32>, vector<4x256xf32>, vector<8x256xf32> -> vector<8x256xf32>
    %122 = arith.addf %102, %121 : vector<8x256xf32>
    %123 = vector.extract_strided_slice %18 {offsets = [0, 15], sizes = [4, 241], strides = [1, 1]} : vector<4x256xf32> to vector<4x241xf32>
    %cst_66 = arith.constant 0.000000e+00 : f32
    %124 = vector.broadcast %cst_66 : f32 to vector<4x15xf32>
    %125 = tpu.concatenate %123, %124 in 1 : vector<4x241xf32>, vector<4x15xf32> -> vector<4x256xf32>
    %c-1_i32_67 = arith.constant -1 : i32
    %126 = vector.broadcast %c-1_i32_67 : i32 to vector<1x256xi32>
    %127 = arith.addi %16, %126 : vector<1x256xi32>
    %c0_i32_68 = arith.constant 0 : i32
    %128 = vector.broadcast %c0_i32_68 : i32 to vector<1x256xi32>
    %129 = arith.cmpi sge, %127, %128 : vector<1x256xi32>
    %c-1_i32_69 = arith.constant -1 : i32
    %130 = vector.broadcast %c-1_i32_69 : i32 to vector<1x256xi32>
    %131 = arith.addi %16, %130 : vector<1x256xi32>
    %c16_i32_70 = arith.constant 16 : i32
    %132 = vector.broadcast %c16_i32_70 : i32 to vector<1x256xi32>
    %133 = arith.cmpi slt, %131, %132 : vector<1x256xi32>
    %134 = arith.andi %129, %133 : vector<1x256xi1>
    %cst_71 = arith.constant 0.000000e+00 : f32
    %135 = vector.shape_cast %134 : vector<1x256xi1> to vector<1x256xi1>
    %136 = vector.broadcast %135 : vector<1x256xi1> to vector<4x256xi1>
    %137 = vector.broadcast %cst_71 : f32 to vector<4x256xf32>
    %138 = arith.select %136, %125, %137 : vector<4x256xi1>, vector<4x256xf32>
    %c6_72 = arith.constant 6 : index
    %c0_73 = arith.constant 0 : index
    %c0_74 = arith.constant 0 : index
    %139 = vector.load %arg3[%c6_72, %c0_73, %c0_74] : memref<9x8x4xf32, #tpu.memory_space<vmem>>, vector<1x8x4xf32>
    %140 = vector.shape_cast %139 : vector<1x8x4xf32> to vector<8x4xf32>
    %cst_75 = arith.constant dense<0.000000e+00> : vector<8x256xf32>
    %141 = tpu.matmul %140, %138, %cst_75 {dimension_numbers = #tpu.dot_dimension_numbers<[1], [0], [0], [1], [0, 0, 1, 1], [], []>} : vector<8x4xf32>, vector<4x256xf32>, vector<8x256xf32> -> vector<8x256xf32>
    %142 = arith.addf %122, %141 : vector<8x256xf32>
    %143 = vector.extract_strided_slice %18 {offsets = [0, 16], sizes = [4, 240], strides = [1, 1]} : vector<4x256xf32> to vector<4x240xf32>
    %cst_76 = arith.constant 0.000000e+00 : f32
    %144 = vector.broadcast %cst_76 : f32 to vector<4x16xf32>
    %145 = tpu.concatenate %143, %144 in 1 : vector<4x240xf32>, vector<4x16xf32> -> vector<4x256xf32>
    %c7 = arith.constant 7 : index
    %c0_77 = arith.constant 0 : index
    %c0_78 = arith.constant 0 : index
    %146 = vector.load %arg3[%c7, %c0_77, %c0_78] : memref<9x8x4xf32, #tpu.memory_space<vmem>>, vector<1x8x4xf32>
    %147 = vector.shape_cast %146 : vector<1x8x4xf32> to vector<8x4xf32>
    %cst_79 = arith.constant dense<0.000000e+00> : vector<8x256xf32>
    %148 = tpu.matmul %147, %145, %cst_79 {dimension_numbers = #tpu.dot_dimension_numbers<[1], [0], [0], [1], [0, 0, 1, 1], [], []>} : vector<8x4xf32>, vector<4x256xf32>, vector<8x256xf32> -> vector<8x256xf32>
    %149 = arith.addf %142, %148 : vector<8x256xf32>
    %150 = vector.extract_strided_slice %18 {offsets = [0, 17], sizes = [4, 239], strides = [1, 1]} : vector<4x256xf32> to vector<4x239xf32>
    %cst_80 = arith.constant 0.000000e+00 : f32
    %151 = vector.broadcast %cst_80 : f32 to vector<4x17xf32>
    %152 = tpu.concatenate %150, %151 in 1 : vector<4x239xf32>, vector<4x17xf32> -> vector<4x256xf32>
    %c1_i32_81 = arith.constant 1 : i32
    %153 = vector.broadcast %c1_i32_81 : i32 to vector<1x256xi32>
    %154 = arith.addi %16, %153 : vector<1x256xi32>
    %c0_i32_82 = arith.constant 0 : i32
    %155 = vector.broadcast %c0_i32_82 : i32 to vector<1x256xi32>
    %156 = arith.cmpi sge, %154, %155 : vector<1x256xi32>
    %c1_i32_83 = arith.constant 1 : i32
    %157 = vector.broadcast %c1_i32_83 : i32 to vector<1x256xi32>
    %158 = arith.addi %16, %157 : vector<1x256xi32>
    %c16_i32_84 = arith.constant 16 : i32
    %159 = vector.broadcast %c16_i32_84 : i32 to vector<1x256xi32>
    %160 = arith.cmpi slt, %158, %159 : vector<1x256xi32>
    %161 = arith.andi %156, %160 : vector<1x256xi1>
    %cst_85 = arith.constant 0.000000e+00 : f32
    %162 = vector.shape_cast %161 : vector<1x256xi1> to vector<1x256xi1>
    %163 = vector.broadcast %162 : vector<1x256xi1> to vector<4x256xi1>
    %164 = vector.broadcast %cst_85 : f32 to vector<4x256xf32>
    %165 = arith.select %163, %152, %164 : vector<4x256xi1>, vector<4x256xf32>
    %c8 = arith.constant 8 : index
    %c0_86 = arith.constant 0 : index
    %c0_87 = arith.constant 0 : index
    %166 = vector.load %arg3[%c8, %c0_86, %c0_87] : memref<9x8x4xf32, #tpu.memory_space<vmem>>, vector<1x8x4xf32>
    %167 = vector.shape_cast %166 : vector<1x8x4xf32> to vector<8x4xf32>
    %cst_88 = arith.constant dense<0.000000e+00> : vector<8x256xf32>
    %168 = tpu.matmul %167, %165, %cst_88 {dimension_numbers = #tpu.dot_dimension_numbers<[1], [0], [0], [1], [0, 0, 1, 1], [], []>} : vector<8x4xf32>, vector<4x256xf32>, vector<8x256xf32> -> vector<8x256xf32>
    %169 = arith.addf %149, %168 : vector<8x256xf32>
    %170 = vector.broadcast %20 : vector<8x1xf32> to vector<8x256xf32>
    %171 = arith.addf %169, %170 : vector<8x256xf32>
    %cst_89 = arith.constant dense<0.000000e+00> : vector<8x256xf32>
    %172 = tpu.matmul %19, %171, %cst_89 {dimension_numbers = #tpu.dot_dimension_numbers<[1], [0], [0], [1], [0, 0, 1, 1], [], []>} : vector<8x8xf32>, vector<8x256xf32>, vector<8x256xf32> -> vector<8x256xf32>
    %cst_90 = arith.constant dense<0.000000e+00> : vector<8xf32>
    %173 = vector.multi_reduction <add>, %172, %cst_90 [1] : vector<8x256xf32> to vector<8xf32>
    %174 = vector.shape_cast %173 : vector<8xf32> to vector<8x1xf32>
    %cst_91 = arith.constant 2.560000e+02 : f32
    %175 = vector.broadcast %cst_91 : f32 to vector<8x1xf32>
    %176 = arith.divf %174, %175 : vector<8x1xf32>
    %177 = vector.broadcast %176 : vector<8x1xf32> to vector<8x256xf32>
    %178 = arith.subf %171, %177 : vector<8x256xf32>
    %179 = arith.mulf %178, %178 : vector<8x256xf32>
    %cst_92 = arith.constant dense<0.000000e+00> : vector<8x256xf32>
    %180 = tpu.matmul %19, %179, %cst_92 {dimension_numbers = #tpu.dot_dimension_numbers<[1], [0], [0], [1], [0, 0, 1, 1], [], []>} : vector<8x8xf32>, vector<8x256xf32>, vector<8x256xf32> -> vector<8x256xf32>
    %cst_93 = arith.constant dense<0.000000e+00> : vector<8xf32>
    %181 = vector.multi_reduction <add>, %180, %cst_93 [1] : vector<8x256xf32> to vector<8xf32>
    %182 = vector.shape_cast %181 : vector<8xf32> to vector<8x1xf32>
    %cst_94 = arith.constant 2.560000e+02 : f32
    %183 = vector.broadcast %cst_94 : f32 to vector<8x1xf32>
    %184 = arith.divf %182, %183 : vector<8x1xf32>
    %cst_95 = arith.constant 9.99999974E-6 : f32
    %185 = vector.broadcast %cst_95 : f32 to vector<8x1xf32>
    %186 = arith.addf %184, %185 : vector<8x1xf32>
    %187 = math.rsqrt %186 : vector<8x1xf32>
    %188 = vector.broadcast %187 : vector<8x1xf32> to vector<8x256xf32>
    %189 = arith.mulf %178, %188 : vector<8x256xf32>
    %190 = vector.broadcast %21 : vector<8x1xf32> to vector<8x256xf32>
    %191 = arith.mulf %189, %190 : vector<8x256xf32>
    %192 = vector.broadcast %22 : vector<8x1xf32> to vector<8x256xf32>
    %193 = arith.addf %191, %192 : vector<8x256xf32>
    %194 = arith.negf %193 : vector<8x256xf32>
    %195 = math.exp %194 : vector<8x256xf32>
    %cst_96 = arith.constant 1.000000e+00 : f32
    %196 = vector.broadcast %cst_96 : f32 to vector<8x256xf32>
    %197 = arith.addf %196, %195 : vector<8x256xf32>
    %198 = arith.divf %196, %197 : vector<8x256xf32>
    %199 = arith.mulf %193, %198 : vector<8x256xf32>
    %c0_97 = arith.constant 0 : index
    %c0_98 = arith.constant 0 : index
    %c0_99 = arith.constant 0 : index
    %200 = vector.load %arg2[%c0_97, %c0_98, %c0_99] : memref<1x1x256xf32, #tpu.memory_space<vmem>>, vector<1x1x256xf32>
    %201 = vector.shape_cast %200 : vector<1x1x256xf32> to vector<1x256xf32>
    %202 = vector.broadcast %201 : vector<1x256xf32> to vector<8x256xf32>
    %203 = arith.addf %199, %202 : vector<8x256xf32>
    %204 = arith.negf %203 : vector<8x256xf32>
    %205 = math.exp %204 : vector<8x256xf32>
    %cst_100 = arith.constant 1.000000e+00 : f32
    %206 = vector.broadcast %cst_100 : f32 to vector<8x256xf32>
    %207 = arith.addf %206, %205 : vector<8x256xf32>
    %208 = arith.divf %206, %207 : vector<8x256xf32>
    %209 = arith.mulf %203, %208 : vector<8x256xf32>
    %cst_101 = arith.constant 0.000000e+00 : f32
    %210 = vector.broadcast %cst_101 : f32 to vector<8x256xf32>
    %cst_102 = arith.constant 0.000000e+00 : f32
    %211 = vector.broadcast %cst_102 : f32 to vector<8x17xf32>
    %212 = vector.extract_strided_slice %209 {offsets = [0, 0], sizes = [8, 239], strides = [1, 1]} : vector<8x256xf32> to vector<8x239xf32>
    %213 = tpu.concatenate %211, %212 in 1 : vector<8x17xf32>, vector<8x239xf32> -> vector<8x256xf32>
    %c-1_i32_103 = arith.constant -1 : i32
    %214 = vector.broadcast %c-1_i32_103 : i32 to vector<1x256xi32>
    %215 = arith.addi %16, %214 : vector<1x256xi32>
    %c0_i32_104 = arith.constant 0 : i32
    %216 = vector.broadcast %c0_i32_104 : i32 to vector<1x256xi32>
    %217 = arith.cmpi sge, %215, %216 : vector<1x256xi32>
    %c-1_i32_105 = arith.constant -1 : i32
    %218 = vector.broadcast %c-1_i32_105 : i32 to vector<1x256xi32>
    %219 = arith.addi %16, %218 : vector<1x256xi32>
    %c16_i32_106 = arith.constant 16 : i32
    %220 = vector.broadcast %c16_i32_106 : i32 to vector<1x256xi32>
    %221 = arith.cmpi slt, %219, %220 : vector<1x256xi32>
    %222 = arith.andi %217, %221 : vector<1x256xi1>
    %cst_107 = arith.constant 0.000000e+00 : f32
    %223 = vector.shape_cast %222 : vector<1x256xi1> to vector<1x256xi1>
    %224 = vector.broadcast %223 : vector<1x256xi1> to vector<8x256xi1>
    %225 = vector.broadcast %cst_107 : f32 to vector<8x256xf32>
    %226 = arith.select %224, %213, %225 : vector<8x256xi1>, vector<8x256xf32>
    %c0_108 = arith.constant 0 : index
    %c0_109 = arith.constant 0 : index
    %c0_110 = arith.constant 0 : index
    %227 = vector.load %arg4[%c0_108, %c0_109, %c0_110] : memref<9x8x8xf32, #tpu.memory_space<vmem>>, vector<1x8x8xf32>
    %228 = vector.shape_cast %227 : vector<1x8x8xf32> to vector<8x8xf32>
    %cst_111 = arith.constant dense<0.000000e+00> : vector<8x256xf32>
    %229 = tpu.matmul %228, %226, %cst_111 {dimension_numbers = #tpu.dot_dimension_numbers<[1], [0], [0], [1], [0, 0, 1, 1], [], []>} : vector<8x8xf32>, vector<8x256xf32>, vector<8x256xf32> -> vector<8x256xf32>
    %230 = arith.addf %210, %229 : vector<8x256xf32>
    %cst_112 = arith.constant 0.000000e+00 : f32
    %231 = vector.broadcast %cst_112 : f32 to vector<8x16xf32>
    %232 = vector.extract_strided_slice %209 {offsets = [0, 0], sizes = [8, 240], strides = [1, 1]} : vector<8x256xf32> to vector<8x240xf32>
    %233 = tpu.concatenate %231, %232 in 1 : vector<8x16xf32>, vector<8x240xf32> -> vector<8x256xf32>
    %c1_113 = arith.constant 1 : index
    %c0_114 = arith.constant 0 : index
    %c0_115 = arith.constant 0 : index
    %234 = vector.load %arg4[%c1_113, %c0_114, %c0_115] : memref<9x8x8xf32, #tpu.memory_space<vmem>>, vector<1x8x8xf32>
    %235 = vector.shape_cast %234 : vector<1x8x8xf32> to vector<8x8xf32>
    %cst_116 = arith.constant dense<0.000000e+00> : vector<8x256xf32>
    %236 = tpu.matmul %235, %233, %cst_116 {dimension_numbers = #tpu.dot_dimension_numbers<[1], [0], [0], [1], [0, 0, 1, 1], [], []>} : vector<8x8xf32>, vector<8x256xf32>, vector<8x256xf32> -> vector<8x256xf32>
    %237 = arith.addf %230, %236 : vector<8x256xf32>
    %cst_117 = arith.constant 0.000000e+00 : f32
    %238 = vector.broadcast %cst_117 : f32 to vector<8x15xf32>
    %239 = vector.extract_strided_slice %209 {offsets = [0, 0], sizes = [8, 241], strides = [1, 1]} : vector<8x256xf32> to vector<8x241xf32>
    %240 = tpu.concatenate %238, %239 in 1 : vector<8x15xf32>, vector<8x241xf32> -> vector<8x256xf32>
    %c1_i32_118 = arith.constant 1 : i32
    %241 = vector.broadcast %c1_i32_118 : i32 to vector<1x256xi32>
    %242 = arith.addi %16, %241 : vector<1x256xi32>
    %c0_i32_119 = arith.constant 0 : i32
    %243 = vector.broadcast %c0_i32_119 : i32 to vector<1x256xi32>
    %244 = arith.cmpi sge, %242, %243 : vector<1x256xi32>
    %c1_i32_120 = arith.constant 1 : i32
    %245 = vector.broadcast %c1_i32_120 : i32 to vector<1x256xi32>
    %246 = arith.addi %16, %245 : vector<1x256xi32>
    %c16_i32_121 = arith.constant 16 : i32
    %247 = vector.broadcast %c16_i32_121 : i32 to vector<1x256xi32>
    %248 = arith.cmpi slt, %246, %247 : vector<1x256xi32>
    %249 = arith.andi %244, %248 : vector<1x256xi1>
    %cst_122 = arith.constant 0.000000e+00 : f32
    %250 = vector.shape_cast %249 : vector<1x256xi1> to vector<1x256xi1>
    %251 = vector.broadcast %250 : vector<1x256xi1> to vector<8x256xi1>
    %252 = vector.broadcast %cst_122 : f32 to vector<8x256xf32>
    %253 = arith.select %251, %240, %252 : vector<8x256xi1>, vector<8x256xf32>
    %c2_123 = arith.constant 2 : index
    %c0_124 = arith.constant 0 : index
    %c0_125 = arith.constant 0 : index
    %254 = vector.load %arg4[%c2_123, %c0_124, %c0_125] : memref<9x8x8xf32, #tpu.memory_space<vmem>>, vector<1x8x8xf32>
    %255 = vector.shape_cast %254 : vector<1x8x8xf32> to vector<8x8xf32>
    %cst_126 = arith.constant dense<0.000000e+00> : vector<8x256xf32>
    %256 = tpu.matmul %255, %253, %cst_126 {dimension_numbers = #tpu.dot_dimension_numbers<[1], [0], [0], [1], [0, 0, 1, 1], [], []>} : vector<8x8xf32>, vector<8x256xf32>, vector<8x256xf32> -> vector<8x256xf32>
    %257 = arith.addf %237, %256 : vector<8x256xf32>
    %cst_127 = arith.constant 0.000000e+00 : f32
    %258 = vector.broadcast %cst_127 : f32 to vector<8x1xf32>
    %259 = vector.extract_strided_slice %209 {offsets = [0, 0], sizes = [8, 255], strides = [1, 1]} : vector<8x256xf32> to vector<8x255xf32>
    %260 = tpu.concatenate %258, %259 in 1 : vector<8x1xf32>, vector<8x255xf32> -> vector<8x256xf32>
    %c-1_i32_128 = arith.constant -1 : i32
    %261 = vector.broadcast %c-1_i32_128 : i32 to vector<1x256xi32>
    %262 = arith.addi %16, %261 : vector<1x256xi32>
    %c0_i32_129 = arith.constant 0 : i32
    %263 = vector.broadcast %c0_i32_129 : i32 to vector<1x256xi32>
    %264 = arith.cmpi sge, %262, %263 : vector<1x256xi32>
    %c-1_i32_130 = arith.constant -1 : i32
    %265 = vector.broadcast %c-1_i32_130 : i32 to vector<1x256xi32>
    %266 = arith.addi %16, %265 : vector<1x256xi32>
    %c16_i32_131 = arith.constant 16 : i32
    %267 = vector.broadcast %c16_i32_131 : i32 to vector<1x256xi32>
    %268 = arith.cmpi slt, %266, %267 : vector<1x256xi32>
    %269 = arith.andi %264, %268 : vector<1x256xi1>
    %cst_132 = arith.constant 0.000000e+00 : f32
    %270 = vector.shape_cast %269 : vector<1x256xi1> to vector<1x256xi1>
    %271 = vector.broadcast %270 : vector<1x256xi1> to vector<8x256xi1>
    %272 = vector.broadcast %cst_132 : f32 to vector<8x256xf32>
    %273 = arith.select %271, %260, %272 : vector<8x256xi1>, vector<8x256xf32>
    %c3_133 = arith.constant 3 : index
    %c0_134 = arith.constant 0 : index
    %c0_135 = arith.constant 0 : index
    %274 = vector.load %arg4[%c3_133, %c0_134, %c0_135] : memref<9x8x8xf32, #tpu.memory_space<vmem>>, vector<1x8x8xf32>
    %275 = vector.shape_cast %274 : vector<1x8x8xf32> to vector<8x8xf32>
    %cst_136 = arith.constant dense<0.000000e+00> : vector<8x256xf32>
    %276 = tpu.matmul %275, %273, %cst_136 {dimension_numbers = #tpu.dot_dimension_numbers<[1], [0], [0], [1], [0, 0, 1, 1], [], []>} : vector<8x8xf32>, vector<8x256xf32>, vector<8x256xf32> -> vector<8x256xf32>
    %277 = arith.addf %257, %276 : vector<8x256xf32>
    %c4_137 = arith.constant 4 : index
    %c0_138 = arith.constant 0 : index
    %c0_139 = arith.constant 0 : index
    %278 = vector.load %arg4[%c4_137, %c0_138, %c0_139] : memref<9x8x8xf32, #tpu.memory_space<vmem>>, vector<1x8x8xf32>
    %279 = vector.shape_cast %278 : vector<1x8x8xf32> to vector<8x8xf32>
    %cst_140 = arith.constant dense<0.000000e+00> : vector<8x256xf32>
    %280 = tpu.matmul %279, %209, %cst_140 {dimension_numbers = #tpu.dot_dimension_numbers<[1], [0], [0], [1], [0, 0, 1, 1], [], []>} : vector<8x8xf32>, vector<8x256xf32>, vector<8x256xf32> -> vector<8x256xf32>
    %281 = arith.addf %277, %280 : vector<8x256xf32>
    %282 = vector.extract_strided_slice %209 {offsets = [0, 1], sizes = [8, 255], strides = [1, 1]} : vector<8x256xf32> to vector<8x255xf32>
    %cst_141 = arith.constant 0.000000e+00 : f32
    %283 = vector.broadcast %cst_141 : f32 to vector<8x1xf32>
    %284 = tpu.concatenate %282, %283 in 1 : vector<8x255xf32>, vector<8x1xf32> -> vector<8x256xf32>
    %c1_i32_142 = arith.constant 1 : i32
    %285 = vector.broadcast %c1_i32_142 : i32 to vector<1x256xi32>
    %286 = arith.addi %16, %285 : vector<1x256xi32>
    %c0_i32_143 = arith.constant 0 : i32
    %287 = vector.broadcast %c0_i32_143 : i32 to vector<1x256xi32>
    %288 = arith.cmpi sge, %286, %287 : vector<1x256xi32>
    %c1_i32_144 = arith.constant 1 : i32
    %289 = vector.broadcast %c1_i32_144 : i32 to vector<1x256xi32>
    %290 = arith.addi %16, %289 : vector<1x256xi32>
    %c16_i32_145 = arith.constant 16 : i32
    %291 = vector.broadcast %c16_i32_145 : i32 to vector<1x256xi32>
    %292 = arith.cmpi slt, %290, %291 : vector<1x256xi32>
    %293 = arith.andi %288, %292 : vector<1x256xi1>
    %cst_146 = arith.constant 0.000000e+00 : f32
    %294 = vector.shape_cast %293 : vector<1x256xi1> to vector<1x256xi1>
    %295 = vector.broadcast %294 : vector<1x256xi1> to vector<8x256xi1>
    %296 = vector.broadcast %cst_146 : f32 to vector<8x256xf32>
    %297 = arith.select %295, %284, %296 : vector<8x256xi1>, vector<8x256xf32>
    %c5_147 = arith.constant 5 : index
    %c0_148 = arith.constant 0 : index
    %c0_149 = arith.constant 0 : index
    %298 = vector.load %arg4[%c5_147, %c0_148, %c0_149] : memref<9x8x8xf32, #tpu.memory_space<vmem>>, vector<1x8x8xf32>
    %299 = vector.shape_cast %298 : vector<1x8x8xf32> to vector<8x8xf32>
    %cst_150 = arith.constant dense<0.000000e+00> : vector<8x256xf32>
    %300 = tpu.matmul %299, %297, %cst_150 {dimension_numbers = #tpu.dot_dimension_numbers<[1], [0], [0], [1], [0, 0, 1, 1], [], []>} : vector<8x8xf32>, vector<8x256xf32>, vector<8x256xf32> -> vector<8x256xf32>
    %301 = arith.addf %281, %300 : vector<8x256xf32>
    %302 = vector.extract_strided_slice %209 {offsets = [0, 15], sizes = [8, 241], strides = [1, 1]} : vector<8x256xf32> to vector<8x241xf32>
    %cst_151 = arith.constant 0.000000e+00 : f32
    %303 = vector.broadcast %cst_151 : f32 to vector<8x15xf32>
    %304 = tpu.concatenate %302, %303 in 1 : vector<8x241xf32>, vector<8x15xf32> -> vector<8x256xf32>
    %c-1_i32_152 = arith.constant -1 : i32
    %305 = vector.broadcast %c-1_i32_152 : i32 to vector<1x256xi32>
    %306 = arith.addi %16, %305 : vector<1x256xi32>
    %c0_i32_153 = arith.constant 0 : i32
    %307 = vector.broadcast %c0_i32_153 : i32 to vector<1x256xi32>
    %308 = arith.cmpi sge, %306, %307 : vector<1x256xi32>
    %c-1_i32_154 = arith.constant -1 : i32
    %309 = vector.broadcast %c-1_i32_154 : i32 to vector<1x256xi32>
    %310 = arith.addi %16, %309 : vector<1x256xi32>
    %c16_i32_155 = arith.constant 16 : i32
    %311 = vector.broadcast %c16_i32_155 : i32 to vector<1x256xi32>
    %312 = arith.cmpi slt, %310, %311 : vector<1x256xi32>
    %313 = arith.andi %308, %312 : vector<1x256xi1>
    %cst_156 = arith.constant 0.000000e+00 : f32
    %314 = vector.shape_cast %313 : vector<1x256xi1> to vector<1x256xi1>
    %315 = vector.broadcast %314 : vector<1x256xi1> to vector<8x256xi1>
    %316 = vector.broadcast %cst_156 : f32 to vector<8x256xf32>
    %317 = arith.select %315, %304, %316 : vector<8x256xi1>, vector<8x256xf32>
    %c6_157 = arith.constant 6 : index
    %c0_158 = arith.constant 0 : index
    %c0_159 = arith.constant 0 : index
    %318 = vector.load %arg4[%c6_157, %c0_158, %c0_159] : memref<9x8x8xf32, #tpu.memory_space<vmem>>, vector<1x8x8xf32>
    %319 = vector.shape_cast %318 : vector<1x8x8xf32> to vector<8x8xf32>
    %cst_160 = arith.constant dense<0.000000e+00> : vector<8x256xf32>
    %320 = tpu.matmul %319, %317, %cst_160 {dimension_numbers = #tpu.dot_dimension_numbers<[1], [0], [0], [1], [0, 0, 1, 1], [], []>} : vector<8x8xf32>, vector<8x256xf32>, vector<8x256xf32> -> vector<8x256xf32>
    %321 = arith.addf %301, %320 : vector<8x256xf32>
    %322 = vector.extract_strided_slice %209 {offsets = [0, 16], sizes = [8, 240], strides = [1, 1]} : vector<8x256xf32> to vector<8x240xf32>
    %cst_161 = arith.constant 0.000000e+00 : f32
    %323 = vector.broadcast %cst_161 : f32 to vector<8x16xf32>
    %324 = tpu.concatenate %322, %323 in 1 : vector<8x240xf32>, vector<8x16xf32> -> vector<8x256xf32>
    %c7_162 = arith.constant 7 : index
    %c0_163 = arith.constant 0 : index
    %c0_164 = arith.constant 0 : index
    %325 = vector.load %arg4[%c7_162, %c0_163, %c0_164] : memref<9x8x8xf32, #tpu.memory_space<vmem>>, vector<1x8x8xf32>
    %326 = vector.shape_cast %325 : vector<1x8x8xf32> to vector<8x8xf32>
    %cst_165 = arith.constant dense<0.000000e+00> : vector<8x256xf32>
    %327 = tpu.matmul %326, %324, %cst_165 {dimension_numbers = #tpu.dot_dimension_numbers<[1], [0], [0], [1], [0, 0, 1, 1], [], []>} : vector<8x8xf32>, vector<8x256xf32>, vector<8x256xf32> -> vector<8x256xf32>
    %328 = arith.addf %321, %327 : vector<8x256xf32>
    %329 = vector.extract_strided_slice %209 {offsets = [0, 17], sizes = [8, 239], strides = [1, 1]} : vector<8x256xf32> to vector<8x239xf32>
    %cst_166 = arith.constant 0.000000e+00 : f32
    %330 = vector.broadcast %cst_166 : f32 to vector<8x17xf32>
    %331 = tpu.concatenate %329, %330 in 1 : vector<8x239xf32>, vector<8x17xf32> -> vector<8x256xf32>
    %c1_i32_167 = arith.constant 1 : i32
    %332 = vector.broadcast %c1_i32_167 : i32 to vector<1x256xi32>
    %333 = arith.addi %16, %332 : vector<1x256xi32>
    %c0_i32_168 = arith.constant 0 : i32
    %334 = vector.broadcast %c0_i32_168 : i32 to vector<1x256xi32>
    %335 = arith.cmpi sge, %333, %334 : vector<1x256xi32>
    %c1_i32_169 = arith.constant 1 : i32
    %336 = vector.broadcast %c1_i32_169 : i32 to vector<1x256xi32>
    %337 = arith.addi %16, %336 : vector<1x256xi32>
    %c16_i32_170 = arith.constant 16 : i32
    %338 = vector.broadcast %c16_i32_170 : i32 to vector<1x256xi32>
    %339 = arith.cmpi slt, %337, %338 : vector<1x256xi32>
    %340 = arith.andi %335, %339 : vector<1x256xi1>
    %cst_171 = arith.constant 0.000000e+00 : f32
    %341 = vector.shape_cast %340 : vector<1x256xi1> to vector<1x256xi1>
    %342 = vector.broadcast %341 : vector<1x256xi1> to vector<8x256xi1>
    %343 = vector.broadcast %cst_171 : f32 to vector<8x256xf32>
    %344 = arith.select %342, %331, %343 : vector<8x256xi1>, vector<8x256xf32>
    %c8_172 = arith.constant 8 : index
    %c0_173 = arith.constant 0 : index
    %c0_174 = arith.constant 0 : index
    %345 = vector.load %arg4[%c8_172, %c0_173, %c0_174] : memref<9x8x8xf32, #tpu.memory_space<vmem>>, vector<1x8x8xf32>
    %346 = vector.shape_cast %345 : vector<1x8x8xf32> to vector<8x8xf32>
    %cst_175 = arith.constant dense<0.000000e+00> : vector<8x256xf32>
    %347 = tpu.matmul %346, %344, %cst_175 {dimension_numbers = #tpu.dot_dimension_numbers<[1], [0], [0], [1], [0, 0, 1, 1], [], []>} : vector<8x8xf32>, vector<8x256xf32>, vector<8x256xf32> -> vector<8x256xf32>
    %348 = arith.addf %328, %347 : vector<8x256xf32>
    %349 = vector.broadcast %23 : vector<8x1xf32> to vector<8x256xf32>
    %350 = arith.addf %348, %349 : vector<8x256xf32>
    %cst_176 = arith.constant dense<0.000000e+00> : vector<8x256xf32>
    %351 = tpu.matmul %19, %350, %cst_176 {dimension_numbers = #tpu.dot_dimension_numbers<[1], [0], [0], [1], [0, 0, 1, 1], [], []>} : vector<8x8xf32>, vector<8x256xf32>, vector<8x256xf32> -> vector<8x256xf32>
    %cst_177 = arith.constant dense<0.000000e+00> : vector<8xf32>
    %352 = vector.multi_reduction <add>, %351, %cst_177 [1] : vector<8x256xf32> to vector<8xf32>
    %353 = vector.shape_cast %352 : vector<8xf32> to vector<8x1xf32>
    %cst_178 = arith.constant 2.560000e+02 : f32
    %354 = vector.broadcast %cst_178 : f32 to vector<8x1xf32>
    %355 = arith.divf %353, %354 : vector<8x1xf32>
    %356 = vector.broadcast %355 : vector<8x1xf32> to vector<8x256xf32>
    %357 = arith.subf %350, %356 : vector<8x256xf32>
    %358 = arith.mulf %357, %357 : vector<8x256xf32>
    %cst_179 = arith.constant dense<0.000000e+00> : vector<8x256xf32>
    %359 = tpu.matmul %19, %358, %cst_179 {dimension_numbers = #tpu.dot_dimension_numbers<[1], [0], [0], [1], [0, 0, 1, 1], [], []>} : vector<8x8xf32>, vector<8x256xf32>, vector<8x256xf32> -> vector<8x256xf32>
    %cst_180 = arith.constant dense<0.000000e+00> : vector<8xf32>
    %360 = vector.multi_reduction <add>, %359, %cst_180 [1] : vector<8x256xf32> to vector<8xf32>
    %361 = vector.shape_cast %360 : vector<8xf32> to vector<8x1xf32>
    %cst_181 = arith.constant 2.560000e+02 : f32
    %362 = vector.broadcast %cst_181 : f32 to vector<8x1xf32>
    %363 = arith.divf %361, %362 : vector<8x1xf32>
    %cst_182 = arith.constant 9.99999974E-6 : f32
    %364 = vector.broadcast %cst_182 : f32 to vector<8x1xf32>
    %365 = arith.addf %363, %364 : vector<8x1xf32>
    %366 = math.rsqrt %365 : vector<8x1xf32>
    %367 = vector.broadcast %366 : vector<8x1xf32> to vector<8x256xf32>
    %368 = arith.mulf %357, %367 : vector<8x256xf32>
    %369 = vector.broadcast %24 : vector<8x1xf32> to vector<8x256xf32>
    %370 = arith.mulf %368, %369 : vector<8x256xf32>
    %371 = vector.broadcast %25 : vector<8x1xf32> to vector<8x256xf32>
    %372 = arith.addf %370, %371 : vector<8x256xf32>
    %373 = arith.negf %372 : vector<8x256xf32>
    %374 = math.exp %373 : vector<8x256xf32>
    %cst_183 = arith.constant 1.000000e+00 : f32
    %375 = vector.broadcast %cst_183 : f32 to vector<8x256xf32>
    %376 = arith.addf %375, %374 : vector<8x256xf32>
    %377 = arith.divf %375, %376 : vector<8x256xf32>
    %378 = arith.mulf %372, %377 : vector<8x256xf32>
    %379 = arith.addf %378, %30 : vector<8x256xf32>
    %c0_184 = arith.constant 0 : index
    %c0_185 = arith.constant 0 : index
    %c0_186 = arith.constant 0 : index
    %380 = vector.load %arg8[%c0_184, %c0_185, %c0_186] : memref<1x8x256xf32, #tpu.memory_space<vmem>>, vector<1x8x256xf32>
    %381 = vector.shape_cast %380 : vector<1x8x256xf32> to vector<8x256xf32>
    %382 = vector.shape_cast %379 : vector<8x256xf32> to vector<1x8x256xf32>
    tpu.vector_store %arg8[%c0_184, %c0_185, %c0_186], %382 {strides = array<i32>} : memref<1x8x256xf32, #tpu.memory_space<vmem>>, vector<1x8x256xf32>,
    return
  }
  func.func @transform_0(%arg0: i32) -> (i32, i32, i32) {
    %c0_i32 = arith.constant 0 : i32
    %c0_i32_0 = arith.constant 0 : i32
    %c0_i32_1 = arith.constant 0 : i32
    return %arg0, %c0_i32, %c0_i32_0 : i32, i32, i32
  }
  func.func @transform_1(%arg0: i32) -> (i32, i32, i32) {
    %c0_i32 = arith.constant 0 : i32
    %c0_i32_0 = arith.constant 0 : i32
    %c0_i32_1 = arith.constant 0 : i32
    return %arg0, %c0_i32, %c0_i32_0 : i32, i32, i32
  }
  func.func @transform_2(%arg0: i32) -> (i32, i32, i32) {
    %c0_i32 = arith.constant 0 : i32
    %c0_i32_0 = arith.constant 0 : i32
    %c0_i32_1 = arith.constant 0 : i32
    %c0_i32_2 = arith.constant 0 : i32
    return %c0_i32, %c0_i32_0, %c0_i32_1 : i32, i32, i32
  }
  func.func @transform_3(%arg0: i32) -> (i32, i32, i32) {
    %c0_i32 = arith.constant 0 : i32
    %c0_i32_0 = arith.constant 0 : i32
    %c0_i32_1 = arith.constant 0 : i32
    %c0_i32_2 = arith.constant 0 : i32
    return %c0_i32, %c0_i32_0, %c0_i32_1 : i32, i32, i32
  }
  func.func @transform_4(%arg0: i32) -> (i32, i32) {
    %c0_i32 = arith.constant 0 : i32
    %c0_i32_0 = arith.constant 0 : i32
    %c0_i32_1 = arith.constant 0 : i32
    return %c0_i32, %c0_i32_0 : i32, i32
  }
  func.func @transform_5(%arg0: i32) -> (i32, i32) {
    %c0_i32 = arith.constant 0 : i32
    %c0_i32_0 = arith.constant 0 : i32
    %c0_i32_1 = arith.constant 0 : i32
    return %c0_i32, %c0_i32_0 : i32, i32
  }
  func.func @transform_6(%arg0: i32) -> (i32, i32) {
    %c0_i32 = arith.constant 0 : i32
    %c0_i32_0 = arith.constant 0 : i32
    %c0_i32_1 = arith.constant 0 : i32
    return %c0_i32, %c0_i32_0 : i32, i32
  }
  func.func @transform_7(%arg0: i32) -> (i32, i32, i32) {
    %c0_i32 = arith.constant 0 : i32
    %c0_i32_0 = arith.constant 0 : i32
    %c0_i32_1 = arith.constant 0 : i32
    return %arg0, %c0_i32, %c0_i32_0 : i32, i32, i32
  }
}

</mosaic_0001>

<bundles_post_ra>
// kernel: _lambda_.3
= control target key start
LH: loop header
LB: loop body
LE: loop exit
PB: predicated region body
PF: predicated region fallthrough
CT: control target
= control target key end

     0   :  { %s2602_s21 = smov 0   ;;  %s2905_s0 = inlined_call_operand.vmem [shape: f32[2,8,256], index: 0, kind: input, shape index: {}]   ;;  %s2906_s1 = inlined_call_operand.vmem [shape: f32[2,1,256], index: 1, kind: input, shape index: {}]   ;;  %s2907_s2 = inlined_call_operand.vmem [shape: f32[9,8,8], index: 2, kind: input, shape index: {}]   ;;  %s2908_s3 = inlined_call_operand.vmem [shape: f32[9,8,8], index: 3, kind: input, shape index: {}]   ;;  %s2909_s4 = inlined_call_operand.vmem [shape: f32[8,6], index: 4, kind: input, shape index: {}]   ;;  %s2910_s5 = inlined_call_operand.vmem [shape: f32[8,8], index: 5, kind: input, shape index: {}]   ;;  %s2911_s6 = inlined_call_operand.vmem [shape: f32[2,8,256], index: 6, kind: output, shape index: {}]  }
   0x1 LB: > { %s2367_s22 = sadd.s32 4294967295, %s2550_s21   ;;  %p2371_p0 = scmp.ge.s32.totalorder %s2550_s21, 1  ;;  %s2550_s21 = sphi %s2602_s21, %s16_s21  }
   0x2   : > { %p221_p1 = scmp.lt.s32.totalorder %s2550_s21, 3 }
   0x4   : > { %p222_p2 = pnand %p2371_p0, %p221_p1 }
   0x5   : > { %p255_p3 = scmp.lt.s32.totalorder (!%p222_p2), %s2367_s22, 1  ;;  %v2552_v0 = vmov (!%p222_p2), 0.0   ;;  %s2553_s27 = smov (!%p222_p2), 16   ;;  %v2659_v3 = vld [vmem:[%s2909_s4] sm:$0xff] (!%p222_p2)  ;;  %v2561_v4 = vmov (!%p222_p2), 0   ;;  %v269_v5 = vlaneseq (!%p222_p2)  ;;  %vm330_vm0 = vcmask (!%p222_p2), 130048  }
   0x6   : > { %225 = sbr.rel (%p222_p2) target bundleno = 2399 (0x95f), region = 44  ;;  %405 = vmatprep.mubr.f32.mxu0 (!%p222_p2), %v2552_v0  ;;  %1182 = vmatprep.mubr.f32.mxu1 (!%p222_p2), %v2552_v0  ;;  %s2554_s28 = smov (!%p222_p2), 17   ;;  %vm306_vm1 = vcmask (!%p222_p2), 138240   ;;  %vm2670_vm2 = vmneg (!%p222_p2), %vm330_vm0  ;;  %v2377_v20 = vld [vmem:[%s2907_s2 + $0x8] sm:$0xff] (!%p222_p2)  ;;  %vm337_vm3 = vcmask (!%p222_p2), 64512   ;;  %vm490_vm6 = vcmask (!%p222_p2), 121856  }
   0x7   : > { %s2555_s29 = smov (!%p222_p2), 15   ;;  %s2556_s30 = smov (!%p222_p2), 1   ;;  %2510 = vset.pattern.permute.xlu0 (!%p222_p2), %v2561_v4  ;;  %v270_v6 = vand.u32 (!%p222_p2), 127, %v269_v5  ;;  %vm591_vm8 = vcmask (!%p222_p2), 7168   ;;  %v325_v28 = vld [vmem:[%s2907_s2] sm:$0xff] (!%p222_p2)  ;;  %v2384_v31 = vld [vmem:[%s2907_s2 + $0x10] sm:$0xff] (!%p222_p2) }
   0x8   : > { %s2557_s7 = smov (!%p222_p2), 127   ;;  %s2558_s8 = smov (!%p222_p2), 113   ;;  %vm758_vm10 = vcmask (!%p222_p2), 1039360   ;;  %v2388_v34 = vld [vmem:[%s2907_s2 + $0x18] sm:$0xff] (!%p222_p2)  ;;  %vm847_vm11 = vcmask (!%p222_p2), 924672   ;;  %v2392_v38 = vld [vmem:[%s2907_s2 + $0x20] sm:$0xff] (!%p222_p2) }
   0x9   : > { %s2559_s9 = smov (!%p222_p2), 112   ;;  %s2560_s10 = smov (!%p222_p2), 111   ;;  %v271_v7 = vadd.s32 (!%p222_p2), 128, %v270_v6  ;;  %v276_v9 = vand.u32 (!%p222_p2), 15, %v270_v6  ;;  %v2394_v42 = vld [vmem:[%s2907_s2 + $0x28] sm:$0xff] (!%p222_p2)  ;;  %vm936_vm12 = vcmask (!%p222_p2), 916480  }
   0xa   : > { %vm1023_vm13 = vcmask (!%p222_p2), 908288   ;;  %v2398_v47 = vld [vmem:[%s2907_s2 + $0x30] sm:$0xff] (!%p222_p2)  ;;  %v2402_v51 = vld [vmem:[%s2907_s2 + $0x38] sm:$0xff] (!%p222_p2)  ;;  %v2405_v53 = vld [vmem:[%s2907_s2 + $0x40] sm:$0xff] (!%p222_p2) }
   0xb   : > { %v283_v8 = vand.u32 (!%p222_p2), 15, %v271_v7  ;;  %v2665_v13 = vadd.s32 (!%p222_p2), 4294967295, %v276_v9  ;;  %v2694_v25 = vadd.s32 (!%p222_p2), 1, %v276_v9  ;;  %v2771_v59 = vld [vmem:[%s2910_s5] sm:$0xff] (!%p222_p2) }
   0xd   : > { %s2915_s22 = smov (!%p255_p3, %s2367_s22), 1  ;;  %v2663_v12 = vadd.s32 4294967295, %v283_v8  ;;  %v2667_v14 = vadd.s32 1, %v283_v8  ;;  %vm313_vm5 = vcmp.ge.s32.totalorder %v2665_v13, 0  ;;  %vm499_vm9 = vcmp.lt.s32.totalorder %v2694_v25, 16 }
   0xe   : > { %s2453_s23 = sshll.u32 %s2915_s22, 4  ;;  %s2374_s20 = sshll.u32 %s2915_s22, 1 }
   0xf   : > { %s259_s26 = scalar_lea.vmem %s2905_s0, %s2453_s23  ;;  %vm314_vm4 = vcmp.ge.s32.totalorder %v2663_v12, 0  ;;  %vm500_vm7 = vcmp.lt.s32.totalorder %v2667_v14, 16  ;;  %v2436_v12 = vld [vmem:[%s2908_s3 + $0x30] sm:$0xff] }
  0x10   : > { %v2620_v1 = vld [vmem:[%s259_s26] sm:$0xff]  ;;  %v2626_v2 = vld [vmem:[%s259_s26 + $0x8] sm:$0xff]  ;;  %s263_s26 = scalar_lea.vmem %s2906_s1, %s2374_s20 }
  0x11   : > { %326 = vrot.lane.b32.xlu0 %v2620_v1, %s2553_s27  ;;  %302 = vrot.lane.b32.xlu1 %v2620_v1, %s2554_s28 }
  0x15   : > { %328 = vrot.lane.b32.xlu0 %v2626_v2, %s2553_s27  ;;  %304 = vrot.lane.b32.xlu1 %v2626_v2, %s2554_s28 }
  0x19   : > { %488 = vrot.lane.b32.xlu1 %v2626_v2, %s2555_s29  ;;  %486 = vrot.lane.b32.xlu0 %v2620_v1, %s2555_s29 }
  0x1d   : > { %589 = vrot.lane.b32.xlu1 %v2626_v2, %s2556_s30  ;;  %587 = vrot.lane.b32.xlu0 %v2620_v1, %s2556_s30 }
  0x21   : > { %756 = vrot.lane.b32.xlu0 %v2626_v2, %s2557_s7  ;;  %754 = vrot.lane.b32.xlu1 %v2620_v1, %s2557_s7 }
  0x25   : > { %845 = vrot.lane.b32.xlu0 %v2626_v2, %s2558_s8  ;;  %843 = vrot.lane.b32.xlu1 %v2620_v1, %s2558_s8 }
  0x29   : > { %934 = vrot.lane.b32.xlu1 %v2626_v2, %s2559_s9  ;;  %932 = vrot.lane.b32.xlu0 %v2620_v1, %s2559_s9 }
  0x2d   : > { %1021 = vrot.lane.b32.xlu0 %v2626_v2, %s2560_s10  ;;  %1019 = vrot.lane.b32.xlu1 %v2620_v1, %s2560_s10 }
  0x31   : > { %1110 = vperm.xlu0 %2510, %v2659_v3  }
  0x83   : > { %v327_v10 = vpop.permute.xlu0 %326  ;;  %v303_v11 = vpop.permute.xlu1 %302 }
  0x84   : > { %v310_v21 = vsel %vm306_vm1, 0.0, %v303_v11 }
  0x87   : > { %v329_v15 = vpop.permute.xlu0 %328  ;;  %v305_v16 = vpop.permute.xlu1 %304 }
  0x88   : > { %v331_v18 = vsel %vm330_vm0, %v327_v10, %v329_v15  ;;  %v307_v19 = vsel %vm306_vm1, %v303_v11, %v305_v16  ;;  %v2563_v11 = vmov 2  }
  0x89   : > { %341 = vmatprep.subr.mxu0 %v331_v18  ;;  %2512 = vset.pattern.permute.xlu0 %v2563_v11 }
  0x8a   : > { %2379 = vmatpush1.msk.msra.mxu0 %vm2670_vm2, %v327_v10  ;;  %v2562_v10 = vmov 1  }
  0x8b   : > { %2380 = vmatmul.mubr.msk.f32.vlgmr.msra.gmra.mrb[0].mxu0 %vm337_vm3, %v2377_v20  ;;  %2381 = vmatprep.subr.msk.mxu0 %vm314_vm4, %v307_v19  ;;  %v489_v22 = vpop.permute.xlu1 %488  ;;  %v487_v23 = vpop.permute.xlu0 %486 }
  0x8c   : > { %2382 = vmatpush1.msk.msra.mxu0 %vm313_vm5, %v310_v21  ;;  %479 = vmatprep.mubr.f32.mxu0 %v2552_v0  ;;  %v491_v24 = vsel %vm490_vm6, %v487_v23, %v489_v22  ;;  %v494_v29 = vsel %vm490_vm6, 0.0, %v487_v23 }
  0x8d   : > { %2385 = vmatprep.subr.msk.mxu0 %vm500_vm7, %v491_v24  ;;  %2511 = vset.pattern.permute.xlu1 %v2562_v10 }
  0x8f   : > { %v590_v26 = vpop.permute.xlu1 %589  ;;  %v588_v27 = vpop.permute.xlu0 %587 }
  0x90   : > { %v592_v30 = vsel %vm591_vm8, %v588_v27, %v590_v26  ;;  %v595_v32 = vsel %vm591_vm8, 0.0, %v588_v27 }
  0x93   : > { %2383 = vmatmul.mubr.msk.f32.vlgmr.msra.gmra.mrb[0].mxu0 %vm337_vm3, %v325_v28  ;;  %v757_v33 = vpop.permute.xlu0 %756  ;;  %v755_v36 = vpop.permute.xlu1 %754 }
  0x94   : > { %2386 = vmatpush1.msk.msra.mxu0 %vm499_vm9, %v494_v29  ;;  %578 = vmatprep.mubr.f32.mxu0 %v2552_v0  ;;  %v762_v35 = vsel %vm758_vm10, %v757_v33, 0.0  ;;  %v759_v39 = vsel %vm758_vm10, %v755_v36, %v757_v33 }
  0x95   : > { %2389 = vmatprep.subr.msk.mxu0 %vm314_vm4, %v592_v30 }
  0x97   : > { %v846_v37 = vpop.permute.xlu0 %845  ;;  %v844_v41 = vpop.permute.xlu1 %843 }
  0x98   : > { %v851_v40 = vsel %vm847_vm11, %v846_v37, 0.0  ;;  %v848_v43 = vsel %vm847_vm11, %v844_v41, %v846_v37 }
  0x9b   : > { %2387 = vmatmul.mubr.msk.f32.vlgmr.msra.gmra.mrb[0].mxu0 %vm337_vm3, %v2384_v31  ;;  %v935_v44 = vpop.permute.xlu1 %934  ;;  %v933_v45 = vpop.permute.xlu0 %932 }
  0x9c   : > { %2390 = vmatpush1.msk.msra.mxu0 %vm313_vm5, %v595_v32  ;;  %667 = vmatprep.mubr.f32.mxu0 %v2552_v0  ;;  %v937_v48 = vsel %vm936_vm12, %v933_v45, %v935_v44 }
  0x9d   : > { %681 = vmatprep.subr.mxu0 %v2626_v2 }
  0x9f   : > { %v1022_v46 = vpop.permute.xlu0 %1021  ;;  %v1020_v50 = vpop.permute.xlu1 %1019 }
  0xa0   : > { %v1027_v49 = vsel %vm1023_vm13, %v1022_v46, 0.0  ;;  %v1024_v52 = vsel %vm1023_vm13, %v1020_v50, %v1022_v46 }
  0xa3   : > { %2391 = vmatmul.mubr.msk.f32.vlgmr.msra.gmra.mrb[0].mxu0 %vm337_vm3, %v2388_v34 }
  0xa4   : > { %682 = vmatpush1.msra.mxu0 %v2620_v1  ;;  %745 = vmatprep.mubr.f32.mxu0 %v2552_v0 }
  0xa5   : > { %2395 = vmatprep.subr.msk.mxu0 %vm500_vm7, %v762_v35 }
  0xab   : > { %2393 = vmatmul.mubr.msk.f32.vlgmr.msra.gmra.mrb[0].mxu0 %vm337_vm3, %v2392_v38  ;;  %v1306_v38 = vshrl.u32 %v269_v5, 7 }
  0xac   : > { %2396 = vmatpush1.msk.msra.mxu0 %vm499_vm9, %v759_v39  ;;  %834 = vmatprep.mubr.f32.mxu0 %v2552_v0 }
  0xad   : > { %2399 = vmatprep.subr.msk.mxu0 %vm314_vm4, %v851_v40  ;;  %v1307_v39 = vsub.s32 0, %v1306_v38  ;;  %v1303_v40 = vld [vmem:[%s263_s26] sm:$0x3]  ;;  %v1311_v41 = vsub.s32 1, %v1306_v38  ;;  %s268_s26 = scalar_lea.vmem %s2911_s6, %s2453_s23 }
  0xb0   : > { %v1111_v54 = vpop.permute.xlu0 %1110 }
  0xb3   : > { %2397 = vmatmul.mubr.msk.f32.vlgmr.msra.gmra.mrb[0].mxu0 %vm337_vm3, %v2394_v42  ;;  %v1308_v42 = vrot.slane %v1303_v40, %v1307_v39 }
  0xb4   : > { %2400 = vmatpush1.msk.msra.mxu0 %vm313_vm5, %v848_v43  ;;  %923 = vmatprep.mubr.f32.mxu0 %v2552_v0 }
  0xb5   : > { %2403 = vmatprep.subr.msk.mxu0 %vm936_vm12, %v935_v44  ;;  %v1312_v44 = vrot.slane %v1303_v40, %v1311_v41  ;;  %v2440_v40 = vld [vmem:[%s2908_s3 + $0x38] sm:$0xff] }
  0xbb   : > { %2401 = vmatmul.mubr.msk.f32.vlgmr.msra.gmra.mrb[0].mxu0 %vm337_vm3, %v2398_v47 }
  0xbc   : > { %947 = vmatpush1.msra.mxu0 %v937_v48  ;;  %1010 = vmatprep.mubr.f32.mxu0 %v2552_v0 }
  0xbd   : > { %2406 = vmatprep.subr.msk.mxu0 %vm500_vm7, %v1027_v49 }
  0xc3   : > { %2404 = vmatmul.mubr.msk.f32.vlgmr.msra.gmra.mrb[0].mxu0 %vm337_vm3, %v2402_v51 }
  0xc4   : > { %2407 = vmatpush1.msk.msra.mxu0 %vm499_vm9, %v1024_v52  ;;  %1099 = vmatprep.mubr.f32.mxu0 %v2552_v0 }
  0xcb   : > { %2408 = vmatmul.mubr.msk.f32.vlgmr.msra.gmra.mrb[0].mxu0 %vm337_vm3, %v2405_v53 }
  0xcc   : > { %2176 = vmatprep.mubr.f32.mxu0 %v2552_v0 }
 0x19e   : > { %v1101_v55 = vpop.f32.mrb[0].mxu0 }
 0x19f   : > { %v1103_v56 = vpop.f32.mrb[1].mxu0  ;;  %v1113_v58 = vadd.f32 %v1111_v54, %v1101_v55 }
 0x1a0   : > { %v1114_v57 = vadd.f32 %v1111_v54, %v1103_v56 }
 0x1a2   : > { %1118 = vmatprep.subr.mxu1 %v1114_v57 }
 0x1a3   : > { %1119 = vmatpush1.msra.mxu1 %v1113_v58 }
 0x1a4   : > { %2409 = vmatmul.mubr.msk.f32.vlgmr.msra.gmra.mrb[0].mxu1 %vm337_vm3, %v2771_v59 }
 0x1a5   : > { %1262 = vmatprep.mubr.f32.mxu1 %v2552_v0 }
 0x277   : > { %v1184_v60 = vpop.f32.mrb[0].mxu1 }
 0x278   : > { %v1186_v61 = vpop.f32.mrb[1].mxu1 }
 0x279   : > { %v1189_v62 = vadd.f32 %v1186_v61, %v1184_v60  ;;  %v2564_v60 = vmov 3  }
 0x27b   : > { %1190 = vadd.xlane.f32.xlu1 %v1189_v62 }
 0x28c   : > { %1278 = vperm.xlu1 %2511, %v2659_v3  }
 0x308   : > { %v1191_v63 = vpop.xlane.xlu1 %1190 }
 0x309   : > { %v1193_v4 = vmul.f32 0.00390625, %v1191_v63 }
 0x30b   : > { %v1194_v6 = vsub.f32 %v1113_v58, %v1193_v4  ;;  %v1195_v7 = vsub.f32 %v1114_v57, %v1193_v4  ;;  %v2415_v4 = vld [vmem:[%s2908_s3 + $0x8] sm:$0xff] }
 0x30c   : > { %v1279_v23 = vpop.permute.xlu1 %1278 }
 0x30d   : > { %v1196_v8 = vmul.f32 %v1194_v6, %v1194_v6  ;;  %v1197_v9 = vmul.f32 %v1195_v7, %v1195_v7 }
 0x30f   : > { %1198 = vmatprep.subr.mxu1 %v1197_v9  ;;  %v1343_v9 = vld [vmem:[%s2908_s3] sm:$0xff] }
 0x310   : > { %1199 = vmatpush1.msra.mxu1 %v1196_v8 }
 0x311   : > { %2410 = vmatmul.mubr.msk.f32.vlgmr.msra.gmra.mrb[2].mxu1 %vm337_vm3, %v2771_v59 }
 0x312   : > { %1421 = vmatprep.mubr.f32.mxu1 %v2552_v0 }
 0x3e4   : > { %v1264_v15 = vpop.f32.mrb[2].mxu1 }
 0x3e5   : > { %v1266_v16 = vpop.f32.mrb[3].mxu1 }
 0x3e6   : > { %v1269_v18 = vadd.f32 %v1266_v16, %v1264_v15  ;;  %v2422_v16 = vld [vmem:[%s2908_s3 + $0x10] sm:$0xff] }
 0x3e8   : > { %1270 = vadd.xlane.f32.xlu0 %v1269_v18 }
 0x3fe   : > { %1284 = vperm.xlu0 %2512, %v2659_v3  }
 0x402   : > { %2513 = vset.pattern.permute.xlu0 %v2564_v60 }
 0x475   : > { %v1271_v19 = vpop.xlane.xlu0 %1270 }
 0x476   : > { %v1272_v20 = vmul.f32 0.00390625, %v1271_v19 }
 0x478   : > { %v1273_v21 = vadd.f32 1e-05, %v1272_v20 }
 0x47a   : > { %2516 = vrsqrt.f32 %v1273_v21 }
 0x47d   : > { %v1285_v27 = vpop.permute.xlu0 %1284 }
 0x484   : > { %v2517_v22 = vpop.eup %2516 }
 0x485   : > { %v1275_v24 = vmul.f32 %v2517_v22, %v1194_v6  ;;  %v1276_v26 = vmul.f32 %v2517_v22, %v1195_v7  ;;  %v2426_v22 = vld [vmem:[%s2908_s3 + $0x18] sm:$0xff] }
 0x487   : > { %v1281_v28 = vmul.f32 %v1279_v23, %v1275_v24  ;;  %v1282_v29 = vmul.f32 %v1279_v23, %v1276_v26 }
 0x489   : > { %v1287_v30 = vadd.f32 %v1285_v27, %v1281_v28  ;;  %v1288_v31 = vadd.f32 %v1285_v27, %v1282_v29  ;;  %v2430_v28 = vld [vmem:[%s2908_s3 + $0x20] sm:$0xff] }
 0x48b   : > { %v2411_v32 = vmul.f32 -1.442695, %v1287_v30  ;;  %v2412_v33 = vmul.f32 -1.442695, %v1288_v31 }
 0x48d   : > { %2518 = vpow2.f32 %v2411_v32 }
 0x48e   : > { %2520 = vpow2.f32 %v2412_v33  ;;  %v2432_v33 = vld [vmem:[%s2908_s3 + $0x28] sm:$0xff] }
 0x497   : > { %v2519_v34 = vpop.eup %2518 }
 0x498   : > { %v2521_v35 = vpop.eup %2520  ;;  %v1295_v36 = vadd.f32 1.0, %v2519_v34 }
 0x499   : > { %v1296_v37 = vadd.f32 1.0, %v2521_v35 }
 0x49a   : > { %2522 = vrcp.f32 %v1295_v36 }
 0x49b   : > { %2524 = vrcp.f32 %v1296_v37 }
 0x4a4   : > { %v2523_v43 = vpop.eup %2522 }
 0x4a5   : > { %v2525_v45 = vpop.eup %2524  ;;  %v1301_v46 = vmul.f32 %v2523_v43, %v1287_v30 }
 0x4a6   : > { %v1302_v47 = vmul.f32 %v2525_v45, %v1288_v31 }
 0x4a7   : > { %v1315_v48 = vadd.f32 %v1308_v42, %v1301_v46  ;;  %v2443_v42 = vld [vmem:[%s2908_s3 + $0x40] sm:$0xff] }
 0x4a8   : > { %v1316_v49 = vadd.f32 %v1312_v44, %v1302_v47 }
 0x4a9   : > { %v2413_v50 = vmul.f32 -1.442695, %v1315_v48 }
 0x4aa   : > { %v2414_v51 = vmul.f32 -1.442695, %v1316_v49 }
 0x4ab   : > { %2526 = vpow2.f32 %v2413_v50 }
 0x4ac   : > { %2528 = vpow2.f32 %v2414_v51 }
 0x4b5   : > { %v2527_v5 = vpop.eup %2526 }
 0x4b6   : > { %v2529_v52 = vpop.eup %2528  ;;  %v1323_v53 = vadd.f32 1.0, %v2527_v5 }
 0x4b7   : > { %v1324_v54 = vadd.f32 1.0, %v2529_v52 }
 0x4b8   : > { %2530 = vrcp.f32 %v1323_v53 }
 0x4b9   : > { %2532 = vrcp.f32 %v1324_v54  ;;  %v2565_v54 = vmov 4  }
 0x4ba   : > { %2514 = vset.pattern.permute.xlu1 %v2565_v54 }
 0x4c2   : > { %v2531_v55 = vpop.eup %2530 }
 0x4c3   : > { %v2533_v56 = vpop.eup %2532  ;;  %v1329_v57 = vmul.f32 %v2531_v55, %v1315_v48  ;;  %v2566_v55 = vmov 5  }
 0x4c4   : > { %v1330_v58 = vmul.f32 %v2533_v56, %v1316_v49 }
 0x4c5   : > { %1344 = vrot.lane.b32.xlu1 %v1329_v57, %s2553_s27 }
 0x4c6   : > { %1758 = vrot.lane.b32.xlu0 %v1330_v58, %s2557_s7 }
 0x4c9   : > { %1346 = vrot.lane.b32.xlu1 %v1330_v58, %s2553_s27 }
 0x4ca   : > { %1846 = vrot.lane.b32.xlu0 %v1330_v58, %s2558_s8 }
 0x4cd   : > { %1333 = vrot.lane.b32.xlu1 %v1329_v57, %s2554_s28 }
 0x4ce   : > { %1932 = vrot.lane.b32.xlu0 %v1329_v57, %s2559_s9 }
 0x4d1   : > { %1335 = vrot.lane.b32.xlu1 %v1330_v58, %s2554_s28 }
 0x4d2   : > { %2020 = vrot.lane.b32.xlu0 %v1330_v58, %s2560_s10 }
 0x4d5   : > { %1502 = vrot.lane.b32.xlu1 %v1329_v57, %s2555_s29 }
 0x4d6   : > { %2107 = vperm.xlu0 %2513, %v2659_v3  }
 0x4d9   : > { %1504 = vrot.lane.b32.xlu1 %v1330_v58, %s2555_s29 }
 0x4da   : > { %2515 = vset.pattern.permute.xlu0 %v2566_v55 }
 0x4dd   : > { %1590 = vrot.lane.b32.xlu1 %v1329_v57, %s2556_s30 }
 0x4e1   : > { %1592 = vrot.lane.b32.xlu1 %v1330_v58, %s2556_s30 }
 0x4e5   : > { %1756 = vrot.lane.b32.xlu1 %v1329_v57, %s2557_s7 }
 0x4e9   : > { %1844 = vrot.lane.b32.xlu1 %v1329_v57, %s2558_s8 }
 0x4ed   : > { %1934 = vrot.lane.b32.xlu1 %v1330_v58, %s2559_s9 }
 0x4f1   : > { %2018 = vrot.lane.b32.xlu1 %v1329_v57, %s2560_s10 }
 0x537   : > { %v1345_v61 = vpop.permute.xlu1 %1344 }
 0x538   : > { %v1759_v23 = vpop.permute.xlu0 %1758 }
 0x539   : > { %v1763_v26 = vsel %vm758_vm10, %v1759_v23, 0.0 }
 0x53b   : > { %v1347_v62 = vpop.permute.xlu1 %1346 }
 0x53c   : > { %v1348_v63 = vsel %vm330_vm0, %v1345_v61, %v1347_v62  ;;  %v1847_v29 = vpop.permute.xlu0 %1846 }
 0x53d   : > { %1357 = vmatprep.subr.mxu1 %v1348_v63  ;;  %v1851_v31 = vsel %vm847_vm11, %v1847_v29, 0.0 }
 0x53e   : > { %2417 = vmatpush1.msk.msra.mxu1 %vm2670_vm2, %v1345_v61 }
 0x53f   : > { %2418 = vmatmul.mubr.msk.f32.vlgmr.msra.gmra.mrb[4].mxu1 %vm337_vm3, %v2415_v4  ;;  %v1334_v6 = vpop.permute.xlu1 %1333 }
 0x540   : > { %1495 = vmatprep.mubr.f32.mxu1 %v2552_v0  ;;  %v1340_v10 = vsel %vm306_vm1, 0.0, %v1334_v6  ;;  %v1933_v34 = vpop.permute.xlu0 %1932 }
 0x543   : > { %v1336_v7 = vpop.permute.xlu1 %1335 }
 0x544   : > { %v1337_v8 = vsel %vm306_vm1, %v1334_v6, %v1336_v7  ;;  %v2021_v37 = vpop.permute.xlu0 %2020 }
 0x545   : > { %2419 = vmatprep.subr.msk.mxu1 %vm314_vm4, %v1337_v8  ;;  %v2025_v39 = vsel %vm1023_vm13, %v2021_v37, 0.0 }
 0x546   : > { %2420 = vmatpush1.msk.msra.mxu1 %vm313_vm5, %v1340_v10 }
 0x547   : > { %2421 = vmatmul.mubr.msk.f32.vlgmr.msra.gmra.mrb[4].mxu1 %vm337_vm3, %v1343_v9  ;;  %v1503_v17 = vpop.permute.xlu1 %1502 }
 0x548   : > { %1581 = vmatprep.mubr.f32.mxu1 %v2552_v0  ;;  %v1509_v18 = vsel %vm490_vm6, 0.0, %v1503_v17 }
 0x54b   : > { %v1505_v11 = vpop.permute.xlu1 %1504 }
 0x54c   : > { %v1506_v15 = vsel %vm490_vm6, %v1503_v17, %v1505_v11 }
 0x54d   : > { %2423 = vmatprep.subr.msk.mxu1 %vm500_vm7, %v1506_v15 }
 0x54e   : > { %2424 = vmatpush1.msk.msra.mxu1 %vm499_vm9, %v1509_v18 }
 0x54f   : > { %2425 = vmatmul.mubr.msk.f32.vlgmr.msra.gmra.mrb[4].mxu1 %vm337_vm3, %v2422_v16  ;;  %v1591_v19 = vpop.permute.xlu1 %1590 }
 0x550   : > { %1669 = vmatprep.mubr.f32.mxu1 %v2552_v0  ;;  %v1597_v24 = vsel %vm591_vm8, 0.0, %v1591_v19 }
 0x553   : > { %v1593_v20 = vpop.permute.xlu1 %1592 }
 0x554   : > { %v1594_v21 = vsel %vm591_vm8, %v1591_v19, %v1593_v20 }
 0x555   : > { %2427 = vmatprep.subr.msk.mxu1 %vm314_vm4, %v1594_v21  ;;  %v2108_v14 = vpop.permute.xlu0 %2107 }
 0x556   : > { %2428 = vmatpush1.msk.msra.mxu1 %vm313_vm5, %v1597_v24 }
 0x557   : > { %2429 = vmatmul.mubr.msk.f32.vlgmr.msra.gmra.mrb[4].mxu1 %vm337_vm3, %v2426_v22  ;;  %1683 = vmatprep.subr.mxu1 %v1330_v58  ;;  %v1757_v27 = vpop.permute.xlu1 %1756 }
 0x558   : > { %1684 = vmatpush1.msra.mxu1 %v1329_v57  ;;  %1747 = vmatprep.mubr.f32.mxu1 %v2552_v0  ;;  %v1760_v30 = vsel %vm758_vm10, %v1757_v27, %v1759_v23 }
 0x559   : > { %2433 = vmatprep.subr.msk.mxu1 %vm500_vm7, %v1763_v26 }
 0x55b   : > { %v1845_v32 = vpop.permute.xlu1 %1844 }
 0x55c   : > { %v1848_v35 = vsel %vm847_vm11, %v1845_v32, %v1847_v29 }
 0x55f   : > { %2431 = vmatmul.mubr.msk.f32.vlgmr.msra.gmra.mrb[4].mxu1 %vm337_vm3, %v2430_v28  ;;  %v1935_v36 = vpop.permute.xlu1 %1934 }
 0x560   : > { %2434 = vmatpush1.msk.msra.mxu1 %vm499_vm9, %v1760_v30  ;;  %1835 = vmatprep.mubr.f32.mxu1 %v2552_v0  ;;  %v1936_v38 = vsel %vm936_vm12, %v1933_v34, %v1935_v36 }
 0x561   : > { %2437 = vmatprep.subr.msk.mxu1 %vm314_vm4, %v1851_v31 }
 0x563   : > { %v2019_v13 = vpop.permute.xlu1 %2018 }
 0x564   : > { %v2022_v41 = vsel %vm1023_vm13, %v2019_v13, %v2021_v37 }
 0x567   : > { %2435 = vmatmul.mubr.msk.f32.vlgmr.msra.gmra.mrb[4].mxu1 %vm337_vm3, %v2432_v33 }
 0x568   : > { %2438 = vmatpush1.msk.msra.mxu1 %vm313_vm5, %v1848_v35  ;;  %1923 = vmatprep.mubr.f32.mxu1 %v2552_v0 }
 0x569   : > { %2441 = vmatprep.subr.msk.mxu1 %vm936_vm12, %v1935_v36 }
 0x56f   : > { %2439 = vmatmul.mubr.msk.f32.vlgmr.msra.gmra.mrb[4].mxu1 %vm337_vm3, %v2436_v12 }
 0x570   : > { %1946 = vmatpush1.msra.mxu1 %v1936_v38  ;;  %2009 = vmatprep.mubr.f32.mxu1 %v2552_v0 }
 0x571   : > { %2444 = vmatprep.subr.msk.mxu1 %vm500_vm7, %v2025_v39 }
 0x577   : > { %2442 = vmatmul.mubr.msk.f32.vlgmr.msra.gmra.mrb[4].mxu1 %vm337_vm3, %v2440_v40 }
 0x578   : > { %2445 = vmatpush1.msk.msra.mxu1 %vm499_vm9, %v2022_v41  ;;  %2097 = vmatprep.mubr.f32.mxu1 %v2552_v0 }
 0x57f   : > { %2446 = vmatmul.mubr.msk.f32.vlgmr.msra.gmra.mrb[4].mxu1 %vm337_vm3, %v2443_v42 }
 0x652   : > { %v2099_v43 = vpop.f32.mrb[4].mxu1 }
 0x653   : > { %v2101_v44 = vpop.f32.mrb[5].mxu1  ;;  %v2110_v46 = vadd.f32 %v2108_v14, %v2099_v43 }
 0x654   : > { %v2111_v45 = vadd.f32 %v2108_v14, %v2101_v44 }
 0x656   : > { %2112 = vmatprep.subr.mxu0 %v2111_v45 }
 0x657   : > { %2113 = vmatpush1.msra.mxu0 %v2110_v46 }
 0x658   : > { %2447 = vmatmul.mubr.msk.f32.vlgmr.msra.gmra.mrb[2].mxu0 %vm337_vm3, %v2771_v59 }
 0x659   : > { %2255 = vmatprep.mubr.f32.mxu0 %v2552_v0 }
 0x72b   : > { %v2178_v25 = vpop.f32.mrb[2].mxu0 }
 0x72c   : > { %v2180_v47 = vpop.f32.mrb[3].mxu0 }
 0x72d   : > { %v2183_v48 = vadd.f32 %v2180_v47, %v2178_v25 }
 0x72f   : > { %2184 = vadd.xlane.f32.xlu1 %v2183_v48 }
 0x740   : > { %2271 = vperm.xlu1 %2514, %v2659_v3  }
 0x7bc   : > { %v2185_v49 = vpop.xlane.xlu1 %2184 }
 0x7bd   : > { %v2186_v50 = vmul.f32 0.00390625, %v2185_v49 }
 0x7bf   : > { %v2187_v51 = vsub.f32 %v2110_v46, %v2186_v50  ;;  %v2188_v5 = vsub.f32 %v2111_v45, %v2186_v50 }
 0x7c0   : > { %v2272_v63 = vpop.permute.xlu1 %2271 }
 0x7c1   : > { %v2189_v52 = vmul.f32 %v2187_v51, %v2187_v51  ;;  %v2190_v53 = vmul.f32 %v2188_v5, %v2188_v5 }
 0x7c3   : > { %2191 = vmatprep.subr.mxu0 %v2190_v53 }
 0x7c4   : > { %2192 = vmatpush1.msra.mxu0 %v2189_v52 }
 0x7c5   : > { %2448 = vmatmul.mubr.msk.f32.vlgmr.msra.gmra.mrb[4].mxu0 %vm337_vm3, %v2771_v59 }
 0x898   : > { %v2257_v0 = vpop.f32.mrb[4].mxu0 }
 0x899   : > { %v2259_v56 = vpop.f32.mrb[5].mxu0 }
 0x89a   : > { %v2262_v57 = vadd.f32 %v2259_v56, %v2257_v0 }
 0x89c   : > { %2263 = vadd.xlane.f32.xlu0 %v2262_v57 }
 0x8b2   : > { %2277 = vperm.xlu0 %2515, %v2659_v3  }
 0x929   : > { %v2264_v58 = vpop.xlane.xlu0 %2263 }
 0x92a   : > { %v2265_v60 = vmul.f32 0.00390625, %v2264_v58 }
 0x92c   : > { %v2266_v61 = vadd.f32 1e-05, %v2265_v60 }
 0x92e   : > { %2534 = vrsqrt.f32 %v2266_v61 }
 0x931   : > { %v2278_v6 = vpop.permute.xlu0 %2277 }
 0x938   : > { %v2535_v62 = vpop.eup %2534 }
 0x939   : > { %v2268_v4 = vmul.f32 %v2535_v62, %v2187_v51  ;;  %v2269_v59 = vmul.f32 %v2535_v62, %v2188_v5 }
 0x93b   : > { %v2274_v7 = vmul.f32 %v2272_v63, %v2268_v4  ;;  %v2275_v8 = vmul.f32 %v2272_v63, %v2269_v59 }
 0x93d   : > { %v2280_v9 = vadd.f32 %v2278_v6, %v2274_v7  ;;  %v2281_v10 = vadd.f32 %v2278_v6, %v2275_v8 }
 0x93f   : > { %v2449_v17 = vmul.f32 -1.442695, %v2280_v9  ;;  %v2450_v11 = vmul.f32 -1.442695, %v2281_v10 }
 0x941   : > { %2536 = vpow2.f32 %v2449_v17 }
 0x942   : > { %2538 = vpow2.f32 %v2450_v11 }
 0x94b   : > { %v2537_v15 = vpop.eup %2536 }
 0x94c   : > { %v2539_v3 = vpop.eup %2538  ;;  %v2288_v16 = vadd.f32 1.0, %v2537_v15 }
 0x94d   : > { %v2289_v18 = vadd.f32 1.0, %v2539_v3 }
 0x94e   : > { %2540 = vrcp.f32 %v2288_v16 }
 0x94f   : > { %2542 = vrcp.f32 %v2289_v18 }
 0x958   : > { %v2541_v19 = vpop.eup %2540 }
 0x959   : > { %v2543_v20 = vpop.eup %2542  ;;  %v2294_v21 = vmul.f32 %v2541_v19, %v2280_v9 }
 0x95a   : > { %v2295_v22 = vmul.f32 %v2543_v20, %v2281_v10 }
 0x95b   : > { %v2296_v23 = vadd.f32 %v2294_v21, %v2620_v1 }
 0x95c   : > { %v2297_v24 = vadd.f32 %v2295_v22, %v2626_v2 }
 0x95d   : > { %2298 = vst [vmem:[%s268_s26] sm:$0xff] %v2296_v23 }
 0x95e   : > { %2299 = vst [vmem:[%s268_s26 + $0x8] sm:$0xff] %v2297_v24 }
 0x95f PF: > { %s16_s21 = sadd.s32 1, %s2550_s21  }
 0x960   : > { %p13_p4 = scmp.ge.s32.totalorder %s16_s21, 4  }
 0x962   :  { %15 = sbr.rel (!%p13_p4) target bundleno = 1 (0x1), region = 93 }

// kernel: _lambda_.2
= control target key start
LH: loop header
LB: loop body
LE: loop exit
PB: predicated region body
PF: predicated region fallthrough
CT: control target
= control target key end

     0   :  { %s2772_s24 = smov 0   ;;  %s3099_s0 = inlined_call_operand.vmem [shape: f32[2,4,256], index: 0, kind: input, shape index: {}]   ;;  %s3100_s1 = inlined_call_operand.vmem [shape: f32[2,1,256], index: 1, kind: input, shape index: {}]   ;;  %s3101_s2 = inlined_call_operand.vmem [shape: f32[9,8,4], index: 2, kind: input, shape index: {}]   ;;  %s3102_s3 = inlined_call_operand.vmem [shape: f32[9,8,8], index: 3, kind: input, shape index: {}]   ;;  %s3103_s4 = inlined_call_operand.vmem [shape: f32[8,7], index: 4, kind: input, shape index: {}]   ;;  %s3104_s5 = inlined_call_operand.vmem [shape: f32[8,8], index: 5, kind: input, shape index: {}]   ;;  %s3105_s6 = inlined_call_operand.vmem [shape: f32[8,4], index: 6, kind: input, shape index: {}]   ;;  %s3106_s7 = inlined_call_operand.vmem [shape: f32[2,8,256], index: 7, kind: output, shape index: {}]  }
   0x1 LB: > { %s2522_s25 = sadd.s32 4294967295, %s2714_s24   ;;  %p2526_p0 = scmp.ge.s32.totalorder %s2714_s24, 1  ;;  %s2714_s24 = sphi %s2772_s24, %s17_s24  }
   0x2   : > { %p246_p1 = scmp.lt.s32.totalorder %s2714_s24, 3 }
   0x4   : > { %p247_p2 = pnand %p2526_p0, %p246_p1 }
   0x5   : > { %p282_p3 = scmp.lt.s32.totalorder (!%p247_p2), %s2522_s25, 1  ;;  %v2716_v0 = vmov (!%p247_p2), 0.0   ;;  %s2717_s30 = smov (!%p247_p2), 16   ;;  %vm338_vm0 = vcmask (!%p247_p2), 1043456   ;;  %v2833_v3 = vld [vmem:[%s3103_s4] sm:$0xff] (!%p247_p2)  ;;  %v2725_v4 = vmov (!%p247_p2), 0   ;;  %v296_v5 = vlaneseq (!%p247_p2) }
   0x6   : > { %250 = sbr.rel (%p247_p2) target bundleno = 2399 (0x95f), region = 48  ;;  %520 = vmatprep.mubr.f32.mxu1 (!%p247_p2), %v2716_v0  ;;  %407 = vmatprep.mubr.f32.mxu0 (!%p247_p2), %v2716_v0  ;;  %s2718_s8 = smov (!%p247_p2), 17   ;;  %vm418_vm1 = vcmask (!%p247_p2), 138240   ;;  %vm442_vm2 = vcmask (!%p247_p2), 130048   ;;  %vm334_vm5 = vcmask (!%p247_p2), 31744   ;;  %v2535_v20 = vld [vmem:[%s3101_s2 + $0x8] sm:$0xff] (!%p247_p2) }
   0x7   : > { %s2719_s9 = smov (!%p247_p2), 15   ;;  %s2720_s10 = smov (!%p247_p2), 1   ;;  %2672 = vset.pattern.permute.xlu0 (!%p247_p2), %v2725_v4  ;;  %v297_v6 = vand.u32 (!%p247_p2), 127, %v296_v5  ;;  %vm611_vm6 = vcmask (!%p247_p2), 121856   ;;  %vm718_vm8 = vcmask (!%p247_p2), 7168   ;;  %v437_v32 = vld [vmem:[%s3101_s2] sm:$0xff] (!%p247_p2)  ;;  %vm2577_vm15 = vmneg (!%p247_p2), %vm442_vm2 }
   0x8   : > { %s2721_s11 = smov (!%p247_p2), 127   ;;  %s2722_s12 = smov (!%p247_p2), 113   ;;  %v2542_v37 = vld [vmem:[%s3101_s2 + $0x10] sm:$0xff] (!%p247_p2)  ;;  %vm891_vm10 = vcmask (!%p247_p2), 1039360   ;;  %v2546_v41 = vld [vmem:[%s3101_s2 + $0x18] sm:$0xff] (!%p247_p2)  ;;  %vm986_vm11 = vcmask (!%p247_p2), 924672  }
   0x9   : > { %s2723_s13 = smov (!%p247_p2), 112   ;;  %s2724_s14 = smov (!%p247_p2), 111   ;;  %v298_v7 = vadd.s32 (!%p247_p2), 128, %v297_v6  ;;  %v303_v8 = vand.u32 (!%p247_p2), 15, %v297_v6  ;;  %v2550_v47 = vld [vmem:[%s3101_s2 + $0x20] sm:$0xff] (!%p247_p2)  ;;  %vm1081_vm12 = vcmask (!%p247_p2), 916480  }
   0xa   : > { %v2554_v53 = vld [vmem:[%s3101_s2 + $0x28] sm:$0xff] (!%p247_p2)  ;;  %vm1172_vm13 = vcmask (!%p247_p2), 908288   ;;  %v2558_v59 = vld [vmem:[%s3101_s2 + $0x30] sm:$0xff] (!%p247_p2)  ;;  %v2566_v4 = vld [vmem:[%s3101_s2 + $0x40] sm:$0xff] (!%p247_p2)  ;;  %vm1269_vm14 = vcmask (!%p247_p2), 64512  }
   0xb   : > { %v310_v9 = vand.u32 (!%p247_p2), 15, %v298_v7  ;;  %v2837_v10 = vadd.s32 (!%p247_p2), 4294967295, %v303_v8  ;;  %v2858_v24 = vadd.s32 (!%p247_p2), 1, %v303_v8  ;;  %v326_v6 = vld [vmem:[%s3105_s6] sm:$0xff] (!%p247_p2) }
   0xd   : > { %s3108_s25 = smov (!%p282_p3, %s2522_s25), 1  ;;  %v2839_v11 = vadd.s32 4294967295, %v310_v9  ;;  %vm425_vm3 = vcmp.ge.s32.totalorder %v2837_v10, 0  ;;  %v2844_v15 = vadd.s32 1, %v310_v9  ;;  %vm620_vm9 = vcmp.lt.s32.totalorder %v2858_v24, 16 }
   0xe   : > { %s2614_s26 = sshll.u32 %s3108_s25, 3  ;;  %s2529_s28 = sshll.u32 %s3108_s25, 1  ;;  %v2729_v24 = vmov 4  }
   0xf   : > { %s286_s29 = scalar_lea.vmem %s3099_s0, %s2614_s26  ;;  %vm426_vm4 = vcmp.ge.s32.totalorder %v2839_v11, 0  ;;  %vm621_vm7 = vcmp.lt.s32.totalorder %v2844_v15, 16  ;;  %s290_s16 = scalar_lea.vmem %s3100_s1, %s2529_s28  ;;  %v2597_v11 = vld [vmem:[%s3102_s3 + $0x30] sm:$0xff] }
  0x10   : > { %v2788_v1 = vld [vmem:[%s286_s29] sm:$0xff]  ;;  %s2615_s29 = sshll.u32 %s3108_s25, 4 }
  0x11   : > { %438 = vrot.lane.b32.xlu0 %v2788_v1, %s2717_s30  ;;  %414 = vrot.lane.b32.xlu1 %v2788_v1, %s2718_s8  ;;  %v2796_v2 = vcombine.high %v2788_v1, %v2788_v1 }
  0x13   : > { %2532 = vmatprep.subr.msk.mxu0 %vm338_vm0, %v2796_v2 }
  0x14   : > { %2533 = vmatpush1.msk.msra.mxu0 %vm338_vm0, %v2788_v1 }
  0x15   : > { %440 = vrot.lane.b32.xlu0 %v2796_v2, %s2717_s30  ;;  %416 = vrot.lane.b32.xlu1 %v2796_v2, %s2718_s8 }
  0x16   : > { %2534 = vmatmul.mubr.msk.f32.vlgmr.msra.gmra.mrb[0].mxu0 %vm334_vm5, %v326_v6 }
  0x17   : > { %1337 = vmatprep.mubr.f32.mxu0 %v2716_v0 }
  0x19   : > { %609 = vrot.lane.b32.xlu1 %v2796_v2, %s2719_s9  ;;  %607 = vrot.lane.b32.xlu0 %v2788_v1, %s2719_s9 }
  0x1d   : > { %716 = vrot.lane.b32.xlu1 %v2796_v2, %s2720_s10  ;;  %714 = vrot.lane.b32.xlu0 %v2788_v1, %s2720_s10 }
  0x21   : > { %889 = vrot.lane.b32.xlu0 %v2796_v2, %s2721_s11  ;;  %887 = vrot.lane.b32.xlu1 %v2788_v1, %s2721_s11 }
  0x25   : > { %984 = vrot.lane.b32.xlu0 %v2796_v2, %s2722_s12  ;;  %982 = vrot.lane.b32.xlu1 %v2788_v1, %s2722_s12 }
  0x29   : > { %1079 = vrot.lane.b32.xlu0 %v2796_v2, %s2723_s13  ;;  %1077 = vrot.lane.b32.xlu1 %v2788_v1, %s2723_s13 }
  0x2d   : > { %1170 = vrot.lane.b32.xlu0 %v2796_v2, %s2724_s14  ;;  %1168 = vrot.lane.b32.xlu1 %v2788_v1, %s2724_s14 }
  0x31   : > { %1264 = vperm.xlu0 %2672, %v2833_v3  }
  0x83   : > { %v439_v12 = vpop.permute.xlu0 %438  ;;  %v415_v13 = vpop.permute.xlu1 %414 }
  0x84   : > { %v422_v14 = vsel %vm418_vm1, 0.0, %v415_v13  ;;  %v445_v23 = vsel %vm442_vm2, 0.0, %v439_v12 }
  0x85   : > { %v435_v21 = vsel %vm425_vm3, %v422_v14, 0.0  ;;  %v2962_v14 = vld [vmem:[%s3104_s5] sm:$0xff] }
  0x87   : > { %v441_v16 = vpop.permute.xlu0 %440  ;;  %v417_v17 = vpop.permute.xlu1 %416 }
  0x88   : > { %v419_v18 = vsel %vm418_vm1, %v415_v13, %v417_v17  ;;  %v443_v19 = vsel %vm442_vm2, %v439_v12, %v441_v16 }
  0x89   : > { %v436_v22 = vsel %vm426_vm4, %v419_v18, 0.0  ;;  %2536 = vmatprep.subr.msk.mxu1 %vm338_vm0, %v443_v19 }
  0x8a   : > { %2537 = vmatpush1.msk.msra.mxu1 %vm338_vm0, %v445_v23 }
  0x8b   : > { %2538 = vmatmul.mubr.msk.f32.vlgmr.msra.gmra.mrb[0].mxu1 %vm334_vm5, %v2535_v20  ;;  %2539 = vmatprep.subr.msk.mxu1 %vm338_vm0, %v436_v22  ;;  %v610_v25 = vpop.permute.xlu1 %609  ;;  %v608_v26 = vpop.permute.xlu0 %607 }
  0x8c   : > { %2540 = vmatpush1.msk.msra.mxu1 %vm338_vm0, %v435_v21  ;;  %600 = vmatprep.mubr.f32.mxu1 %v2716_v0  ;;  %v612_v27 = vsel %vm611_vm6, %v608_v26, %v610_v25  ;;  %v615_v29 = vsel %vm611_vm6, 0.0, %v608_v26 }
  0x8d   : > { %v629_v28 = vsel %vm621_vm7, %v612_v27, 0.0  ;;  %v628_v34 = vsel %vm620_vm9, %v615_v29, 0.0  ;;  %v2727_v29 = vmov 2  }
  0x8e   : > { %2543 = vmatprep.subr.msk.mxu1 %vm338_vm0, %v629_v28  ;;  %v2726_v28 = vmov 1   ;;  %2674 = vset.pattern.permute.xlu0 %v2727_v29 }
  0x8f   : > { %v717_v30 = vpop.permute.xlu1 %716  ;;  %v715_v31 = vpop.permute.xlu0 %714  ;;  %2673 = vset.pattern.permute.xlu1 %v2726_v28 }
  0x90   : > { %v719_v33 = vsel %vm718_vm8, %v715_v31, %v717_v30  ;;  %v722_v36 = vsel %vm718_vm8, 0.0, %v715_v31 }
  0x91   : > { %v724_v35 = vsel %vm426_vm4, %v719_v33, 0.0  ;;  %v723_v38 = vsel %vm425_vm3, %v722_v36, 0.0 }
  0x93   : > { %2541 = vmatmul.mubr.msk.f32.vlgmr.msra.gmra.mrb[0].mxu1 %vm334_vm5, %v437_v32  ;;  %v890_v39 = vpop.permute.xlu0 %889  ;;  %v888_v43 = vpop.permute.xlu1 %887 }
  0x94   : > { %2544 = vmatpush1.msk.msra.mxu1 %vm338_vm0, %v628_v34  ;;  %705 = vmatprep.mubr.f32.mxu1 %v2716_v0  ;;  %v895_v40 = vsel %vm891_vm10, %v890_v39, 0.0  ;;  %v892_v45 = vsel %vm891_vm10, %v888_v43, %v890_v39 }
  0x95   : > { %2547 = vmatprep.subr.msk.mxu1 %vm338_vm0, %v724_v35  ;;  %v897_v42 = vsel %vm621_vm7, %v895_v40, 0.0  ;;  %v896_v48 = vsel %vm620_vm9, %v892_v45, 0.0 }
  0x97   : > { %v985_v44 = vpop.permute.xlu0 %984  ;;  %v983_v50 = vpop.permute.xlu1 %982 }
  0x98   : > { %v990_v46 = vsel %vm986_vm11, %v985_v44, 0.0  ;;  %v987_v51 = vsel %vm986_vm11, %v983_v50, %v985_v44 }
  0x99   : > { %v992_v49 = vsel %vm426_vm4, %v990_v46, 0.0  ;;  %v991_v54 = vsel %vm425_vm3, %v987_v51, 0.0  ;;  %v1461_v51 = vshrl.u32 %v296_v5, 7 }
  0x9b   : > { %2545 = vmatmul.mubr.msk.f32.vlgmr.msra.gmra.mrb[0].mxu1 %vm334_vm5, %v2542_v37  ;;  %v1080_v52 = vpop.permute.xlu0 %1079  ;;  %v1078_v57 = vpop.permute.xlu1 %1077 }
  0x9c   : > { %2548 = vmatpush1.msk.msra.mxu1 %vm338_vm0, %v723_v38  ;;  %800 = vmatprep.mubr.f32.mxu1 %v2716_v0  ;;  %v1084_v55 = vsel %vm1081_vm12, %v1080_v52, 0.0  ;;  %v1082_v60 = vsel %vm1081_vm12, %v1078_v57, %v1080_v52  ;;  %v1462_v52 = vsub.s32 0, %v1461_v51 }
  0x9d   : > { %2551 = vmatprep.subr.msk.mxu1 %vm338_vm0, %v2796_v2 }
  0x9f   : > { %v1171_v56 = vpop.permute.xlu0 %1170  ;;  %v1169_v62 = vpop.permute.xlu1 %1168 }
  0xa0   : > { %v1176_v58 = vsel %vm1172_vm13, %v1171_v56, 0.0  ;;  %v1173_v63 = vsel %vm1172_vm13, %v1169_v62, %v1171_v56 }
  0xa1   : > { %v1178_v61 = vsel %vm621_vm7, %v1176_v58, 0.0  ;;  %v1177_v2 = vsel %vm620_vm9, %v1173_v63, 0.0 }
  0xa3   : > { %2549 = vmatmul.mubr.msk.f32.vlgmr.msra.gmra.mrb[0].mxu1 %vm334_vm5, %v2546_v41 }
  0xa4   : > { %2552 = vmatpush1.msk.msra.mxu1 %vm338_vm0, %v2788_v1  ;;  %878 = vmatprep.mubr.f32.mxu1 %v2716_v0  ;;  %v2562_v1 = vld [vmem:[%s3101_s2 + $0x38] sm:$0xff] }
  0xa5   : > { %2555 = vmatprep.subr.msk.mxu1 %vm338_vm0, %v897_v42 }
  0xab   : > { %2553 = vmatmul.mubr.msk.f32.vlgmr.msra.gmra.mrb[0].mxu1 %vm334_vm5, %v2550_v47 }
  0xac   : > { %2556 = vmatpush1.msk.msra.mxu1 %vm338_vm0, %v896_v48  ;;  %973 = vmatprep.mubr.f32.mxu1 %v2716_v0 }
  0xad   : > { %2559 = vmatprep.subr.msk.mxu1 %vm338_vm0, %v992_v49 }
  0xb0   : > { %v1265_v7 = vpop.permute.xlu0 %1264 }
  0xb3   : > { %2557 = vmatmul.mubr.msk.f32.vlgmr.msra.gmra.mrb[0].mxu1 %vm334_vm5, %v2554_v53  ;;  %v1458_v53 = vld [vmem:[%s290_s16] sm:$0x3] }
  0xb4   : > { %2560 = vmatpush1.msk.msra.mxu1 %vm338_vm0, %v991_v54  ;;  %1068 = vmatprep.mubr.f32.mxu1 %v2716_v0  ;;  %v1466_v54 = vsub.s32 1, %v1461_v51 }
  0xb5   : > { %2563 = vmatprep.subr.msk.mxu1 %vm338_vm0, %v1084_v55  ;;  %v1463_v55 = vrot.slane %v1458_v53, %v1462_v52 }
  0xb6   : > { %v1467_v57 = vrot.slane %v1458_v53, %v1466_v54  ;;  %v2601_v53 = vld [vmem:[%s3102_s3 + $0x38] sm:$0xff] }
  0xbb   : > { %2561 = vmatmul.mubr.msk.f32.vlgmr.msra.gmra.mrb[0].mxu1 %vm334_vm5, %v2558_v59 }
  0xbc   : > { %2564 = vmatpush1.msk.msra.mxu1 %vm338_vm0, %v1082_v60  ;;  %1159 = vmatprep.mubr.f32.mxu1 %v2716_v0 }
  0xbd   : > { %2567 = vmatprep.subr.msk.mxu1 %vm338_vm0, %v1178_v61 }
  0xc3   : > { %2565 = vmatmul.mubr.msk.f32.vlgmr.msra.gmra.mrb[0].mxu1 %vm334_vm5, %v2562_v1 }
  0xc4   : > { %2568 = vmatpush1.msk.msra.mxu1 %vm338_vm0, %v1177_v2  ;;  %1254 = vmatprep.mubr.f32.mxu1 %v2716_v0 }
  0xcb   : > { %2569 = vmatmul.mubr.msk.f32.vlgmr.msra.gmra.mrb[0].mxu1 %vm334_vm5, %v2566_v4 }
  0xcc   : > { %2331 = vmatprep.mubr.f32.mxu1 %v2716_v0 }
  0xe9   : > { %v2967_v16 = vpop.f32.mrb[0].mxu0 }
  0xea   : > { %v2969_v17 = vpop.f32.mrb[1].mxu0 }
 0x19e   : > { %v1256_v8 = vpop.f32.mrb[0].mxu1 }
 0x19f   : > { %v1258_v9 = vpop.f32.mrb[1].mxu1  ;;  %v1267_v13 = vadd.f32 %v1265_v7, %v1256_v8 }
 0x1a0   : > { %v1268_v12 = vadd.f32 %v1265_v7, %v1258_v9 }
 0x1a2   : > { %1273 = vmatprep.subr.mxu0 %v1268_v12 }
 0x1a3   : > { %1274 = vmatpush1.msra.mxu0 %v1267_v13 }
 0x1a4   : > { %2570 = vmatmul.mubr.msk.f32.vlgmr.msra.gmra.mrb[2].mxu0 %vm1269_vm14, %v2962_v14 }
 0x1a5   : > { %1417 = vmatprep.mubr.f32.mxu0 %v2716_v0 }
 0x277   : > { %v1339_v18 = vpop.f32.mrb[2].mxu0 }
 0x278   : > { %v1341_v19 = vpop.f32.mrb[3].mxu0 }
 0x279   : > { %v1344_v20 = vadd.f32 %v1341_v19, %v1339_v18 }
 0x27b   : > { %1345 = vadd.xlane.f32.xlu1 %v1344_v20 }
 0x28c   : > { %1433 = vperm.xlu1 %2673, %v2833_v3  }
 0x290   : > { %2676 = vset.pattern.permute.xlu1 %v2729_v24 }
 0x308   : > { %v1346_v21 = vpop.xlane.xlu1 %1345 }
 0x309   : > { %v1348_v22 = vmul.f32 0.00390625, %v1346_v21  ;;  %v2576_v21 = vld [vmem:[%s3102_s3 + $0x8] sm:$0xff] }
 0x30b   : > { %v1349_v23 = vsub.f32 %v1267_v13, %v1348_v22  ;;  %v1350_v25 = vsub.f32 %v1268_v12, %v1348_v22  ;;  %v2728_v13 = vmov 3  }
 0x30c   : > { %v1434_v37 = vpop.permute.xlu1 %1433 }
 0x30d   : > { %v1351_v26 = vmul.f32 %v1349_v23, %v1349_v23  ;;  %v1352_v27 = vmul.f32 %v1350_v25, %v1350_v25 }
 0x30f   : > { %1353 = vmatprep.subr.mxu0 %v1352_v27 }
 0x310   : > { %1354 = vmatpush1.msra.mxu0 %v1351_v26  ;;  %v1498_v26 = vld [vmem:[%s3102_s3] sm:$0xff] }
 0x311   : > { %2571 = vmatmul.mubr.msk.f32.vlgmr.msra.gmra.mrb[4].mxu0 %vm1269_vm14, %v2962_v14 }
 0x312   : > { %1576 = vmatprep.mubr.f32.mxu0 %v2716_v0 }
 0x3e4   : > { %v1419_v30 = vpop.f32.mrb[4].mxu0 }
 0x3e5   : > { %v1421_v31 = vpop.f32.mrb[5].mxu0 }
 0x3e6   : > { %v1424_v32 = vadd.f32 %v1421_v31, %v1419_v30  ;;  %v2583_v31 = vld [vmem:[%s3102_s3 + $0x10] sm:$0xff] }
 0x3e8   : > { %1425 = vadd.xlane.f32.xlu0 %v1424_v32 }
 0x3fe   : > { %1439 = vperm.xlu0 %2674, %v2833_v3  }
 0x402   : > { %2675 = vset.pattern.permute.xlu0 %v2728_v13 }
 0x475   : > { %v1426_v33 = vpop.xlane.xlu0 %1425 }
 0x476   : > { %v1427_v34 = vmul.f32 0.00390625, %v1426_v33 }
 0x478   : > { %v1428_v35 = vadd.f32 1e-05, %v1427_v34 }
 0x47a   : > { %2680 = vrsqrt.f32 %v1428_v35 }
 0x47d   : > { %v1440_v40 = vpop.permute.xlu0 %1439 }
 0x484   : > { %v2681_v36 = vpop.eup %2680 }
 0x485   : > { %v1430_v38 = vmul.f32 %v2681_v36, %v1349_v23  ;;  %v1431_v39 = vmul.f32 %v2681_v36, %v1350_v25  ;;  %v2587_v36 = vld [vmem:[%s3102_s3 + $0x18] sm:$0xff] }
 0x487   : > { %v1436_v41 = vmul.f32 %v1434_v37, %v1430_v38  ;;  %v1437_v42 = vmul.f32 %v1434_v37, %v1431_v39 }
 0x489   : > { %v1442_v43 = vadd.f32 %v1440_v40, %v1436_v41  ;;  %v1443_v44 = vadd.f32 %v1440_v40, %v1437_v42  ;;  %v2591_v41 = vld [vmem:[%s3102_s3 + $0x20] sm:$0xff] }
 0x48b   : > { %v2572_v45 = vmul.f32 -1.442695, %v1442_v43  ;;  %v2573_v46 = vmul.f32 -1.442695, %v1443_v44 }
 0x48d   : > { %2682 = vpow2.f32 %v2572_v45 }
 0x48e   : > { %2684 = vpow2.f32 %v2573_v46  ;;  %v2593_v46 = vld [vmem:[%s3102_s3 + $0x28] sm:$0xff] }
 0x497   : > { %v2683_v47 = vpop.eup %2682 }
 0x498   : > { %v2685_v48 = vpop.eup %2684  ;;  %v1450_v49 = vadd.f32 1.0, %v2683_v47 }
 0x499   : > { %v1451_v50 = vadd.f32 1.0, %v2685_v48 }
 0x49a   : > { %2686 = vrcp.f32 %v1450_v49 }
 0x49b   : > { %2688 = vrcp.f32 %v1451_v50 }
 0x4a4   : > { %v2687_v56 = vpop.eup %2686 }
 0x4a5   : > { %v2689_v58 = vpop.eup %2688  ;;  %v1456_v59 = vmul.f32 %v2687_v56, %v1442_v43 }
 0x4a6   : > { %v1457_v60 = vmul.f32 %v2689_v58, %v1443_v44 }
 0x4a7   : > { %v1470_v61 = vadd.f32 %v1463_v55, %v1456_v59  ;;  %v2604_v55 = vld [vmem:[%s3102_s3 + $0x40] sm:$0xff] }
 0x4a8   : > { %v1471_v62 = vadd.f32 %v1467_v57, %v1457_v60 }
 0x4a9   : > { %v2574_v63 = vmul.f32 -1.442695, %v1470_v61 }
 0x4aa   : > { %v2575_v1 = vmul.f32 -1.442695, %v1471_v62 }
 0x4ab   : > { %2690 = vpow2.f32 %v2574_v63  ;;  %v2730_v63 = vmov 6  }
 0x4ac   : > { %2692 = vpow2.f32 %v2575_v1 }
 0x4b5   : > { %v2691_v5 = vpop.eup %2690 }
 0x4b6   : > { %v2693_v2 = vpop.eup %2692  ;;  %v1478_v4 = vadd.f32 1.0, %v2691_v5 }
 0x4b7   : > { %v1479_v6 = vadd.f32 1.0, %v2693_v2 }
 0x4b8   : > { %2694 = vrcp.f32 %v1478_v4 }
 0x4b9   : > { %2696 = vrcp.f32 %v1479_v6 }
 0x4c2   : > { %v2695_v7 = vpop.eup %2694 }
 0x4c3   : > { %v2697_v8 = vpop.eup %2696  ;;  %v1484_v9 = vmul.f32 %v2695_v7, %v1470_v61 }
 0x4c4   : > { %v1485_v12 = vmul.f32 %v2697_v8, %v1471_v62 }
 0x4c5   : > { %1499 = vrot.lane.b32.xlu1 %v1484_v9, %s2717_s30 }
 0x4c6   : > { %1913 = vrot.lane.b32.xlu0 %v1485_v12, %s2721_s11 }
 0x4c9   : > { %1501 = vrot.lane.b32.xlu1 %v1485_v12, %s2717_s30  ;;  %s295_s30 = scalar_lea.vmem %s3106_s7, %s2615_s29 }
 0x4ca   : > { %2001 = vrot.lane.b32.xlu0 %v1485_v12, %s2722_s12 }
 0x4cd   : > { %1488 = vrot.lane.b32.xlu1 %v1484_v9, %s2718_s8 }
 0x4ce   : > { %2087 = vrot.lane.b32.xlu0 %v1484_v9, %s2723_s13 }
 0x4d1   : > { %1490 = vrot.lane.b32.xlu1 %v1485_v12, %s2718_s8 }
 0x4d2   : > { %2175 = vrot.lane.b32.xlu0 %v1485_v12, %s2724_s14 }
 0x4d5   : > { %1657 = vrot.lane.b32.xlu1 %v1484_v9, %s2719_s9 }
 0x4d6   : > { %2262 = vperm.xlu0 %2675, %v2833_v3  }
 0x4d9   : > { %1659 = vrot.lane.b32.xlu1 %v1485_v12, %s2719_s9 }
 0x4dd   : > { %1745 = vrot.lane.b32.xlu1 %v1484_v9, %s2720_s10 }
 0x4e1   : > { %1747 = vrot.lane.b32.xlu1 %v1485_v12, %s2720_s10 }
 0x4e5   : > { %1911 = vrot.lane.b32.xlu1 %v1484_v9, %s2721_s11 }
 0x4e9   : > { %1999 = vrot.lane.b32.xlu1 %v1484_v9, %s2722_s12 }
 0x4ed   : > { %2089 = vrot.lane.b32.xlu1 %v1485_v12, %s2723_s13 }
 0x4f1   : > { %2173 = vrot.lane.b32.xlu1 %v1484_v9, %s2724_s14 }
 0x537   : > { %v1500_v18 = vpop.permute.xlu1 %1499 }
 0x538   : > { %v1914_v37 = vpop.permute.xlu0 %1913 }
 0x539   : > { %v1918_v39 = vsel %vm891_vm10, %v1914_v37, 0.0 }
 0x53b   : > { %v1502_v19 = vpop.permute.xlu1 %1501 }
 0x53c   : > { %v1503_v20 = vsel %vm442_vm2, %v1500_v18, %v1502_v19  ;;  %v2002_v42 = vpop.permute.xlu0 %2001 }
 0x53d   : > { %1512 = vmatprep.subr.mxu0 %v1503_v20  ;;  %v2006_v44 = vsel %vm986_vm11, %v2002_v42, 0.0 }
 0x53e   : > { %2578 = vmatpush1.msk.msra.mxu0 %vm2577_vm15, %v1500_v18 }
 0x53f   : > { %2579 = vmatmul.mubr.msk.f32.vlgmr.msra.gmra.mrb[6].mxu0 %vm1269_vm14, %v2576_v21  ;;  %v1489_v22 = vpop.permute.xlu1 %1488 }
 0x540   : > { %1650 = vmatprep.mubr.f32.mxu0 %v2716_v0  ;;  %v1495_v27 = vsel %vm418_vm1, 0.0, %v1489_v22  ;;  %v2088_v47 = vpop.permute.xlu0 %2087 }
 0x543   : > { %v1491_v23 = vpop.permute.xlu1 %1490 }
 0x544   : > { %v1492_v25 = vsel %vm418_vm1, %v1489_v22, %v1491_v23  ;;  %v2176_v50 = vpop.permute.xlu0 %2175 }
 0x545   : > { %2580 = vmatprep.subr.msk.mxu0 %vm426_vm4, %v1492_v25  ;;  %v2180_v52 = vsel %vm1172_vm13, %v2176_v50, 0.0 }
 0x546   : > { %2581 = vmatpush1.msk.msra.mxu0 %vm425_vm3, %v1495_v27 }
 0x547   : > { %2582 = vmatmul.mubr.msk.f32.vlgmr.msra.gmra.mrb[6].mxu0 %vm1269_vm14, %v1498_v26  ;;  %v1658_v28 = vpop.permute.xlu1 %1657 }
 0x548   : > { %1736 = vmatprep.mubr.f32.mxu0 %v2716_v0  ;;  %v1664_v32 = vsel %vm611_vm6, 0.0, %v1658_v28 }
 0x54b   : > { %v1660_v29 = vpop.permute.xlu1 %1659 }
 0x54c   : > { %v1661_v30 = vsel %vm611_vm6, %v1658_v28, %v1660_v29 }
 0x54d   : > { %2584 = vmatprep.subr.msk.mxu0 %vm621_vm7, %v1661_v30 }
 0x54e   : > { %2585 = vmatpush1.msk.msra.mxu0 %vm620_vm9, %v1664_v32 }
 0x54f   : > { %2586 = vmatmul.mubr.msk.f32.vlgmr.msra.gmra.mrb[6].mxu0 %vm1269_vm14, %v2583_v31  ;;  %v1746_v33 = vpop.permute.xlu1 %1745 }
 0x550   : > { %1824 = vmatprep.mubr.f32.mxu0 %v2716_v0  ;;  %v1752_v38 = vsel %vm718_vm8, 0.0, %v1746_v33 }
 0x553   : > { %v1748_v34 = vpop.permute.xlu1 %1747 }
 0x554   : > { %v1749_v35 = vsel %vm718_vm8, %v1746_v33, %v1748_v34 }
 0x555   : > { %2588 = vmatprep.subr.msk.mxu0 %vm426_vm4, %v1749_v35  ;;  %v2263_v15 = vpop.permute.xlu0 %2262 }
 0x556   : > { %2589 = vmatpush1.msk.msra.mxu0 %vm425_vm3, %v1752_v38 }
 0x557   : > { %2590 = vmatmul.mubr.msk.f32.vlgmr.msra.gmra.mrb[6].mxu0 %vm1269_vm14, %v2587_v36  ;;  %1838 = vmatprep.subr.mxu0 %v1485_v12  ;;  %v1912_v40 = vpop.permute.xlu1 %1911 }
 0x558   : > { %1839 = vmatpush1.msra.mxu0 %v1484_v9  ;;  %1902 = vmatprep.mubr.f32.mxu0 %v2716_v0  ;;  %v1915_v43 = vsel %vm891_vm10, %v1912_v40, %v1914_v37 }
 0x559   : > { %2594 = vmatprep.subr.msk.mxu0 %vm621_vm7, %v1918_v39 }
 0x55b   : > { %v2000_v45 = vpop.permute.xlu1 %1999 }
 0x55c   : > { %v2003_v48 = vsel %vm986_vm11, %v2000_v45, %v2002_v42 }
 0x55f   : > { %2592 = vmatmul.mubr.msk.f32.vlgmr.msra.gmra.mrb[6].mxu0 %vm1269_vm14, %v2591_v41  ;;  %v2090_v49 = vpop.permute.xlu1 %2089 }
 0x560   : > { %2595 = vmatpush1.msk.msra.mxu0 %vm620_vm9, %v1915_v43  ;;  %1990 = vmatprep.mubr.f32.mxu0 %v2716_v0  ;;  %v2091_v51 = vsel %vm1081_vm12, %v2088_v47, %v2090_v49 }
 0x561   : > { %2598 = vmatprep.subr.msk.mxu0 %vm426_vm4, %v2006_v44 }
 0x563   : > { %v2174_v10 = vpop.permute.xlu1 %2173 }
 0x564   : > { %v2177_v54 = vsel %vm1172_vm13, %v2174_v10, %v2176_v50 }
 0x567   : > { %2596 = vmatmul.mubr.msk.f32.vlgmr.msra.gmra.mrb[6].mxu0 %vm1269_vm14, %v2593_v46 }
 0x568   : > { %2599 = vmatpush1.msk.msra.mxu0 %vm425_vm3, %v2003_v48  ;;  %2078 = vmatprep.mubr.f32.mxu0 %v2716_v0 }
 0x569   : > { %2602 = vmatprep.subr.msk.mxu0 %vm1081_vm12, %v2090_v49 }
 0x56f   : > { %2600 = vmatmul.mubr.msk.f32.vlgmr.msra.gmra.mrb[6].mxu0 %vm1269_vm14, %v2597_v11 }
 0x570   : > { %2101 = vmatpush1.msra.mxu0 %v2091_v51  ;;  %2164 = vmatprep.mubr.f32.mxu0 %v2716_v0 }
 0x571   : > { %2605 = vmatprep.subr.msk.mxu0 %vm621_vm7, %v2180_v52 }
 0x577   : > { %2603 = vmatmul.mubr.msk.f32.vlgmr.msra.gmra.mrb[6].mxu0 %vm1269_vm14, %v2601_v53 }
 0x578   : > { %2606 = vmatpush1.msk.msra.mxu0 %vm620_vm9, %v2177_v54  ;;  %2252 = vmatprep.mubr.f32.mxu0 %v2716_v0 }
 0x57f   : > { %2607 = vmatmul.mubr.msk.f32.vlgmr.msra.gmra.mrb[6].mxu0 %vm1269_vm14, %v2604_v55 }
 0x652   : > { %v2254_v56 = vpop.f32.mrb[6].mxu0 }
 0x653   : > { %v2256_v57 = vpop.f32.mrb[7].mxu0  ;;  %v2265_v59 = vadd.f32 %v2263_v15, %v2254_v56 }
 0x654   : > { %v2266_v58 = vadd.f32 %v2263_v15, %v2256_v57 }
 0x656   : > { %2267 = vmatprep.subr.mxu1 %v2266_v58 }
 0x657   : > { %2268 = vmatpush1.msra.mxu1 %v2265_v59 }
 0x658   : > { %2608 = vmatmul.mubr.msk.f32.vlgmr.msra.gmra.mrb[2].mxu1 %vm1269_vm14, %v2962_v14 }
 0x659   : > { %2410 = vmatprep.mubr.f32.mxu1 %v2716_v0  ;;  %v2731_v0 = vmov 5  }
 0x65a   : > { %2677 = vset.pattern.permute.xlu0 %v2731_v0 }
 0x72b   : > { %v2333_v60 = vpop.f32.mrb[2].mxu1 }
 0x72c   : > { %v2335_v61 = vpop.f32.mrb[3].mxu1 }
 0x72d   : > { %v2338_v62 = vadd.f32 %v2335_v61, %v2333_v60 }
 0x72f   : > { %2339 = vadd.xlane.f32.xlu1 %v2338_v62 }
 0x740   : > { %2426 = vperm.xlu1 %2676, %v2833_v3  }
 0x744   : > { %2678 = vset.pattern.permute.xlu1 %v2730_v63 }
 0x745   : > { %329 = vperm.xlu1 %2678, %v2833_v3  }
 0x7bc   : > { %v2340_v1 = vpop.xlane.xlu1 %2339 }
 0x7bd   : > { %v2341_v5 = vmul.f32 0.00390625, %v2340_v1 }
 0x7bf   : > { %v2342_v2 = vsub.f32 %v2265_v59, %v2341_v5  ;;  %v2343_v4 = vsub.f32 %v2266_v58, %v2341_v5 }
 0x7c0   : > { %v2427_v23 = vpop.permute.xlu1 %2426 }
 0x7c1   : > { %v2344_v6 = vmul.f32 %v2342_v2, %v2342_v2  ;;  %v2345_v7 = vmul.f32 %v2343_v4, %v2343_v4 }
 0x7c3   : > { %2346 = vmatprep.subr.mxu1 %v2345_v7 }
 0x7c4   : > { %2347 = vmatpush1.msra.mxu1 %v2344_v6  ;;  %v330_v34 = vpop.permute.xlu1 %329 }
 0x7c5   : > { %2609 = vmatmul.mubr.msk.f32.vlgmr.msra.gmra.mrb[4].mxu1 %vm1269_vm14, %v2962_v14  ;;  %v410_v37 = vadd.f32 %v2967_v16, %v330_v34  ;;  %v412_v39 = vadd.f32 %v2969_v17, %v330_v34 }
 0x898   : > { %v2412_v8 = vpop.f32.mrb[4].mxu1 }
 0x899   : > { %v2414_v9 = vpop.f32.mrb[5].mxu1 }
 0x89a   : > { %v2417_v12 = vadd.f32 %v2414_v9, %v2412_v8 }
 0x89c   : > { %2418 = vadd.xlane.f32.xlu0 %v2417_v12 }
 0x8b2   : > { %2432 = vperm.xlu0 %2677, %v2833_v3  }
 0x929   : > { %v2419_v13 = vpop.xlane.xlu0 %2418 }
 0x92a   : > { %v2420_v18 = vmul.f32 0.00390625, %v2419_v13 }
 0x92c   : > { %v2421_v19 = vadd.f32 1e-05, %v2420_v18 }
 0x92e   : > { %2698 = vrsqrt.f32 %v2421_v19 }
 0x931   : > { %v2433_v25 = vpop.permute.xlu0 %2432 }
 0x938   : > { %v2699_v20 = vpop.eup %2698 }
 0x939   : > { %v2423_v21 = vmul.f32 %v2699_v20, %v2342_v2  ;;  %v2424_v22 = vmul.f32 %v2699_v20, %v2343_v4 }
 0x93b   : > { %v2429_v26 = vmul.f32 %v2427_v23, %v2423_v21  ;;  %v2430_v14 = vmul.f32 %v2427_v23, %v2424_v22 }
 0x93d   : > { %v2435_v27 = vadd.f32 %v2433_v25, %v2429_v26  ;;  %v2436_v28 = vadd.f32 %v2433_v25, %v2430_v14 }
 0x93f   : > { %v2610_v29 = vmul.f32 -1.442695, %v2435_v27  ;;  %v2611_v30 = vmul.f32 -1.442695, %v2436_v28 }
 0x941   : > { %2700 = vpow2.f32 %v2610_v29 }
 0x942   : > { %2702 = vpow2.f32 %v2611_v30 }
 0x94b   : > { %v2701_v31 = vpop.eup %2700 }
 0x94c   : > { %v2703_v3 = vpop.eup %2702  ;;  %v2443_v32 = vadd.f32 1.0, %v2701_v31 }
 0x94d   : > { %v2444_v33 = vadd.f32 1.0, %v2703_v3 }
 0x94e   : > { %2704 = vrcp.f32 %v2443_v32 }
 0x94f   : > { %2706 = vrcp.f32 %v2444_v33 }
 0x958   : > { %v2705_v35 = vpop.eup %2704 }
 0x959   : > { %v2707_v36 = vpop.eup %2706  ;;  %v2449_v38 = vmul.f32 %v2705_v35, %v2435_v27 }
 0x95a   : > { %v2450_v40 = vmul.f32 %v2707_v36, %v2436_v28 }
 0x95b   : > { %v2451_v41 = vadd.f32 %v2449_v38, %v410_v37 }
 0x95c   : > { %v2452_v42 = vadd.f32 %v2450_v40, %v412_v39 }
 0x95d   : > { %2453 = vst [vmem:[%s295_s30] sm:$0xff] %v2451_v41 }
 0x95e   : > { %2454 = vst [vmem:[%s295_s30 + $0x8] sm:$0xff] %v2452_v42 }
 0x95f PF: > { %s17_s24 = sadd.s32 1, %s2714_s24  }
 0x960   : > { %p14_p4 = scmp.ge.s32.totalorder %s17_s24, 4  }
 0x962   :  { %16 = sbr.rel (!%p14_p4) target bundleno = 1 (0x1), region = 97 }

</bundles_post_ra>
